<compile_context>
chip_gen: v6e
topology: v6e:2x2x1
jax: 0.10.0
libtpu: 0.0.40
codegen_flags: <defaults>
</compile_context>

<pallas_src>
import jax
import jax.numpy as jnp
import numpy as np
from jax.experimental import pallas as pl
from jax.experimental.pallas import tpu as pltpu

_BN_EPS = 1e-5
_LEAKY_SLOPE = 0.01
_K = 5  # Conv1d kernel size


def _make_fused_encoder_kernel(n_block, batch, lens, cins, couts):
    """Builds the fully fused encoder kernel (all conv blocks + GAP, 1 launch).

    Ref layout (single grid-less invocation):
      refs = [x_ref,
              (w0, g0, b0, w1, g1, b1, ...),       # 3 * n_block parameter refs
              out_ref,
              pad_0..pad_{n-1},                    # (B, L_i + 4, Cin_i) scratch
              z_0..z_{n-1}]                        # (B * L_i, Cout_i) scratch
    """

    def kernel(*refs):
        x_ref = refs[0]
        p_refs = refs[1:1 + 3 * n_block]
        out_ref = refs[1 + 3 * n_block]
        pad_refs = refs[2 + 3 * n_block:2 + 4 * n_block]
        z_refs = refs[2 + 4 * n_block:2 + 5 * n_block]

        # Stage the zero 'same'-padded block-0 input in VMEM scratch.
        l0, c0 = lens[0], cins[0]
        pad_refs[0][...] = jnp.zeros((batch, l0 + 4, c0), jnp.float32)
        pad_refs[0][:, 2:l0 + 2, :] = x_ref[...]

        pooled = None
        for i in range(n_block):
            lb, cin, cout = lens[i], cins[i], couts[i]
            m = lb // 2
            w_ref = p_refs[3 * i]       # (K, cin, cout)
            g_ref = p_refs[3 * i + 1]   # (1, cout)
            b_ref = p_refs[3 * i + 2]   # (1, cout)
            pad = pad_refs[i]           # (batch, lb + 4, cin), zero-padded

            # --- Conv1d(k=5, 'same', no bias) as K shifted matmuls.
            # Batch and all output positions fold into one row dim (batch*lb).
            acc = None
            for t in range(_K):
                if lb % 8 == 0:
                    # Single 3-D window read, collapse leading dims (free:
                    # sublane dim lb is a multiple of the (8,128) tile).
                    win = pad[:, t:t + lb, :].reshape(batch * lb, cin)
                else:
                    # Fallback: per-batch slices + sublane concat.
                    win = jnp.concatenate(
                        [pad[b, t:t + lb, :] for b in range(batch)], axis=0)
                w_t = w_ref[t]          # (cin, cout)
                if cin == 1:
                    contrib = win * w_t             # (batch*lb,1)*(1,cout)
                else:
                    contrib = jnp.dot(
                        win, w_t, preferred_element_type=jnp.float32,
                        precision=jax.lax.Precision.HIGHEST)
                acc = contrib if acc is None else acc + contrib  # (batch*lb, cout)

            # --- BatchNorm1d (training batch stats), single pass: E[x], E[x^2]
            n = batch * lb
            mean = jnp.sum(acc, axis=0, keepdims=True) * (1.0 / n)
            msq = jnp.sum(acc * acc, axis=0, keepdims=True) * (1.0 / n)
            var = msq - mean * mean
            inv = jax.lax.rsqrt(var + _BN_EPS)
            z = (acc - mean) * (inv * g_ref[...]) + b_ref[...]

            # --- LeakyReLU(0.01)
            z = jnp.where(z >= 0, z, _LEAKY_SLOPE * z)

            # --- MaxPool1d(2,2): stash full-length result in VMEM, reload the
            # even/odd rows with stride-2 loads, take the pairwise max.
            zr = z_refs[i]              # (batch*lb, cout)
            zr[...] = z
            z_even = zr[pl.ds(0, batch * m, stride=2), :]
            z_odd = zr[pl.ds(1, batch * m, stride=2), :]
            pooled = jnp.maximum(z_even, z_odd)     # (batch*m, cout), b-major

            # Stage the next block's zero-padded input (still inside VMEM).
            if i + 1 < n_block:
                pnext = pad_refs[i + 1]             # (batch, m + 4, cout)
                pnext[...] = jnp.zeros((batch, m + 4, cout), jnp.float32)
                if m % 8 == 0:
                    pnext[:, 2:2 + m, :] = pooled.reshape(batch, m, cout)
                else:
                    for b in range(batch):
                        pnext[b, 2:2 + m, :] = pooled[b * m:(b + 1) * m, :]

        # --- AdaptiveAvgPool1d(1) + flatten -> (batch, couts[-1])
        m_last = lens[-1] // 2
        c_last = couts[-1]
        if m_last % 8 == 0:
            out_ref[...] = (
                jnp.sum(pooled.reshape(batch, m_last, c_last), axis=1)
                * (1.0 / m_last))
        else:
            for b in range(batch):
                out_ref[b:b + 1, :] = (
                    jnp.sum(pooled[b * m_last:(b + 1) * m_last, :],
                            axis=0, keepdims=True) * (1.0 / m_last))

    return kernel


def cnn_encoder_forward(x_ncl, params):
    """Forward of CNN_Encoder. x_ncl: (B, 1, L) (PyTorch NCL). One pallas_call.

    grad_reverse (forward) is identity, so no grad_reverse handling is needed.
    """
    x = x_ncl.astype(jnp.float32)
    batch, cin0, l0 = x.shape
    assert cin0 == 1
    n_block = len(params)
    lens = [l0 // (2 ** i) for i in range(n_block)]
    cins = [p[0].shape[1] for p in params]
    couts = [p[0].shape[0] for p in params]
    assert lens[-1] % 2 == 0, "length must be divisible by 2**n_block"

    # (B, 1, L) -> channels-last (B, L, 1): a free reshape (same memory).
    inputs = [x.reshape(batch, l0, 1)]
    for (w, gamma, beta) in params:
        cout, cin, k = w.shape
        assert k == _K
        inputs.append(jnp.transpose(w, (2, 1, 0)))   # (K, cin, cout)
        inputs.append(gamma.reshape(1, cout))
        inputs.append(beta.reshape(1, cout))

    scratch = (
        [pltpu.VMEM((batch, lens[i] + 4, cins[i]), jnp.float32)
         for i in range(n_block)]                       # padded conv inputs
        + [pltpu.VMEM((batch * lens[i], couts[i]), jnp.float32)
           for i in range(n_block)])                    # pre-pool activations

    kernel = _make_fused_encoder_kernel(n_block, batch, lens, cins, couts)
    return pl.pallas_call(
        kernel,
        out_shape=jax.ShapeDtypeStruct((batch, couts[-1]), jnp.float32),
        in_specs=[pl.BlockSpec(memory_space=pltpu.MemorySpace.VMEM)] * len(inputs),
        out_specs=pl.BlockSpec(memory_space=pltpu.MemorySpace.VMEM),
        scratch_shapes=scratch,
    )(*inputs)


def init_params(n_block, key):
    """Deterministic parameter init matching the torch module's shapes."""
    params = []
    in_chan, out_chan = 1, 8
    for _ in range(n_block):
        key, wk = jax.random.split(key)
        fan_in = in_chan * _K
        bound = 1.0 / np.sqrt(fan_in)
        w = jax.random.uniform(wk, (out_chan, in_chan, _K), jnp.float32,
                               -bound, bound)
        gamma = jnp.ones((out_chan,), jnp.float32)
        beta = jnp.zeros((out_chan,), jnp.float32)
        params.append((w, gamma, beta))
        in_chan, out_chan = out_chan, out_chan * 2
    return params


def ref_forward(x_ncl, params):
    """Pure-JAX reference (NCL layout, mirrors the torch module)."""
    y = x_ncl.astype(jnp.float32)
    for (w, gamma, beta) in params:
        cout, cin, k = w.shape
        b, _, length = y.shape
        yp = jnp.pad(y, ((0, 0), (0, 0), (2, 2)))
        conv = jnp.zeros((b, cout, length), jnp.float32)
        for t in range(k):
            conv = conv + jnp.einsum("oc,bcl->bol", w[:, :, t],
                                     yp[:, :, t:t + length],
                                     precision=jax.lax.Precision.HIGHEST)
        mean = conv.mean(axis=(0, 2), keepdims=True)
        var = conv.var(axis=(0, 2), keepdims=True)
        z = ((conv - mean) / jnp.sqrt(var + _BN_EPS)
             * gamma[None, :, None] + beta[None, :, None])
        z = jnp.where(z >= 0, z, _LEAKY_SLOPE * z)
        y = jnp.max(z.reshape(b, cout, length // 2, 2), axis=-1)
    return y.mean(axis=-1)


if __name__ == "__main__":
    n_block = 3                      # args[0]
    batch, length = 2, 64            # input (B, 1, L), NCL like torch Conv1d
    key = jax.random.PRNGKey(0)
    key, xk = jax.random.split(key)
    params = init_params(n_block, key)
    x = jax.random.normal(xk, (batch, 1, length), jnp.float32)

    out = cnn_encoder_forward(x, params)
    out = jax.block_until_ready(out)

    expected_out_chan = params[-1][0].shape[0]    # 8 * 2**(n_block-1)
    assert out.shape == (batch, expected_out_chan), out.shape

    ref = ref_forward(x, params)
    np.testing.assert_allclose(np.asarray(out), np.asarray(ref),
                               rtol=1e-4, atol=1e-4)
    print("KERNEL_OK")
</pallas_src>

<mosaic_0001>
module attributes {stable_mosaic.version = 11 : i64} {
  func.func @kernel(%arg0: memref<2x64x1xf32, #tpu.memory_space<vmem>>, %arg1: memref<5x1x8xf32, #tpu.memory_space<vmem>>, %arg2: memref<1x8xf32, #tpu.memory_space<vmem>>, %arg3: memref<1x8xf32, #tpu.memory_space<vmem>>, %arg4: memref<5x8x16xf32, #tpu.memory_space<vmem>>, %arg5: memref<1x16xf32, #tpu.memory_space<vmem>>, %arg6: memref<1x16xf32, #tpu.memory_space<vmem>>, %arg7: memref<5x16x32xf32, #tpu.memory_space<vmem>>, %arg8: memref<1x32xf32, #tpu.memory_space<vmem>>, %arg9: memref<1x32xf32, #tpu.memory_space<vmem>>, %arg10: memref<2x32xf32, #tpu.memory_space<vmem>>, %arg11: memref<2x68x1xf32, #tpu.memory_space<vmem>>, %arg12: memref<2x36x8xf32, #tpu.memory_space<vmem>>, %arg13: memref<2x20x16xf32, #tpu.memory_space<vmem>>, %arg14: memref<128x8xf32, #tpu.memory_space<vmem>>, %arg15: memref<64x16xf32, #tpu.memory_space<vmem>>, %arg16: memref<32x32xf32, #tpu.memory_space<vmem>>) attributes {dimension_semantics = [], scalar_prefetch = 0 : i64, scratch_operands = 6 : i64, tpu.core_type = #tpu.core_type<tc>} {
    %cst = arith.constant 0.000000e+00 : f32
    %0 = vector.broadcast %cst : f32 to vector<2x68x1xf32>
    %c0 = arith.constant 0 : index
    %c0_0 = arith.constant 0 : index
    %c0_1 = arith.constant 0 : index
    %1 = vector.load %arg11[%c0, %c0_0, %c0_1] : memref<2x68x1xf32, #tpu.memory_space<vmem>>, vector<2x68x1xf32>
    tpu.vector_store %arg11[%c0, %c0_0, %c0_1], %0 {strides = array<i32>} : memref<2x68x1xf32, #tpu.memory_space<vmem>>, vector<2x68x1xf32>,
    %c0_2 = arith.constant 0 : index
    %c0_3 = arith.constant 0 : index
    %c0_4 = arith.constant 0 : index
    %2 = vector.load %arg0[%c0_2, %c0_3, %c0_4] : memref<2x64x1xf32, #tpu.memory_space<vmem>>, vector<2x64x1xf32>
    %c0_5 = arith.constant 0 : index
    %c2 = arith.constant 2 : index
    %c0_6 = arith.constant 0 : index
    %3 = vector.load %arg11[%c0_5, %c2, %c0_6] : memref<2x68x1xf32, #tpu.memory_space<vmem>>, vector<2x64x1xf32>
    tpu.vector_store %arg11[%c0_5, %c2, %c0_6], %2 {strides = array<i32>} : memref<2x68x1xf32, #tpu.memory_space<vmem>>, vector<2x64x1xf32>,
    %c0_7 = arith.constant 0 : index
    %c0_8 = arith.constant 0 : index
    %c0_9 = arith.constant 0 : index
    %4 = vector.load %arg11[%c0_7, %c0_8, %c0_9] : memref<2x68x1xf32, #tpu.memory_space<vmem>>, vector<2x64x1xf32>
    %5 = vector.shape_cast %4 : vector<2x64x1xf32> to vector<128x1xf32>
    %c0_10 = arith.constant 0 : index
    %c0_11 = arith.constant 0 : index
    %c0_12 = arith.constant 0 : index
    %6 = vector.load %arg1[%c0_10, %c0_11, %c0_12] : memref<5x1x8xf32, #tpu.memory_space<vmem>>, vector<1x1x8xf32>
    %7 = vector.shape_cast %6 : vector<1x1x8xf32> to vector<1x8xf32>
    %8 = vector.broadcast %5 : vector<128x1xf32> to vector<128x8xf32>
    %9 = vector.broadcast %7 : vector<1x8xf32> to vector<128x8xf32>
    %10 = arith.mulf %8, %9 : vector<128x8xf32>
    %c0_13 = arith.constant 0 : index
    %c1 = arith.constant 1 : index
    %c0_14 = arith.constant 0 : index
    %11 = vector.load %arg11[%c0_13, %c1, %c0_14] : memref<2x68x1xf32, #tpu.memory_space<vmem>>, vector<2x64x1xf32>
    %12 = vector.shape_cast %11 : vector<2x64x1xf32> to vector<128x1xf32>
    %c1_15 = arith.constant 1 : index
    %c0_16 = arith.constant 0 : index
    %c0_17 = arith.constant 0 : index
    %13 = vector.load %arg1[%c1_15, %c0_16, %c0_17] : memref<5x1x8xf32, #tpu.memory_space<vmem>>, vector<1x1x8xf32>
    %14 = vector.shape_cast %13 : vector<1x1x8xf32> to vector<1x8xf32>
    %15 = vector.broadcast %12 : vector<128x1xf32> to vector<128x8xf32>
    %16 = vector.broadcast %14 : vector<1x8xf32> to vector<128x8xf32>
    %17 = arith.mulf %15, %16 : vector<128x8xf32>
    %18 = arith.addf %10, %17 : vector<128x8xf32>
    %c0_18 = arith.constant 0 : index
    %c2_19 = arith.constant 2 : index
    %c0_20 = arith.constant 0 : index
    %19 = vector.load %arg11[%c0_18, %c2_19, %c0_20] : memref<2x68x1xf32, #tpu.memory_space<vmem>>, vector<2x64x1xf32>
    %20 = vector.shape_cast %19 : vector<2x64x1xf32> to vector<128x1xf32>
    %c2_21 = arith.constant 2 : index
    %c0_22 = arith.constant 0 : index
    %c0_23 = arith.constant 0 : index
    %21 = vector.load %arg1[%c2_21, %c0_22, %c0_23] : memref<5x1x8xf32, #tpu.memory_space<vmem>>, vector<1x1x8xf32>
    %22 = vector.shape_cast %21 : vector<1x1x8xf32> to vector<1x8xf32>
    %23 = vector.broadcast %20 : vector<128x1xf32> to vector<128x8xf32>
    %24 = vector.broadcast %22 : vector<1x8xf32> to vector<128x8xf32>
    %25 = arith.mulf %23, %24 : vector<128x8xf32>
    %26 = arith.addf %18, %25 : vector<128x8xf32>
    %c0_24 = arith.constant 0 : index
    %c3 = arith.constant 3 : index
    %c0_25 = arith.constant 0 : index
    %27 = vector.load %arg11[%c0_24, %c3, %c0_25] : memref<2x68x1xf32, #tpu.memory_space<vmem>>, vector<2x64x1xf32>
    %28 = vector.shape_cast %27 : vector<2x64x1xf32> to vector<128x1xf32>
    %c3_26 = arith.constant 3 : index
    %c0_27 = arith.constant 0 : index
    %c0_28 = arith.constant 0 : index
    %29 = vector.load %arg1[%c3_26, %c0_27, %c0_28] : memref<5x1x8xf32, #tpu.memory_space<vmem>>, vector<1x1x8xf32>
    %30 = vector.shape_cast %29 : vector<1x1x8xf32> to vector<1x8xf32>
    %31 = vector.broadcast %28 : vector<128x1xf32> to vector<128x8xf32>
    %32 = vector.broadcast %30 : vector<1x8xf32> to vector<128x8xf32>
    %33 = arith.mulf %31, %32 : vector<128x8xf32>
    %34 = arith.addf %26, %33 : vector<128x8xf32>
    %c0_29 = arith.constant 0 : index
    %c4 = arith.constant 4 : index
    %c0_30 = arith.constant 0 : index
    %35 = vector.load %arg11[%c0_29, %c4, %c0_30] : memref<2x68x1xf32, #tpu.memory_space<vmem>>, vector<2x64x1xf32>
    %36 = vector.shape_cast %35 : vector<2x64x1xf32> to vector<128x1xf32>
    %c4_31 = arith.constant 4 : index
    %c0_32 = arith.constant 0 : index
    %c0_33 = arith.constant 0 : index
    %37 = vector.load %arg1[%c4_31, %c0_32, %c0_33] : memref<5x1x8xf32, #tpu.memory_space<vmem>>, vector<1x1x8xf32>
    %38 = vector.shape_cast %37 : vector<1x1x8xf32> to vector<1x8xf32>
    %39 = vector.broadcast %36 : vector<128x1xf32> to vector<128x8xf32>
    %40 = vector.broadcast %38 : vector<1x8xf32> to vector<128x8xf32>
    %41 = arith.mulf %39, %40 : vector<128x8xf32>
    %42 = arith.addf %34, %41 : vector<128x8xf32>
    %cst_34 = arith.constant dense<0.000000e+00> : vector<8xf32>
    %43 = vector.multi_reduction <add>, %42, %cst_34 [0] : vector<128x8xf32> to vector<8xf32>
    %44 = vector.shape_cast %43 : vector<8xf32> to vector<1x8xf32>
    %cst_35 = arith.constant 7.812500e-03 : f32
    %45 = vector.broadcast %cst_35 : f32 to vector<1x8xf32>
    %46 = arith.mulf %44, %45 : vector<1x8xf32>
    %47 = arith.mulf %42, %42 : vector<128x8xf32>
    %cst_36 = arith.constant dense<0.000000e+00> : vector<8xf32>
    %48 = vector.multi_reduction <add>, %47, %cst_36 [0] : vector<128x8xf32> to vector<8xf32>
    %49 = vector.shape_cast %48 : vector<8xf32> to vector<1x8xf32>
    %cst_37 = arith.constant 7.812500e-03 : f32
    %50 = vector.broadcast %cst_37 : f32 to vector<1x8xf32>
    %51 = arith.mulf %49, %50 : vector<1x8xf32>
    %52 = arith.mulf %46, %46 : vector<1x8xf32>
    %53 = arith.subf %51, %52 : vector<1x8xf32>
    %cst_38 = arith.constant 9.99999974E-6 : f32
    %54 = vector.broadcast %cst_38 : f32 to vector<1x8xf32>
    %55 = arith.addf %53, %54 : vector<1x8xf32>
    %56 = math.rsqrt %55 : vector<1x8xf32>
    %57 = vector.broadcast %46 : vector<1x8xf32> to vector<128x8xf32>
    %58 = arith.subf %42, %57 : vector<128x8xf32>
    %c0_39 = arith.constant 0 : index
    %c0_40 = arith.constant 0 : index
    %59 = vector.load %arg2[%c0_39, %c0_40] : memref<1x8xf32, #tpu.memory_space<vmem>>, vector<1x8xf32>
    %60 = arith.mulf %56, %59 : vector<1x8xf32>
    %61 = vector.broadcast %60 : vector<1x8xf32> to vector<128x8xf32>
    %62 = arith.mulf %58, %61 : vector<128x8xf32>
    %c0_41 = arith.constant 0 : index
    %c0_42 = arith.constant 0 : index
    %63 = vector.load %arg3[%c0_41, %c0_42] : memref<1x8xf32, #tpu.memory_space<vmem>>, vector<1x8xf32>
    %64 = vector.broadcast %63 : vector<1x8xf32> to vector<128x8xf32>
    %65 = arith.addf %62, %64 : vector<128x8xf32>
    %cst_43 = arith.constant 0.000000e+00 : f32
    %66 = vector.broadcast %cst_43 : f32 to vector<128x8xf32>
    %67 = arith.cmpf oge, %65, %66 : vector<128x8xf32>
    %cst_44 = arith.constant 0.00999999977 : f32
    %68 = vector.broadcast %cst_44 : f32 to vector<128x8xf32>
    %69 = arith.mulf %68, %65 : vector<128x8xf32>
    %70 = arith.select %67, %65, %69 : vector<128x8xi1>, vector<128x8xf32>
    %c0_45 = arith.constant 0 : index
    %c0_46 = arith.constant 0 : index
    %71 = vector.load %arg14[%c0_45, %c0_46] : memref<128x8xf32, #tpu.memory_space<vmem>>, vector<128x8xf32>
    tpu.vector_store %arg14[%c0_45, %c0_46], %70 {strides = array<i32>} : memref<128x8xf32, #tpu.memory_space<vmem>>, vector<128x8xf32>,
    %c0_47 = arith.constant 0 : index
    %c0_48 = arith.constant 0 : index
    %72 = tpu.strided_load %arg14[%c0_47, %c0_48] {strides = array<i32: 2, 1>} : memref<128x8xf32, #tpu.memory_space<vmem>>, vector<64x8xf32>
    %c1_49 = arith.constant 1 : index
    %c0_50 = arith.constant 0 : index
    %73 = tpu.strided_load %arg14[%c1_49, %c0_50] {strides = array<i32: 2, 1>} : memref<128x8xf32, #tpu.memory_space<vmem>>, vector<64x8xf32>
    %74 = arith.maximumf %72, %73 : vector<64x8xf32>
    %cst_51 = arith.constant 0.000000e+00 : f32
    %75 = vector.broadcast %cst_51 : f32 to vector<2x36x8xf32>
    %c0_52 = arith.constant 0 : index
    %c0_53 = arith.constant 0 : index
    %c0_54 = arith.constant 0 : index
    %76 = vector.load %arg12[%c0_52, %c0_53, %c0_54] : memref<2x36x8xf32, #tpu.memory_space<vmem>>, vector<2x36x8xf32>
    tpu.vector_store %arg12[%c0_52, %c0_53, %c0_54], %75 {strides = array<i32>} : memref<2x36x8xf32, #tpu.memory_space<vmem>>, vector<2x36x8xf32>,
    %77 = vector.shape_cast %74 : vector<64x8xf32> to vector<2x32x8xf32>
    %c0_55 = arith.constant 0 : index
    %c2_56 = arith.constant 2 : index
    %c0_57 = arith.constant 0 : index
    %78 = vector.load %arg12[%c0_55, %c2_56, %c0_57] : memref<2x36x8xf32, #tpu.memory_space<vmem>>, vector<2x32x8xf32>
    tpu.vector_store %arg12[%c0_55, %c2_56, %c0_57], %77 {strides = array<i32>} : memref<2x36x8xf32, #tpu.memory_space<vmem>>, vector<2x32x8xf32>,
    %c0_58 = arith.constant 0 : index
    %c0_59 = arith.constant 0 : index
    %c0_60 = arith.constant 0 : index
    %79 = vector.load %arg12[%c0_58, %c0_59, %c0_60] : memref<2x36x8xf32, #tpu.memory_space<vmem>>, vector<2x32x8xf32>
    %80 = vector.shape_cast %79 : vector<2x32x8xf32> to vector<64x8xf32>
    %c0_61 = arith.constant 0 : index
    %c0_62 = arith.constant 0 : index
    %c0_63 = arith.constant 0 : index
    %81 = vector.load %arg4[%c0_61, %c0_62, %c0_63] : memref<5x8x16xf32, #tpu.memory_space<vmem>>, vector<1x8x16xf32>
    %82 = vector.shape_cast %81 : vector<1x8x16xf32> to vector<8x16xf32>
    %cst_64 = arith.constant dense<0.000000e+00> : vector<64x16xf32>
    %83 = tpu.matmul %80, %82, %cst_64 {dimension_numbers = #tpu.dot_dimension_numbers<[1], [0], [0], [1], [0, 0, 1, 1], [], []>, precision = #tpu.contract_precision<fp32>} : vector<64x8xf32>, vector<8x16xf32>, vector<64x16xf32> -> vector<64x16xf32>
    %c0_65 = arith.constant 0 : index
    %c1_66 = arith.constant 1 : index
    %c0_67 = arith.constant 0 : index
    %84 = vector.load %arg12[%c0_65, %c1_66, %c0_67] : memref<2x36x8xf32, #tpu.memory_space<vmem>>, vector<2x32x8xf32>
    %85 = vector.shape_cast %84 : vector<2x32x8xf32> to vector<64x8xf32>
    %c1_68 = arith.constant 1 : index
    %c0_69 = arith.constant 0 : index
    %c0_70 = arith.constant 0 : index
    %86 = vector.load %arg4[%c1_68, %c0_69, %c0_70] : memref<5x8x16xf32, #tpu.memory_space<vmem>>, vector<1x8x16xf32>
    %87 = vector.shape_cast %86 : vector<1x8x16xf32> to vector<8x16xf32>
    %cst_71 = arith.constant dense<0.000000e+00> : vector<64x16xf32>
    %88 = tpu.matmul %85, %87, %cst_71 {dimension_numbers = #tpu.dot_dimension_numbers<[1], [0], [0], [1], [0, 0, 1, 1], [], []>, precision = #tpu.contract_precision<fp32>} : vector<64x8xf32>, vector<8x16xf32>, vector<64x16xf32> -> vector<64x16xf32>
    %89 = arith.addf %83, %88 : vector<64x16xf32>
    %c0_72 = arith.constant 0 : index
    %c2_73 = arith.constant 2 : index
    %c0_74 = arith.constant 0 : index
    %90 = vector.load %arg12[%c0_72, %c2_73, %c0_74] : memref<2x36x8xf32, #tpu.memory_space<vmem>>, vector<2x32x8xf32>
    %91 = vector.shape_cast %90 : vector<2x32x8xf32> to vector<64x8xf32>
    %c2_75 = arith.constant 2 : index
    %c0_76 = arith.constant 0 : index
    %c0_77 = arith.constant 0 : index
    %92 = vector.load %arg4[%c2_75, %c0_76, %c0_77] : memref<5x8x16xf32, #tpu.memory_space<vmem>>, vector<1x8x16xf32>
    %93 = vector.shape_cast %92 : vector<1x8x16xf32> to vector<8x16xf32>
    %cst_78 = arith.constant dense<0.000000e+00> : vector<64x16xf32>
    %94 = tpu.matmul %91, %93, %cst_78 {dimension_numbers = #tpu.dot_dimension_numbers<[1], [0], [0], [1], [0, 0, 1, 1], [], []>, precision = #tpu.contract_precision<fp32>} : vector<64x8xf32>, vector<8x16xf32>, vector<64x16xf32> -> vector<64x16xf32>
    %95 = arith.addf %89, %94 : vector<64x16xf32>
    %c0_79 = arith.constant 0 : index
    %c3_80 = arith.constant 3 : index
    %c0_81 = arith.constant 0 : index
    %96 = vector.load %arg12[%c0_79, %c3_80, %c0_81] : memref<2x36x8xf32, #tpu.memory_space<vmem>>, vector<2x32x8xf32>
    %97 = vector.shape_cast %96 : vector<2x32x8xf32> to vector<64x8xf32>
    %c3_82 = arith.constant 3 : index
    %c0_83 = arith.constant 0 : index
    %c0_84 = arith.constant 0 : index
    %98 = vector.load %arg4[%c3_82, %c0_83, %c0_84] : memref<5x8x16xf32, #tpu.memory_space<vmem>>, vector<1x8x16xf32>
    %99 = vector.shape_cast %98 : vector<1x8x16xf32> to vector<8x16xf32>
    %cst_85 = arith.constant dense<0.000000e+00> : vector<64x16xf32>
    %100 = tpu.matmul %97, %99, %cst_85 {dimension_numbers = #tpu.dot_dimension_numbers<[1], [0], [0], [1], [0, 0, 1, 1], [], []>, precision = #tpu.contract_precision<fp32>} : vector<64x8xf32>, vector<8x16xf32>, vector<64x16xf32> -> vector<64x16xf32>
    %101 = arith.addf %95, %100 : vector<64x16xf32>
    %c0_86 = arith.constant 0 : index
    %c4_87 = arith.constant 4 : index
    %c0_88 = arith.constant 0 : index
    %102 = vector.load %arg12[%c0_86, %c4_87, %c0_88] : memref<2x36x8xf32, #tpu.memory_space<vmem>>, vector<2x32x8xf32>
    %103 = vector.shape_cast %102 : vector<2x32x8xf32> to vector<64x8xf32>
    %c4_89 = arith.constant 4 : index
    %c0_90 = arith.constant 0 : index
    %c0_91 = arith.constant 0 : index
    %104 = vector.load %arg4[%c4_89, %c0_90, %c0_91] : memref<5x8x16xf32, #tpu.memory_space<vmem>>, vector<1x8x16xf32>
    %105 = vector.shape_cast %104 : vector<1x8x16xf32> to vector<8x16xf32>
    %cst_92 = arith.constant dense<0.000000e+00> : vector<64x16xf32>
    %106 = tpu.matmul %103, %105, %cst_92 {dimension_numbers = #tpu.dot_dimension_numbers<[1], [0], [0], [1], [0, 0, 1, 1], [], []>, precision = #tpu.contract_precision<fp32>} : vector<64x8xf32>, vector<8x16xf32>, vector<64x16xf32> -> vector<64x16xf32>
    %107 = arith.addf %101, %106 : vector<64x16xf32>
    %cst_93 = arith.constant dense<0.000000e+00> : vector<16xf32>
    %108 = vector.multi_reduction <add>, %107, %cst_93 [0] : vector<64x16xf32> to vector<16xf32>
    %109 = vector.shape_cast %108 : vector<16xf32> to vector<1x16xf32>
    %cst_94 = arith.constant 1.562500e-02 : f32
    %110 = vector.broadcast %cst_94 : f32 to vector<1x16xf32>
    %111 = arith.mulf %109, %110 : vector<1x16xf32>
    %112 = arith.mulf %107, %107 : vector<64x16xf32>
    %cst_95 = arith.constant dense<0.000000e+00> : vector<16xf32>
    %113 = vector.multi_reduction <add>, %112, %cst_95 [0] : vector<64x16xf32> to vector<16xf32>
    %114 = vector.shape_cast %113 : vector<16xf32> to vector<1x16xf32>
    %cst_96 = arith.constant 1.562500e-02 : f32
    %115 = vector.broadcast %cst_96 : f32 to vector<1x16xf32>
    %116 = arith.mulf %114, %115 : vector<1x16xf32>
    %117 = arith.mulf %111, %111 : vector<1x16xf32>
    %118 = arith.subf %116, %117 : vector<1x16xf32>
    %cst_97 = arith.constant 9.99999974E-6 : f32
    %119 = vector.broadcast %cst_97 : f32 to vector<1x16xf32>
    %120 = arith.addf %118, %119 : vector<1x16xf32>
    %121 = math.rsqrt %120 : vector<1x16xf32>
    %122 = vector.broadcast %111 : vector<1x16xf32> to vector<64x16xf32>
    %123 = arith.subf %107, %122 : vector<64x16xf32>
    %c0_98 = arith.constant 0 : index
    %c0_99 = arith.constant 0 : index
    %124 = vector.load %arg5[%c0_98, %c0_99] : memref<1x16xf32, #tpu.memory_space<vmem>>, vector<1x16xf32>
    %125 = arith.mulf %121, %124 : vector<1x16xf32>
    %126 = vector.broadcast %125 : vector<1x16xf32> to vector<64x16xf32>
    %127 = arith.mulf %123, %126 : vector<64x16xf32>
    %c0_100 = arith.constant 0 : index
    %c0_101 = arith.constant 0 : index
    %128 = vector.load %arg6[%c0_100, %c0_101] : memref<1x16xf32, #tpu.memory_space<vmem>>, vector<1x16xf32>
    %129 = vector.broadcast %128 : vector<1x16xf32> to vector<64x16xf32>
    %130 = arith.addf %127, %129 : vector<64x16xf32>
    %cst_102 = arith.constant 0.000000e+00 : f32
    %131 = vector.broadcast %cst_102 : f32 to vector<64x16xf32>
    %132 = arith.cmpf oge, %130, %131 : vector<64x16xf32>
    %cst_103 = arith.constant 0.00999999977 : f32
    %133 = vector.broadcast %cst_103 : f32 to vector<64x16xf32>
    %134 = arith.mulf %133, %130 : vector<64x16xf32>
    %135 = arith.select %132, %130, %134 : vector<64x16xi1>, vector<64x16xf32>
    %c0_104 = arith.constant 0 : index
    %c0_105 = arith.constant 0 : index
    %136 = vector.load %arg15[%c0_104, %c0_105] : memref<64x16xf32, #tpu.memory_space<vmem>>, vector<64x16xf32>
    tpu.vector_store %arg15[%c0_104, %c0_105], %135 {strides = array<i32>} : memref<64x16xf32, #tpu.memory_space<vmem>>, vector<64x16xf32>,
    %c0_106 = arith.constant 0 : index
    %c0_107 = arith.constant 0 : index
    %137 = tpu.strided_load %arg15[%c0_106, %c0_107] {strides = array<i32: 2, 1>} : memref<64x16xf32, #tpu.memory_space<vmem>>, vector<32x16xf32>
    %c1_108 = arith.constant 1 : index
    %c0_109 = arith.constant 0 : index
    %138 = tpu.strided_load %arg15[%c1_108, %c0_109] {strides = array<i32: 2, 1>} : memref<64x16xf32, #tpu.memory_space<vmem>>, vector<32x16xf32>
    %139 = arith.maximumf %137, %138 : vector<32x16xf32>
    %cst_110 = arith.constant 0.000000e+00 : f32
    %140 = vector.broadcast %cst_110 : f32 to vector<2x20x16xf32>
    %c0_111 = arith.constant 0 : index
    %c0_112 = arith.constant 0 : index
    %c0_113 = arith.constant 0 : index
    %141 = vector.load %arg13[%c0_111, %c0_112, %c0_113] : memref<2x20x16xf32, #tpu.memory_space<vmem>>, vector<2x20x16xf32>
    tpu.vector_store %arg13[%c0_111, %c0_112, %c0_113], %140 {strides = array<i32>} : memref<2x20x16xf32, #tpu.memory_space<vmem>>, vector<2x20x16xf32>,
    %142 = vector.shape_cast %139 : vector<32x16xf32> to vector<2x16x16xf32>
    %c0_114 = arith.constant 0 : index
    %c2_115 = arith.constant 2 : index
    %c0_116 = arith.constant 0 : index
    %143 = vector.load %arg13[%c0_114, %c2_115, %c0_116] : memref<2x20x16xf32, #tpu.memory_space<vmem>>, vector<2x16x16xf32>
    tpu.vector_store %arg13[%c0_114, %c2_115, %c0_116], %142 {strides = array<i32>} : memref<2x20x16xf32, #tpu.memory_space<vmem>>, vector<2x16x16xf32>,
    %c0_117 = arith.constant 0 : index
    %c0_118 = arith.constant 0 : index
    %c0_119 = arith.constant 0 : index
    %144 = vector.load %arg13[%c0_117, %c0_118, %c0_119] : memref<2x20x16xf32, #tpu.memory_space<vmem>>, vector<2x16x16xf32>
    %145 = vector.shape_cast %144 : vector<2x16x16xf32> to vector<32x16xf32>
    %c0_120 = arith.constant 0 : index
    %c0_121 = arith.constant 0 : index
    %c0_122 = arith.constant 0 : index
    %146 = vector.load %arg7[%c0_120, %c0_121, %c0_122] : memref<5x16x32xf32, #tpu.memory_space<vmem>>, vector<1x16x32xf32>
    %147 = vector.shape_cast %146 : vector<1x16x32xf32> to vector<16x32xf32>
    %cst_123 = arith.constant dense<0.000000e+00> : vector<32x32xf32>
    %148 = tpu.matmul %145, %147, %cst_123 {dimension_numbers = #tpu.dot_dimension_numbers<[1], [0], [0], [1], [0, 0, 1, 1], [], []>, precision = #tpu.contract_precision<fp32>} : vector<32x16xf32>, vector<16x32xf32>, vector<32x32xf32> -> vector<32x32xf32>
    %c0_124 = arith.constant 0 : index
    %c1_125 = arith.constant 1 : index
    %c0_126 = arith.constant 0 : index
    %149 = vector.load %arg13[%c0_124, %c1_125, %c0_126] : memref<2x20x16xf32, #tpu.memory_space<vmem>>, vector<2x16x16xf32>
    %150 = vector.shape_cast %149 : vector<2x16x16xf32> to vector<32x16xf32>
    %c1_127 = arith.constant 1 : index
    %c0_128 = arith.constant 0 : index
    %c0_129 = arith.constant 0 : index
    %151 = vector.load %arg7[%c1_127, %c0_128, %c0_129] : memref<5x16x32xf32, #tpu.memory_space<vmem>>, vector<1x16x32xf32>
    %152 = vector.shape_cast %151 : vector<1x16x32xf32> to vector<16x32xf32>
    %cst_130 = arith.constant dense<0.000000e+00> : vector<32x32xf32>
    %153 = tpu.matmul %150, %152, %cst_130 {dimension_numbers = #tpu.dot_dimension_numbers<[1], [0], [0], [1], [0, 0, 1, 1], [], []>, precision = #tpu.contract_precision<fp32>} : vector<32x16xf32>, vector<16x32xf32>, vector<32x32xf32> -> vector<32x32xf32>
    %154 = arith.addf %148, %153 : vector<32x32xf32>
    %c0_131 = arith.constant 0 : index
    %c2_132 = arith.constant 2 : index
    %c0_133 = arith.constant 0 : index
    %155 = vector.load %arg13[%c0_131, %c2_132, %c0_133] : memref<2x20x16xf32, #tpu.memory_space<vmem>>, vector<2x16x16xf32>
    %156 = vector.shape_cast %155 : vector<2x16x16xf32> to vector<32x16xf32>
    %c2_134 = arith.constant 2 : index
    %c0_135 = arith.constant 0 : index
    %c0_136 = arith.constant 0 : index
    %157 = vector.load %arg7[%c2_134, %c0_135, %c0_136] : memref<5x16x32xf32, #tpu.memory_space<vmem>>, vector<1x16x32xf32>
    %158 = vector.shape_cast %157 : vector<1x16x32xf32> to vector<16x32xf32>
    %cst_137 = arith.constant dense<0.000000e+00> : vector<32x32xf32>
    %159 = tpu.matmul %156, %158, %cst_137 {dimension_numbers = #tpu.dot_dimension_numbers<[1], [0], [0], [1], [0, 0, 1, 1], [], []>, precision = #tpu.contract_precision<fp32>} : vector<32x16xf32>, vector<16x32xf32>, vector<32x32xf32> -> vector<32x32xf32>
    %160 = arith.addf %154, %159 : vector<32x32xf32>
    %c0_138 = arith.constant 0 : index
    %c3_139 = arith.constant 3 : index
    %c0_140 = arith.constant 0 : index
    %161 = vector.load %arg13[%c0_138, %c3_139, %c0_140] : memref<2x20x16xf32, #tpu.memory_space<vmem>>, vector<2x16x16xf32>
    %162 = vector.shape_cast %161 : vector<2x16x16xf32> to vector<32x16xf32>
    %c3_141 = arith.constant 3 : index
    %c0_142 = arith.constant 0 : index
    %c0_143 = arith.constant 0 : index
    %163 = vector.load %arg7[%c3_141, %c0_142, %c0_143] : memref<5x16x32xf32, #tpu.memory_space<vmem>>, vector<1x16x32xf32>
    %164 = vector.shape_cast %163 : vector<1x16x32xf32> to vector<16x32xf32>
    %cst_144 = arith.constant dense<0.000000e+00> : vector<32x32xf32>
    %165 = tpu.matmul %162, %164, %cst_144 {dimension_numbers = #tpu.dot_dimension_numbers<[1], [0], [0], [1], [0, 0, 1, 1], [], []>, precision = #tpu.contract_precision<fp32>} : vector<32x16xf32>, vector<16x32xf32>, vector<32x32xf32> -> vector<32x32xf32>
    %166 = arith.addf %160, %165 : vector<32x32xf32>
    %c0_145 = arith.constant 0 : index
    %c4_146 = arith.constant 4 : index
    %c0_147 = arith.constant 0 : index
    %167 = vector.load %arg13[%c0_145, %c4_146, %c0_147] : memref<2x20x16xf32, #tpu.memory_space<vmem>>, vector<2x16x16xf32>
    %168 = vector.shape_cast %167 : vector<2x16x16xf32> to vector<32x16xf32>
    %c4_148 = arith.constant 4 : index
    %c0_149 = arith.constant 0 : index
    %c0_150 = arith.constant 0 : index
    %169 = vector.load %arg7[%c4_148, %c0_149, %c0_150] : memref<5x16x32xf32, #tpu.memory_space<vmem>>, vector<1x16x32xf32>
    %170 = vector.shape_cast %169 : vector<1x16x32xf32> to vector<16x32xf32>
    %cst_151 = arith.constant dense<0.000000e+00> : vector<32x32xf32>
    %171 = tpu.matmul %168, %170, %cst_151 {dimension_numbers = #tpu.dot_dimension_numbers<[1], [0], [0], [1], [0, 0, 1, 1], [], []>, precision = #tpu.contract_precision<fp32>} : vector<32x16xf32>, vector<16x32xf32>, vector<32x32xf32> -> vector<32x32xf32>
    %172 = arith.addf %166, %171 : vector<32x32xf32>
    %cst_152 = arith.constant dense<0.000000e+00> : vector<32xf32>
    %173 = vector.multi_reduction <add>, %172, %cst_152 [0] : vector<32x32xf32> to vector<32xf32>
    %174 = vector.shape_cast %173 : vector<32xf32> to vector<1x32xf32>
    %cst_153 = arith.constant 3.125000e-02 : f32
    %175 = vector.broadcast %cst_153 : f32 to vector<1x32xf32>
    %176 = arith.mulf %174, %175 : vector<1x32xf32>
    %177 = arith.mulf %172, %172 : vector<32x32xf32>
    %cst_154 = arith.constant dense<0.000000e+00> : vector<32xf32>
    %178 = vector.multi_reduction <add>, %177, %cst_154 [0] : vector<32x32xf32> to vector<32xf32>
    %179 = vector.shape_cast %178 : vector<32xf32> to vector<1x32xf32>
    %cst_155 = arith.constant 3.125000e-02 : f32
    %180 = vector.broadcast %cst_155 : f32 to vector<1x32xf32>
    %181 = arith.mulf %179, %180 : vector<1x32xf32>
    %182 = arith.mulf %176, %176 : vector<1x32xf32>
    %183 = arith.subf %181, %182 : vector<1x32xf32>
    %cst_156 = arith.constant 9.99999974E-6 : f32
    %184 = vector.broadcast %cst_156 : f32 to vector<1x32xf32>
    %185 = arith.addf %183, %184 : vector<1x32xf32>
    %186 = math.rsqrt %185 : vector<1x32xf32>
    %187 = vector.broadcast %176 : vector<1x32xf32> to vector<32x32xf32>
    %188 = arith.subf %172, %187 : vector<32x32xf32>
    %c0_157 = arith.constant 0 : index
    %c0_158 = arith.constant 0 : index
    %189 = vector.load %arg8[%c0_157, %c0_158] : memref<1x32xf32, #tpu.memory_space<vmem>>, vector<1x32xf32>
    %190 = arith.mulf %186, %189 : vector<1x32xf32>
    %191 = vector.broadcast %190 : vector<1x32xf32> to vector<32x32xf32>
    %192 = arith.mulf %188, %191 : vector<32x32xf32>
    %c0_159 = arith.constant 0 : index
    %c0_160 = arith.constant 0 : index
    %193 = vector.load %arg9[%c0_159, %c0_160] : memref<1x32xf32, #tpu.memory_space<vmem>>, vector<1x32xf32>
    %194 = vector.broadcast %193 : vector<1x32xf32> to vector<32x32xf32>
    %195 = arith.addf %192, %194 : vector<32x32xf32>
    %cst_161 = arith.constant 0.000000e+00 : f32
    %196 = vector.broadcast %cst_161 : f32 to vector<32x32xf32>
    %197 = arith.cmpf oge, %195, %196 : vector<32x32xf32>
    %cst_162 = arith.constant 0.00999999977 : f32
    %198 = vector.broadcast %cst_162 : f32 to vector<32x32xf32>
    %199 = arith.mulf %198, %195 : vector<32x32xf32>
    %200 = arith.select %197, %195, %199 : vector<32x32xi1>, vector<32x32xf32>
    %c0_163 = arith.constant 0 : index
    %c0_164 = arith.constant 0 : index
    %201 = vector.load %arg16[%c0_163, %c0_164] : memref<32x32xf32, #tpu.memory_space<vmem>>, vector<32x32xf32>
    tpu.vector_store %arg16[%c0_163, %c0_164], %200 {strides = array<i32>} : memref<32x32xf32, #tpu.memory_space<vmem>>, vector<32x32xf32>,
    %c0_165 = arith.constant 0 : index
    %c0_166 = arith.constant 0 : index
    %202 = tpu.strided_load %arg16[%c0_165, %c0_166] {strides = array<i32: 2, 1>} : memref<32x32xf32, #tpu.memory_space<vmem>>, vector<16x32xf32>
    %c1_167 = arith.constant 1 : index
    %c0_168 = arith.constant 0 : index
    %203 = tpu.strided_load %arg16[%c1_167, %c0_168] {strides = array<i32: 2, 1>} : memref<32x32xf32, #tpu.memory_space<vmem>>, vector<16x32xf32>
    %204 = arith.maximumf %202, %203 : vector<16x32xf32>
    %205 = vector.shape_cast %204 : vector<16x32xf32> to vector<2x8x32xf32>
    %cst_169 = arith.constant dense<0.000000e+00> : vector<2x32xf32>
    %206 = vector.multi_reduction <add>, %205, %cst_169 [1] : vector<2x8x32xf32> to vector<2x32xf32>
    %cst_170 = arith.constant 1.250000e-01 : f32
    %207 = vector.broadcast %cst_170 : f32 to vector<2x32xf32>
    %208 = arith.mulf %206, %207 : vector<2x32xf32>
    %c0_171 = arith.constant 0 : index
    %c0_172 = arith.constant 0 : index
    %209 = vector.load %arg10[%c0_171, %c0_172] : memref<2x32xf32, #tpu.memory_space<vmem>>, vector<2x32xf32>
    tpu.vector_store %arg10[%c0_171, %c0_172], %208 {strides = array<i32>} : memref<2x32xf32, #tpu.memory_space<vmem>>, vector<2x32xf32>,
    return
  }
}

</mosaic_0001>

<bundles_post_ra>
// kernel: tpu_custom_call.1
= control target key start
LH: loop header
LB: loop body
LE: loop exit
PB: predicated region body
PF: predicated region fallthrough
CT: control target
= control target key end

     0   :  { %vm36_vm0 = vcmask 7168   ;;  %v9512_v3 = vmov 0   ;;  %v11481_v4 = vmov 0.0   ;;  %vm45_vm1 = vcmask 3072   ;;  %s11470_s0 = inlined_call_operand.vmem [shape: f32[2,64,1], index: 0, kind: input, shape index: {}]   ;;  %s11471_s1 = inlined_call_operand.vmem [shape: f32[5,1,8], index: 1, kind: input, shape index: {}]   ;;  %s11472_s2 = inlined_call_operand.vmem [shape: f32[1,8], index: 2, kind: input, shape index: {}]   ;;  %s11473_s3 = inlined_call_operand.vmem [shape: f32[1,8], index: 3, kind: input, shape index: {}]   ;;  %s11474_s4 = inlined_call_operand.vmem [shape: f32[5,8,16], index: 4, kind: input, shape index: {}]   ;;  %s11475_s5 = inlined_call_operand.vmem [shape: f32[1,16], index: 5, kind: input, shape index: {}]   ;;  %s11476_s6 = inlined_call_operand.vmem [shape: f32[1,16], index: 6, kind: input, shape index: {}]   ;;  %s11477_s7 = inlined_call_operand.vmem [shape: f32[5,16,32], index: 7, kind: input, shape index: {}]   ;;  %s11478_s8 = inlined_call_operand.vmem [shape: f32[1,32], index: 8, kind: input, shape index: {}]   ;;  %s11479_s9 = inlined_call_operand.vmem [shape: f32[1,32], index: 9, kind: input, shape index: {}]   ;;  %s11480_s10 = inlined_call_operand.hbm [shape: f32[2,32], index: 10, kind: output, shape index: {}]  }
   0x1   :  { %v56_v0 = vld [vmem:[%s11470_s0] sm:$0xff]  ;;  %v57_v1 = vld [vmem:[%s11470_s0 + $0x8] sm:$0xff]  ;;  %v58_v2 = vld [vmem:[%s11470_s0 + $0x10] sm:$0xff]  ;;  %9483 = vset.pattern.permute.xlu1 %v9512_v3  ;;  %9482 = vset.pattern.permute.xlu0 %v9512_v3  ;;  %37 = vst.msk [vmem:[#allocation2] sm:$0xff] %vm36_vm0, %v11481_v4 }
   0x2   :  { %38 = vst.msk [vmem:[#allocation2 + $0x8] sm:$0xff] %vm36_vm0, %v11481_v4  ;;  %39 = vst.msk [vmem:[#allocation2 + $0x10] sm:$0xff] %vm36_vm0, %v11481_v4  ;;  %v59_v5 = vld [vmem:[%s11470_s0 + $0x18] sm:$0xff]  ;;  %v60_v6 = vld [vmem:[%s11470_s0 + $0x20] sm:$0xff] }
   0x3   :  { %40 = vst.msk [vmem:[#allocation2 + $0x18] sm:$0xff] %vm36_vm0, %v11481_v4  ;;  %41 = vst.msk [vmem:[#allocation2 + $0x20] sm:$0xff] %vm36_vm0, %v11481_v4  ;;  %v61_v7 = vld [vmem:[%s11470_s0 + $0x28] sm:$0xff]  ;;  %v62_v8 = vld [vmem:[%s11470_s0 + $0x30] sm:$0xff] }
   0x4   :  { %42 = vst.msk [vmem:[#allocation2 + $0x28] sm:$0xff] %vm36_vm0, %v11481_v4  ;;  %43 = vst.msk [vmem:[#allocation2 + $0x30] sm:$0xff] %vm36_vm0, %v11481_v4  ;;  %v63_v9 = vld [vmem:[%s11470_s0 + $0x38] sm:$0xff]  ;;  %v64_v10 = vld [vmem:[%s11470_s0 + $0x40] sm:$0xff] }
   0x5   :  { %44 = vst.msk [vmem:[#allocation2 + $0x38] sm:$0xff] %vm36_vm0, %v11481_v4  ;;  %47 = vst.msk [vmem:[#allocation2 + $0x48] sm:$0xff] %vm36_vm0, %v11481_v4  ;;  %v65_v11 = vld [vmem:[%s11470_s0 + $0x48] sm:$0xff]  ;;  %v66_v12 = vld [vmem:[%s11470_s0 + $0x50] sm:$0xff] }
   0x6   :  { %48 = vst.msk [vmem:[#allocation2 + $0x50] sm:$0xff] %vm36_vm0, %v11481_v4  ;;  %49 = vst.msk [vmem:[#allocation2 + $0x58] sm:$0xff] %vm36_vm0, %v11481_v4  ;;  %v67_v13 = vld [vmem:[%s11470_s0 + $0x58] sm:$0xff]  ;;  %v68_v14 = vld [vmem:[%s11470_s0 + $0x60] sm:$0xff] }
   0x7   :  { %50 = vst.msk [vmem:[#allocation2 + $0x60] sm:$0xff] %vm36_vm0, %v11481_v4  ;;  %51 = vst.msk [vmem:[#allocation2 + $0x68] sm:$0xff] %vm36_vm0, %v11481_v4  ;;  %v69_v15 = vld [vmem:[%s11470_s0 + $0x68] sm:$0xff]  ;;  %v70_v16 = vld [vmem:[%s11470_s0 + $0x70] sm:$0xff] }
   0x8   :  { %52 = vst.msk [vmem:[#allocation2 + $0x70] sm:$0xff] %vm36_vm0, %v11481_v4  ;;  %53 = vst.msk [vmem:[#allocation2 + $0x78] sm:$0xff] %vm36_vm0, %v11481_v4 }
   0x9   :  { %54 = vst.msk [vmem:[#allocation2 + $0x80] sm:$0xff] %vm36_vm0, %v11481_v4  ;;  %72 = vst.msk [vmem:[#allocation2 + $0x2] sm:$0xff] %vm36_vm0, %v56_v0 }
   0xa   :  { %73 = vst.msk [vmem:[#allocation2 + $0xa] sm:$0xff] %vm36_vm0, %v57_v1  ;;  %74 = vst.msk [vmem:[#allocation2 + $0x12] sm:$0xff] %vm36_vm0, %v58_v2 }
   0xb   :  { %75 = vst.msk [vmem:[#allocation2 + $0x1a] sm:$0xff] %vm36_vm0, %v59_v5  ;;  %76 = vst.msk [vmem:[#allocation2 + $0x22] sm:$0xff] %vm36_vm0, %v60_v6 }
   0xc   :  { %77 = vst.msk [vmem:[#allocation2 + $0x2a] sm:$0xff] %vm36_vm0, %v61_v7  ;;  %78 = vst.msk [vmem:[#allocation2 + $0x32] sm:$0xff] %vm36_vm0, %v62_v8 }
   0xd   :  { %46 = vst.msk [vmem:[#allocation2 + $0x40] sm:$0xf] %vm45_vm1, %v11481_v4  ;;  %55 = vst.msk [vmem:[#allocation2 + $0x88] sm:$0xf] %vm45_vm1, %v11481_v4 }
   0xe   :  { %79 = vst.msk [vmem:[#allocation2 + $0x3a] sm:$0xff] %vm36_vm0, %v63_v9  ;;  %80 = vst.msk [vmem:[#allocation2 + $0x4a] sm:$0xff] %vm36_vm0, %v64_v10 }
   0xf   :  { %81 = vst.msk [vmem:[#allocation2 + $0x52] sm:$0xff] %vm36_vm0, %v65_v11  ;;  %82 = vst.msk [vmem:[#allocation2 + $0x5a] sm:$0xff] %vm36_vm0, %v66_v12 }
  0x10   :  { %83 = vst.msk [vmem:[#allocation2 + $0x62] sm:$0xff] %vm36_vm0, %v67_v13  ;;  %84 = vst.msk [vmem:[#allocation2 + $0x6a] sm:$0xff] %vm36_vm0, %v68_v14 }
  0x11   :  { %85 = vst.msk [vmem:[#allocation2 + $0x72] sm:$0xff] %vm36_vm0, %v69_v15 }
  0x12   :  { %15 = vsyncpa [#allocation9], 0  ;;  %86 = vst.msk [vmem:[#allocation2 + $0x7a] sm:$0xff] %vm36_vm0, %v70_v16  ;;  %v207_v17 = vld [vmem:[#allocation2 + $0x1] sm:$0xff]  ;;  %v208_v19 = vld [vmem:[#allocation2 + $0x9] sm:$0xff]  ;;  %vm751_vm2 = vcmask 64512  }
  0x13   :  { %v88_v18 = vld [vmem:[#allocation2] sm:$0xff]  ;;  %227 = vperm.xlu1 %9483, %v207_v17   ;;  %v89_v20 = vld [vmem:[#allocation2 + $0x8] sm:$0xff]  ;;  %v209_v21 = vld [vmem:[#allocation2 + $0x11] sm:$0xff]  ;;  %1012 = vst.msk [vmem:[#allocation3] sm:$0xff] %vm751_vm2, %v11481_v4  ;;  %vm1016_vm3 = vcmask 60416  }
  0x14   :  { %107 = vperm.xlu0 %9482, %v88_v18   ;;  %v90_v22 = vld [vmem:[#allocation2 + $0x10] sm:$0xff]  ;;  %v343_v24 = vld [vmem:[#allocation2 + $0x2] sm:$0xff]  ;;  %v210_v25 = vld [vmem:[#allocation2 + $0x19] sm:$0xff]  ;;  %1013 = vst.msk [vmem:[#allocation3 + $0x8] sm:$0xff] %vm751_vm2, %v11481_v4 }
  0x15   :  { %v344_v23 = vld [vmem:[#allocation2 + $0xa] sm:$0xff]  ;;  %v91_v26 = vld [vmem:[#allocation2 + $0x18] sm:$0xff]  ;;  %v92_v29 = vld [vmem:[#allocation2 + $0x20] sm:$0xff]  ;;  %1014 = vst.msk [vmem:[#allocation3 + $0x10] sm:$0xff] %vm751_vm2, %v11481_v4 }
  0x16   :  { %v479_v27 = vld [vmem:[#allocation2 + $0x3] sm:$0xff]  ;;  %v345_v28 = vld [vmem:[#allocation2 + $0x12] sm:$0xff]  ;;  %v346_v32 = vld [vmem:[#allocation2 + $0x1a] sm:$0xff]  ;;  %1015 = vst.msk [vmem:[#allocation3 + $0x18] sm:$0xff] %vm751_vm2, %v11481_v4 }
  0x17   :  { %232 = vperm.xlu1 %9483, %v208_v19   ;;  %v480_v30 = vld [vmem:[#allocation2 + $0xb] sm:$0xff]  ;;  %v71_v31 = vld [vmem:[%s11470_s0 + $0x78] sm:$0xff]  ;;  %v211_v33 = vld [vmem:[#allocation2 + $0x21] sm:$0xff]  ;;  %1018 = vst.msk [vmem:[#allocation3 + $0x28] sm:$0xff] %vm751_vm2, %v11481_v4 }
  0x18   :  { %112 = vperm.xlu0 %9482, %v89_v20   ;;  %87 = vst.msk [vmem:[#allocation2 + $0x82] sm:$0xff] %vm36_vm0, %v71_v31  ;;  %v615_v34 = vld [vmem:[#allocation2 + $0x4] sm:$0xff]  ;;  %v481_v35 = vld [vmem:[#allocation2 + $0x13] sm:$0xff]  ;;  %v482_v41 = vld [vmem:[#allocation2 + $0x1b] sm:$0xff] }
  0x19   :  { %1019 = vst.msk [vmem:[#allocation3 + $0x30] sm:$0xff] %vm751_vm2, %v11481_v4  ;;  %1020 = vst.msk [vmem:[#allocation3 + $0x38] sm:$0xff] %vm751_vm2, %v11481_v4  ;;  %v93_v36 = vld [vmem:[#allocation2 + $0x28] sm:$0xff]  ;;  %v617_v40 = vld [vmem:[#allocation2 + $0x14] sm:$0xff] }
  0x1a   :  { %1021 = vst.msk [vmem:[#allocation3 + $0x40] sm:$0xff] %vm751_vm2, %v11481_v4  ;;  %v616_v37 = vld [vmem:[#allocation2 + $0xc] sm:$0xff]  ;;  %v347_v38 = vld [vmem:[#allocation2 + $0x22] sm:$0xff]  ;;  %v95_v46 = vld [vmem:[#allocation2 + $0x38] sm:$0xff] }
  0x1b   :  { %237 = vperm.xlu1 %9483, %v209_v21   ;;  %v212_v39 = vld [vmem:[#allocation2 + $0x29] sm:$0xff]  ;;  %v213_v42 = vld [vmem:[#allocation2 + $0x31] sm:$0xff]  ;;  %v618_v47 = vld [vmem:[#allocation2 + $0x1c] sm:$0xff]  ;;  %1017 = vst.msk [vmem:[#allocation3 + $0x20] sm:$0xf] %vm1016_vm3, %v11481_v4 }
  0x1c   :  { %117 = vperm.xlu0 %9482, %v90_v22   ;;  %v94_v43 = vld [vmem:[#allocation2 + $0x30] sm:$0xff]  ;;  %v483_v44 = vld [vmem:[#allocation2 + $0x23] sm:$0xff]  ;;  %v214_v49 = vld [vmem:[#allocation2 + $0x39] sm:$0xff]  ;;  %1022 = vst.msk [vmem:[#allocation3 + $0x48] sm:$0xf] %vm1016_vm3, %v11481_v4 }
  0x1d   :  { %v348_v45 = vld [vmem:[#allocation2 + $0x2a] sm:$0xff]  ;;  %v349_v48 = vld [vmem:[#allocation2 + $0x32] sm:$0xff]  ;;  %v350_v55 = vld [vmem:[#allocation2 + $0x3a] sm:$0xff] }
  0x1e   :  { %v619_v50 = vld [vmem:[#allocation2 + $0x24] sm:$0xff]  ;;  %v485_v54 = vld [vmem:[#allocation2 + $0x33] sm:$0xff]  ;;  %v486_v61 = vld [vmem:[#allocation2 + $0x3b] sm:$0xff] }
  0x1f   :  { %368 = vperm.xlu1 %9483, %v344_v23   ;;  %v484_v51 = vld [vmem:[#allocation2 + $0x2b] sm:$0xff]  ;;  %v621_v60 = vld [vmem:[#allocation2 + $0x34] sm:$0xff]  ;;  %v99_v2 = vld [vmem:[#allocation2 + $0x60] sm:$0xff] }
  0x20   :  { %363 = vperm.xlu0 %9482, %v343_v24   ;;  %v215_v52 = vld [vmem:[#allocation2 + $0x49] sm:$0xff]  ;;  %v216_v59 = vld [vmem:[#allocation2 + $0x51] sm:$0xff]  ;;  %v217_v62 = vld [vmem:[#allocation2 + $0x59] sm:$0xff] }
  0x21   :  { %v96_v53 = vld [vmem:[#allocation2 + $0x48] sm:$0xff]  ;;  %v97_v56 = vld [vmem:[#allocation2 + $0x50] sm:$0xff]  ;;  %v98_v63 = vld [vmem:[#allocation2 + $0x58] sm:$0xff] }
  0x22   :  { %v620_v57 = vld [vmem:[#allocation2 + $0x2c] sm:$0xff]  ;;  %v622_v3 = vld [vmem:[#allocation2 + $0x3c] sm:$0xff]  ;;  %v624_v14 = vld [vmem:[#allocation2 + $0x54] sm:$0xff] }
  0x23   :  { %242 = vperm.xlu1 %9483, %v210_v25   ;;  %v351_v58 = vld [vmem:[#allocation2 + $0x4a] sm:$0xff]  ;;  %v352_v1 = vld [vmem:[#allocation2 + $0x52] sm:$0xff]  ;;  %v353_v5 = vld [vmem:[#allocation2 + $0x5a] sm:$0xff] }
  0x24   :  { %122 = vperm.xlu0 %9482, %v91_v26   ;;  %v487_v0 = vld [vmem:[#allocation2 + $0x4b] sm:$0xff]  ;;  %v218_v6 = vld [vmem:[#allocation2 + $0x61] sm:$0xff]  ;;  %v488_v8 = vld [vmem:[#allocation2 + $0x53] sm:$0xff] }
  0x25   :  { %v623_v7 = vld [vmem:[#allocation2 + $0x4c] sm:$0xff]  ;;  %v489_v11 = vld [vmem:[#allocation2 + $0x5b] sm:$0xff]  ;;  %v490_v20 = vld [vmem:[#allocation2 + $0x63] sm:$0xff] }
  0x26   :  { %v219_v9 = vld [vmem:[#allocation2 + $0x69] sm:$0xff]  ;;  %v220_v16 = vld [vmem:[#allocation2 + $0x71] sm:$0xff]  ;;  %v9687_v17 = vld [vmem:[%s11471_s1 + $0x1] ss:$0 sm:$0xff] }
  0x27   :  { %499 = vperm.xlu1 %9483, %v479_v27   ;;  %v100_v10 = vld [vmem:[#allocation2 + $0x68] sm:$0xff]  ;;  %v101_v13 = vld [vmem:[#allocation2 + $0x70] sm:$0xff]  ;;  %v9692_v18 = vld [vmem:[%s11471_s1] ss:$0 sm:$0xff] }
  0x28   :  { %373 = vperm.xlu0 %9482, %v345_v28   ;;  %v354_v12 = vld [vmem:[#allocation2 + $0x62] sm:$0xff]  ;;  %v355_v15 = vld [vmem:[#allocation2 + $0x6a] sm:$0xff]  ;;  %v221_v25 = vld [vmem:[#allocation2 + $0x79] sm:$0xff] }
  0x29   :  { %v625_v19 = vld [vmem:[#allocation2 + $0x5c] sm:$0xff] }
  0x2a   :  { %v102_v26 = vld [vmem:[#allocation2 + $0x78] sm:$0xff] }
  0x2b   :  { %127 = vperm.xlu1 %9483, %v92_v29  }
  0x2c   :  { %504 = vperm.xlu0 %9482, %v480_v30  }
  0x2f   :  { %378 = vperm.xlu1 %9483, %v346_v32   ;;  %v491_v32 = vld [vmem:[#allocation2 + $0x6b] sm:$0xff] }
  0x30   :  { %247 = vperm.xlu0 %9482, %v211_v33   ;;  %v356_v33 = vld [vmem:[#allocation2 + $0x72] sm:$0xff] }
  0x33   :  { %635 = vperm.xlu1 %9483, %v615_v34  }
  0x34   :  { %509 = vperm.xlu0 %9482, %v481_v35  }
  0x37   :  { %132 = vperm.xlu1 %9483, %v93_v36  }
  0x38   :  { %640 = vperm.xlu0 %9482, %v616_v37  }
  0x3b   :  { %383 = vperm.xlu1 %9483, %v347_v38  }
  0x3c   :  { %252 = vperm.xlu0 %9482, %v212_v39   ;;  %v9703_v39 = vld [vmem:[%s11471_s1 + $0x2] ss:$0 sm:$0xff] }
  0x3f   :  { %645 = vperm.xlu1 %9483, %v617_v40   ;;  %v103_v40 = vld [vmem:[#allocation2 + $0x80] sm:$0xff] }
  0x40   :  { %514 = vperm.xlu0 %9482, %v482_v41   ;;  %v626_v41 = vld [vmem:[#allocation2 + $0x64] sm:$0xff] }
  0x43   :  { %257 = vperm.xlu1 %9483, %v213_v42  }
  0x44   :  { %137 = vperm.xlu0 %9482, %v94_v43  }
  0x47   :  { %519 = vperm.xlu1 %9483, %v483_v44  }
  0x48   :  { %388 = vperm.xlu0 %9482, %v348_v45  }
  0x4b   :  { %142 = vperm.xlu1 %9483, %v95_v46  }
  0x4c   :  { %650 = vperm.xlu0 %9482, %v618_v47   ;;  %v357_v47 = vld [vmem:[#allocation2 + $0x7a] sm:$0xff] }
  0x4f   :  { %393 = vperm.xlu1 %9483, %v349_v48   ;;  %v222_v48 = vld [vmem:[#allocation2 + $0x81] sm:$0xff] }
  0x50   :  { %262 = vperm.xlu0 %9482, %v214_v49  }
  0x53   :  { %655 = vperm.xlu1 %9483, %v619_v50  }
  0x54   :  { %524 = vperm.xlu0 %9482, %v484_v51  }
  0x57   :  { %267 = vperm.xlu1 %9483, %v215_v52  }
  0x58   :  { %147 = vperm.xlu0 %9482, %v96_v53  }
  0x5b   :  { %529 = vperm.xlu1 %9483, %v485_v54  }
  0x5c   :  { %398 = vperm.xlu0 %9482, %v350_v55   ;;  %v9712_v55 = vld [vmem:[%s11471_s1 + $0x3] ss:$0 sm:$0xff] }
  0x5f   :  { %152 = vperm.xlu1 %9483, %v97_v56   ;;  %v627_v56 = vld [vmem:[#allocation2 + $0x6c] sm:$0xff] }
  0x60   :  { %660 = vperm.xlu0 %9482, %v620_v57   ;;  %v492_v57 = vld [vmem:[#allocation2 + $0x73] sm:$0xff] }
  0x63   :  { %403 = vperm.xlu1 %9483, %v351_v58  }
  0x64   :  { %272 = vperm.xlu0 %9482, %v216_v59  }
  0x67   :  { %665 = vperm.xlu1 %9483, %v621_v60  }
  0x68   :  { %534 = vperm.xlu0 %9482, %v486_v61  }
  0x6b   :  { %277 = vperm.xlu1 %9483, %v217_v62  }
  0x6c   :  { %157 = vperm.xlu0 %9482, %v98_v63   ;;  %v493_v63 = vld [vmem:[#allocation2 + $0x7b] sm:$0xff] }
  0x6f   :  { %539 = vperm.xlu1 %9483, %v487_v0   ;;  %v358_v0 = vld [vmem:[#allocation2 + $0x82] sm:$0xff] }
  0x70   :  { %408 = vperm.xlu0 %9482, %v352_v1  }
  0x73   :  { %162 = vperm.xlu1 %9483, %v99_v2  }
  0x74   :  { %670 = vperm.xlu0 %9482, %v622_v3  }
  0x77   :  { %413 = vperm.xlu1 %9483, %v353_v5  }
  0x78   :  { %282 = vperm.xlu0 %9482, %v218_v6  }
  0x7b   :  { %675 = vperm.xlu1 %9483, %v623_v7   ;;  %v494_v7 = vld [vmem:[#allocation2 + $0x83] sm:$0xff] }
  0x7c   :  { %544 = vperm.xlu0 %9482, %v488_v8   ;;  %v628_v8 = vld [vmem:[#allocation2 + $0x74] sm:$0xff] }
  0x7f   :  { %287 = vperm.xlu1 %9483, %v219_v9  }
  0x80   :  { %167 = vperm.xlu0 %9482, %v100_v10  }
  0x83   :  { %549 = vperm.xlu1 %9483, %v489_v11  }
  0x84   :  { %418 = vperm.xlu0 %9482, %v354_v12  }
  0x87   :  { %172 = vperm.xlu1 %9483, %v101_v13  }
  0x88   :  { %680 = vperm.xlu0 %9482, %v624_v14  }
  0x8b   :  { %423 = vperm.xlu1 %9483, %v355_v15   ;;  %v9723_v15 = vld [vmem:[%s11471_s1 + $0x4] ss:$0 sm:$0xff] }
  0x8c   :  { %292 = vperm.xlu0 %9482, %v220_v16   ;;  %v630_v16 = vld [vmem:[#allocation2 + $0x84] sm:$0xff] }
  0x8e   :  { %v228_v21 = vpop.permute.xlu1 %227 }
  0x8f   :  { %v108_v22 = vpop.permute.xlu0 %107  ;;  %v311_v23 = vmul.f32 %v9687_v17, %v228_v21  ;;  %685 = vperm.xlu1 %9483, %v625_v19   ;;  %v629_v19 = vld [vmem:[#allocation2 + $0x7c] sm:$0xff] }
  0x90   :  { %v191_v24 = vmul.f32 %v9692_v18, %v108_v22  ;;  %554 = vperm.xlu0 %9482, %v490_v20  }
  0x92   :  { %v327_v27 = vadd.f32 %v311_v23, %v191_v24  ;;  %v233_v28 = vpop.permute.xlu1 %232 }
  0x93   :  { %v113_v29 = vpop.permute.xlu0 %112  ;;  %v312_v30 = vmul.f32 %v9687_v17, %v233_v28  ;;  %297 = vperm.xlu1 %9483, %v221_v25  }
  0x94   :  { %v192_v31 = vmul.f32 %v9692_v18, %v113_v29  ;;  %177 = vperm.xlu0 %9482, %v102_v26  }
  0x96   :  { %v328_v34 = vadd.f32 %v312_v30, %v192_v31  ;;  %v238_v35 = vpop.permute.xlu1 %237 }
  0x97   :  { %v118_v36 = vpop.permute.xlu0 %117  ;;  %v313_v37 = vmul.f32 %v9687_v17, %v238_v35  ;;  %559 = vperm.xlu1 %9483, %v491_v32  }
  0x98   :  { %v193_v38 = vmul.f32 %v9692_v18, %v118_v36  ;;  %428 = vperm.xlu0 %9482, %v356_v33  }
  0x9a   :  { %v329_v42 = vadd.f32 %v313_v37, %v193_v38  ;;  %v369_v43 = vpop.permute.xlu1 %368 }
  0x9b   :  { %v364_v44 = vpop.permute.xlu0 %363  ;;  %v448_v45 = vmul.f32 %v9703_v39, %v369_v43  ;;  %182 = vperm.xlu1 %9483, %v103_v40  }
  0x9c   :  { %v447_v46 = vmul.f32 %v9703_v39, %v364_v44  ;;  %690 = vperm.xlu0 %9482, %v626_v41  }
  0x9d   :  { %v464_v49 = vadd.f32 %v448_v45, %v328_v34 }
  0x9e   :  { %v463_v50 = vadd.f32 %v447_v46, %v327_v27  ;;  %v243_v51 = vpop.permute.xlu1 %242 }
  0x9f   :  { %v123_v52 = vpop.permute.xlu0 %122  ;;  %v314_v53 = vmul.f32 %v9687_v17, %v243_v51  ;;  %433 = vperm.xlu1 %9483, %v357_v47  }
  0xa0   :  { %v194_v54 = vmul.f32 %v9692_v18, %v123_v52  ;;  %302 = vperm.xlu0 %9482, %v222_v48  }
  0xa2   :  { %v330_v58 = vadd.f32 %v314_v53, %v194_v54  ;;  %v500_v59 = vpop.permute.xlu1 %499 }
  0xa3   :  { %v374_v60 = vpop.permute.xlu0 %373  ;;  %v583_v61 = vmul.f32 %v9712_v55, %v500_v59  ;;  %695 = vperm.xlu1 %9483, %v627_v56  }
  0xa4   :  { %v449_v62 = vmul.f32 %v9703_v39, %v374_v60  ;;  %564 = vperm.xlu0 %9482, %v492_v57  }
  0xa5   :  { %v599_v1 = vadd.f32 %v583_v61, %v463_v50 }
  0xa6   :  { %v465_v2 = vadd.f32 %v449_v62, %v329_v42  ;;  %v128_v3 = vpop.permute.xlu1 %127 }
  0xa7   :  { %v505_v5 = vpop.permute.xlu0 %504  ;;  %569 = vperm.xlu1 %9483, %v493_v63   ;;  %v195_v12 = vmul.f32 %v9692_v18, %v128_v3 }
  0xa8   :  { %v584_v6 = vmul.f32 %v9712_v55, %v505_v5  ;;  %438 = vperm.xlu0 %9482, %v358_v0  }
  0xaa   :  { %v600_v9 = vadd.f32 %v584_v6, %v464_v49  ;;  %v379_v10 = vpop.permute.xlu1 %378 }
  0xab   :  { %v248_v11 = vpop.permute.xlu0 %247  ;;  %v450_v13 = vmul.f32 %v9703_v39, %v379_v10  ;;  %574 = vperm.xlu1 %9483, %v494_v7  }
  0xac   :  { %v315_v14 = vmul.f32 %v9687_v17, %v248_v11  ;;  %700 = vperm.xlu0 %9482, %v628_v8  }
  0xad   :  { %v466_v20 = vadd.f32 %v450_v13, %v330_v58 }
  0xae   :  { %v331_v21 = vadd.f32 %v315_v14, %v195_v12  ;;  %v636_v22 = vpop.permute.xlu1 %635 }
  0xaf   :  { %v510_v23 = vpop.permute.xlu0 %509  ;;  %v719_v24 = vmul.f32 %v9723_v15, %v636_v22  ;;  %710 = vperm.xlu1 %9483, %v630_v16  }
  0xb0   :  { %v585_v25 = vmul.f32 %v9712_v55, %v510_v23  ;;  %705 = vperm.xlu0 %9482, %v629_v19  }
  0xb1   :  { %v9727_v26 = vadd.f32 %v719_v24, %v599_v1 }
  0xb2   :  { %v601_v27 = vadd.f32 %v585_v25, %v465_v2  ;;  %v133_v28 = vpop.permute.xlu1 %132 }
  0xb3   :  { %v641_v29 = vpop.permute.xlu0 %640  ;;  %v196_v34 = vmul.f32 %v9692_v18, %v133_v28 }
  0xb4   :  { %v720_v30 = vmul.f32 %v9723_v15, %v641_v29 }
  0xb6   :  { %v9730_v31 = vadd.f32 %v720_v30, %v600_v9  ;;  %v384_v32 = vpop.permute.xlu1 %383 }
  0xb7   :  { %v253_v33 = vpop.permute.xlu0 %252  ;;  %v451_v35 = vmul.f32 %v9703_v39, %v384_v32 }
  0xb8   :  { %v316_v36 = vmul.f32 %v9687_v17, %v253_v33 }
  0xb9   :  { %v467_v37 = vadd.f32 %v451_v35, %v331_v21  ;;  %v791_v35 = vmul.f32 %v9730_v31, %v9730_v31 }
  0xba   :  { %v332_v38 = vadd.f32 %v316_v36, %v196_v34  ;;  %v646_v40 = vpop.permute.xlu1 %645  ;;  %v790_v36 = vmul.f32 %v9727_v26, %v9727_v26 }
  0xbb   :  { %v515_v41 = vpop.permute.xlu0 %514  ;;  %v721_v42 = vmul.f32 %v9723_v15, %v646_v40 }
  0xbc   :  { %v586_v43 = vmul.f32 %v9712_v55, %v515_v41 }
  0xbd   :  { %v9737_v44 = vadd.f32 %v721_v42, %v601_v27 }
  0xbe   :  { %v602_v45 = vadd.f32 %v586_v43, %v466_v20  ;;  %v258_v46 = vpop.permute.xlu1 %257 }
  0xbf   :  { %v138_v47 = vpop.permute.xlu0 %137  ;;  %v317_v48 = vmul.f32 %v9687_v17, %v258_v46  ;;  %v807_v46 = vsel %vm751_vm2, %v791_v35, 0.0 }
  0xc0   :  { %v197_v49 = vmul.f32 %v9692_v18, %v138_v47  ;;  %v755_v47 = vsel %vm751_vm2, %v9737_v44, 0.0 }
  0xc2   :  { %v333_v50 = vadd.f32 %v317_v48, %v197_v49  ;;  %v520_v51 = vpop.permute.xlu1 %519  ;;  %v806_v49 = vsel %vm751_vm2, %v790_v36, 0.0 }
  0xc3   :  { %v389_v52 = vpop.permute.xlu0 %388  ;;  %v587_v53 = vmul.f32 %v9712_v55, %v520_v51 }
  0xc4   :  { %v452_v54 = vmul.f32 %v9703_v39, %v389_v52  ;;  %v8295_v52 = vld [vmem:[%s11474_s4 + $0x8] sm:$0xff] }
  0xc5   :  { %v603_v56 = vadd.f32 %v587_v53, %v467_v37  ;;  %v792_v37 = vmul.f32 %v9737_v44, %v9737_v44 }
  0xc6   :  { %v468_v57 = vadd.f32 %v452_v54, %v332_v38  ;;  %v143_v58 = vpop.permute.xlu1 %142  ;;  %v753_v38 = vsel %vm751_vm2, %v9730_v31, 0.0 }
  0xc7   :  { %v651_v59 = vpop.permute.xlu0 %650  ;;  %v198_v0 = vmul.f32 %v9692_v18, %v143_v58  ;;  %v809_v51 = vsel %vm751_vm2, %v792_v37, 0.0  ;;  %v808_v58 = vadd.f32 %v807_v46, %v806_v49 }
  0xc8   :  { %v722_v60 = vmul.f32 %v9723_v15, %v651_v59 }
  0xca   :  { %v9744_v61 = vadd.f32 %v722_v60, %v602_v45  ;;  %v394_v62 = vpop.permute.xlu1 %393  ;;  %v752_v45 = vsel %vm751_vm2, %v9727_v26, 0.0 }
  0xcb   :  { %v263_v63 = vpop.permute.xlu0 %262  ;;  %v453_v1 = vmul.f32 %v9703_v39, %v394_v62 }
  0xcc   :  { %v318_v2 = vmul.f32 %v9687_v17, %v263_v63  ;;  %v793_v48 = vmul.f32 %v9744_v61, %v9744_v61  ;;  %v757_v53 = vsel %vm751_vm2, %v9744_v61, 0.0 }
  0xcd   :  { %v469_v3 = vadd.f32 %v453_v1, %v333_v50  ;;  %v754_v50 = vadd.f32 %v753_v38, %v752_v45 }
  0xce   :  { %v334_v5 = vadd.f32 %v318_v2, %v198_v0  ;;  %v656_v6 = vpop.permute.xlu1 %655  ;;  %v811_v0 = vsel %vm751_vm2, %v793_v48, 0.0 }
  0xcf   :  { %v525_v7 = vpop.permute.xlu0 %524  ;;  %v723_v8 = vmul.f32 %v9723_v15, %v656_v6  ;;  %v756_v59 = vadd.f32 %v755_v47, %v754_v50 }
  0xd0   :  { %v588_v9 = vmul.f32 %v9712_v55, %v525_v7 }
  0xd1   :  { %v9751_v10 = vadd.f32 %v723_v8, %v603_v56  ;;  %v758_v6 = vadd.f32 %v757_v53, %v756_v59 }
  0xd2   :  { %v604_v11 = vadd.f32 %v588_v9, %v468_v57  ;;  %v268_v12 = vpop.permute.xlu1 %267  ;;  %v9797_v57 = vand.u32 4294901760, %v8295_v52 }
  0xd3   :  { %v148_v13 = vpop.permute.xlu0 %147  ;;  %v319_v14 = vmul.f32 %v9687_v17, %v268_v12  ;;  %v794_v54 = vmul.f32 %v9751_v10, %v9751_v10  ;;  %v759_v1 = vsel %vm751_vm2, %v9751_v10, 0.0 }
  0xd4   :  { %v199_v16 = vmul.f32 %v9692_v18, %v148_v13  ;;  %8759 = vmatprep.subr.mxu0 %v9797_v57  ;;  %v760_v13 = vadd.f32 %v759_v1, %v758_v6 }
  0xd5   :  { %8760 = vmatpush3.msra.mxu0 %v9797_v57  ;;  %v813_v7 = vsel %vm751_vm2, %v794_v54, 0.0 }
  0xd6   :  { %v9755_v19 = vadd.f32 %v319_v14, %v199_v16  ;;  %v530_v20 = vpop.permute.xlu1 %529 }
  0xd7   :  { %v399_v21 = vpop.permute.xlu0 %398  ;;  %v589_v22 = vmul.f32 %v9712_v55, %v530_v20 }
  0xd8   :  { %v454_v23 = vmul.f32 %v9703_v39, %v399_v21 }
  0xd9   :  { %v605_v24 = vadd.f32 %v589_v22, %v469_v3  ;;  %v9808_v3 = vsub.f32 %v8295_v52, %v9797_v57 }
  0xda   :  { %v470_v25 = vadd.f32 %v454_v23, %v334_v5  ;;  %v9759_v27 = vpop.permute.xlu1 %152  ;;  %v810_v5 = vadd.f32 %v809_v51, %v808_v58 }
  0xdb   :  { %v661_v28 = vpop.permute.xlu0 %660  ;;  %8787 = vmatprep.subr.mxu0 %v9808_v3 }
  0xdc   :  { %v724_v32 = vmul.f32 %v9723_v15, %v661_v28  ;;  %v812_v12 = vadd.f32 %v811_v0, %v810_v5 }
  0xde   :  { %v404_v29 = vpop.permute.xlu1 %403  ;;  %v9773_v41 = vadd.f32 %v724_v32, %v604_v11  ;;  %v9818_v11 = vand.u32 4294901760, %v9808_v3  ;;  %v814_v28 = vadd.f32 %v813_v7, %v812_v12 }
  0xdf   :  { %v9761_v30 = vpop.permute.xlu0 %272 }
  0xe0   :  { %v795_v60 = vmul.f32 %v9773_v41, %v9773_v41  ;;  %v761_v8 = vsel %vm751_vm2, %v9773_v41, 0.0 }
  0xe1   :  { %v762_v32 = vadd.f32 %v761_v8, %v760_v13 }
  0xe2   :  { %v666_v33 = vpop.permute.xlu1 %665  ;;  %v815_v14 = vsel %vm751_vm2, %v795_v60, 0.0 }
  0xe3   :  { %v535_v34 = vpop.permute.xlu0 %534  ;;  %v725_v40 = vmul.f32 %v9723_v15, %v666_v33  ;;  %v455_v33 = vmul.f32 %v9703_v39, %v404_v29  ;;  %v816_v37 = vadd.f32 %v815_v14, %v814_v28 }
  0xe4   :  { %v590_v2 = vmul.f32 %v9712_v55, %v535_v34 }
  0xe5   :  { %v9795_v56 = vadd.f32 %v725_v40, %v605_v24  ;;  %v1254_v24 = vsub.f32 %v9808_v3, %v9818_v11  ;;  %v471_v49 = vadd.f32 %v455_v33, %v9755_v19 }
  0xe6   :  { %v9775_v42 = vpop.permute.xlu1 %277  ;;  %v606_v22 = vadd.f32 %v590_v2, %v470_v25 }
  0xe7   :  { %v9777_v43 = vpop.permute.xlu0 %157  ;;  %v796_v9 = vmul.f32 %v9795_v56, %v9795_v56  ;;  %v763_v21 = vsel %vm751_vm2, %v9795_v56, 0.0  ;;  %v1255_v36 = vand.u32 4294901760, %v1254_v24  ;;  %v200_v24 = vmul.f32 %v9692_v18, %v9759_v27 }
  0xe8   :  { %v764_v38 = vadd.f32 %v763_v21, %v762_v32 }
  0xe9   :  { %v817_v34 = vsel %vm751_vm2, %v796_v9, 0.0  ;;  %8773 = vmatprep.subr.mxu1 %v1255_v36 }
  0xea   :  { %v540_v62 = vpop.permute.xlu1 %539  ;;  %v818_v29 = vadd.f32 %v817_v34, %v816_v37  ;;  %8774 = vmatpush3.msra.mxu1 %v1255_v36  ;;  %v321_v36 = vmul.f32 %v9687_v17, %v9775_v42  ;;  %v201_v37 = vmul.f32 %v9692_v18, %v9777_v43 }
  0xeb   :  { %v9801_v63 = vpop.permute.xlu0 %408  ;;  %v591_v25 = vmul.f32 %v9712_v55, %v540_v62  ;;  %8801 = vmatprep.subr.mxu1 %v9797_v57 }
  0xec   :  { %v456_v28 = vmul.f32 %v9703_v39, %v9801_v63 }
  0xed   :  { %v607_v54 = vadd.f32 %v591_v25, %v471_v49 }
  0xee   :  { %v9822_v16 = vpop.permute.xlu1 %162 }
  0xef   :  { %v671_v20 = vpop.permute.xlu0 %670  ;;  %v202_v42 = vmul.f32 %v9692_v18, %v9822_v16 }
  0xf0   :  { %v726_v23 = vmul.f32 %v9723_v15, %v671_v20 }
  0xf2   :  { %v9831_v35 = vadd.f32 %v726_v23, %v606_v22  ;;  %v414_v40 = vpop.permute.xlu1 %413  ;;  %v320_v23 = vmul.f32 %v9687_v17, %v9761_v30 }
  0xf3   :  { %v283_v45 = vpop.permute.xlu0 %282  ;;  %v457_v30 = vmul.f32 %v9703_v39, %v414_v40 }
  0xf4   :  { %v765_v46 = vsel %vm751_vm2, %v9831_v35, 0.0  ;;  %v797_v47 = vmul.f32 %v9831_v35, %v9831_v35  ;;  %v336_v34 = vadd.f32 %v320_v23, %v200_v24  ;;  %v322_v63 = vmul.f32 %v9687_v17, %v283_v45 }
  0xf5   :  { %v766_v48 = vadd.f32 %v765_v46, %v764_v38 }
  0xf6   :  { %v819_v50 = vsel %vm751_vm2, %v797_v47, 0.0  ;;  %v676_v52 = vpop.permute.xlu1 %675  ;;  %v472_v25 = vadd.f32 %v456_v28, %v336_v34 }
  0xf7   :  { %v820_v51 = vadd.f32 %v819_v50, %v818_v29  ;;  %v545_v53 = vpop.permute.xlu0 %544  ;;  %v727_v58 = vmul.f32 %v9723_v15, %v676_v52  ;;  %v337_v29 = vadd.f32 %v321_v36, %v201_v37 }
  0xf8   :  { %v592_v38 = vmul.f32 %v9712_v55, %v545_v53 }
  0xf9   :  { %v9844_v59 = vadd.f32 %v727_v58, %v607_v54 }
  0xfa   :  { %v288_v60 = vpop.permute.xlu1 %287 }
  0xfb   :  { %v168_v62 = vpop.permute.xlu0 %167  ;;  %v767_v0 = vsel %vm751_vm2, %v9844_v59, 0.0  ;;  %v798_v19 = vmul.f32 %v9844_v59, %v9844_v59  ;;  %v323_v43 = vmul.f32 %v9687_v17, %v288_v60 }
  0xfc   :  { %v9850_v1 = vadd.f32 %v767_v0, %v766_v48  ;;  %v608_v48 = vadd.f32 %v592_v38, %v472_v25  ;;  %v203_v50 = vmul.f32 %v9692_v18, %v168_v62  ;;  %v338_v0 = vadd.f32 %v322_v63, %v202_v42 }
  0xfd   :  { %v821_v2 = vsel %vm751_vm2, %v798_v19, 0.0 }
  0xfe   :  { %v9853_v5 = vadd.f32 %v821_v2, %v820_v51  ;;  %v550_v6 = vpop.permute.xlu1 %549  ;;  %v473_v51 = vadd.f32 %v457_v30, %v337_v29  ;;  %v339_v16 = vadd.f32 %v323_v43, %v203_v50 }
  0xff   :  { %v419_v7 = vpop.permute.xlu0 %418  ;;  %v593_v49 = vmul.f32 %v9712_v55, %v550_v6 }
 0x100   :  { %v458_v40 = vmul.f32 %v9703_v39, %v419_v7 }
 0x101   :  { %v609_v19 = vadd.f32 %v593_v49, %v473_v51 }
 0x102   :  { %v173_v8 = vpop.permute.xlu1 %172  ;;  %v474_v6 = vadd.f32 %v458_v40, %v338_v0 }
 0x103   :  { %v681_v9 = vpop.permute.xlu0 %680 }
 0x104   :  { %v728_v46 = vmul.f32 %v9723_v15, %v681_v9 }
 0x106   :  { %v424_v12 = vpop.permute.xlu1 %423  ;;  %v9875_v52 = vadd.f32 %v728_v46, %v608_v48 }
 0x107   :  { %v293_v13 = vpop.permute.xlu0 %292  ;;  %v459_v54 = vmul.f32 %v9703_v39, %v424_v12 }
 0x108   :  { %v799_v62 = vmul.f32 %v9875_v52, %v9875_v52  ;;  %v324_v24 = vmul.f32 %v9687_v17, %v293_v13 }
 0x10a   :  { %v686_v14 = vpop.permute.xlu1 %685  ;;  %v823_v37 = vsel %vm751_vm2, %v799_v62, 0.0 }
 0x10b   :  { %v555_v20 = vpop.permute.xlu0 %554  ;;  %v729_v53 = vmul.f32 %v9723_v15, %v686_v14  ;;  %v475_v14 = vadd.f32 %v459_v54, %v339_v16  ;;  %v824_v43 = vadd.f32 %v823_v37, %v9853_v5 }
 0x10c   :  { %v594_v2 = vmul.f32 %v9712_v55, %v555_v20  ;;  %v204_v20 = vmul.f32 %v9692_v18, %v173_v8 }
 0x10d   :  { %v9883_v7 = vadd.f32 %v729_v53, %v609_v19 }
 0x10e   :  { %v298_v21 = vpop.permute.xlu1 %297  ;;  %v610_v28 = vadd.f32 %v594_v2, %v474_v6  ;;  %v340_v49 = vadd.f32 %v324_v24, %v204_v20 }
 0x10f   :  { %v178_v22 = vpop.permute.xlu0 %177  ;;  %v800_v38 = vmul.f32 %v9883_v7, %v9883_v7  ;;  %v325_v13 = vmul.f32 %v9687_v17, %v298_v21 }
 0x110   :  { %v205_v46 = vmul.f32 %v9692_v18, %v178_v22 }
 0x111   :  { %v825_v22 = vsel %vm751_vm2, %v800_v38, 0.0 }
 0x112   :  { %v560_v32 = vpop.permute.xlu1 %559  ;;  %v341_v40 = vadd.f32 %v325_v13, %v205_v46 }
 0x113   :  { %v429_v33 = vpop.permute.xlu0 %428  ;;  %v595_v60 = vmul.f32 %v9712_v55, %v560_v32  ;;  %v769_v32 = vsel %vm751_vm2, %v9875_v52, 0.0 }
 0x114   :  { %v460_v25 = vmul.f32 %v9703_v39, %v429_v33  ;;  %v770_v48 = vadd.f32 %v769_v32, %v9850_v1 }
 0x115   :  { %v611_v36 = vadd.f32 %v595_v60, %v475_v14  ;;  %v826_v60 = vadd.f32 %v825_v22, %v824_v43 }
 0x116   :  { %v183_v27 = vpop.permute.xlu1 %182  ;;  %v476_v51 = vadd.f32 %v460_v25, %v340_v49 }
 0x117   :  { %v691_v47 = vpop.permute.xlu0 %690  ;;  %v206_v33 = vmul.f32 %v9692_v18, %v183_v27 }
 0x118   :  { %v730_v9 = vmul.f32 %v9723_v15, %v691_v47 }
 0x11a   :  { %v434_v45 = vpop.permute.xlu1 %433  ;;  %v9895_v30 = vadd.f32 %v730_v9, %v610_v28 }
 0x11b   :  { %v303_v58 = vpop.permute.xlu0 %302  ;;  %v461_v50 = vmul.f32 %v9703_v39, %v434_v45 }
 0x11c   :  { %v326_v47 = vmul.f32 %v9687_v17, %v303_v58  ;;  %v771_v17 = vsel %vm751_vm2, %v9883_v7, 0.0  ;;  %v801_v1 = vmul.f32 %v9895_v30, %v9895_v30 }
 0x11d   :  { %v772_v19 = vadd.f32 %v771_v17, %v770_v48  ;;  %v477_v2 = vadd.f32 %v461_v50, %v341_v40 }
 0x11e   :  { %v696_v23 = vpop.permute.xlu1 %695  ;;  %v342_v53 = vadd.f32 %v326_v47, %v206_v33  ;;  %v827_v6 = vsel %vm751_vm2, %v801_v1, 0.0 }
 0x11f   :  { %v565_v12 = vpop.permute.xlu0 %564  ;;  %v731_v34 = vmul.f32 %v9723_v15, %v696_v23  ;;  %v828_v37 = vadd.f32 %v827_v6, %v826_v60 }
 0x120   :  { %v596_v42 = vmul.f32 %v9712_v55, %v565_v12 }
 0x121   :  { %v9900_v8 = vadd.f32 %v731_v34, %v611_v36 }
 0x122   :  { %v570_v29 = vpop.permute.xlu1 %569  ;;  %v612_v45 = vadd.f32 %v596_v42, %v476_v51 }
 0x123   :  { %v439_v63 = vpop.permute.xlu0 %438  ;;  %v802_v5 = vmul.f32 %v9900_v8, %v9900_v8  ;;  %v597_v18 = vmul.f32 %v9712_v55, %v570_v29  ;;  %v775_v62 = vsel %vm751_vm2, %v9900_v8, 0.0 }
 0x124   :  { %v462_v21 = vmul.f32 %v9703_v39, %v439_v63  ;;  %v773_v39 = vsel %vm751_vm2, %v9895_v30, 0.0 }
 0x125   :  { %v774_v14 = vadd.f32 %v773_v39, %v772_v19  ;;  %v829_v23 = vsel %vm751_vm2, %v802_v5, 0.0  ;;  %v613_v12 = vadd.f32 %v597_v18, %v477_v2 }
 0x126   :  { %v575_v27 = vpop.permute.xlu1 %574  ;;  %v478_v16 = vadd.f32 %v462_v21, %v342_v53  ;;  %v830_v47 = vadd.f32 %v829_v23, %v828_v37 }
 0x127   :  { %v701_v54 = vpop.permute.xlu0 %700  ;;  %v598_v58 = vmul.f32 %v9712_v55, %v575_v27  ;;  %v776_v38 = vadd.f32 %v775_v62, %v774_v14 }
 0x128   :  { %v732_v0 = vmul.f32 %v9723_v15, %v701_v54 }
 0x129   :  { %v614_v24 = vadd.f32 %v598_v58, %v478_v16 }
 0x12a   :  { %v9923_v9 = vadd.f32 %v732_v0, %v612_v45  ;;  %v711_v28 = vpop.permute.xlu1 %710 }
 0x12b   :  { %v706_v55 = vpop.permute.xlu0 %705  ;;  %v734_v32 = vmul.f32 %v9723_v15, %v711_v28 }
 0x12c   :  { %v777_v34 = vsel %vm751_vm2, %v9923_v9, 0.0  ;;  %v803_v20 = vmul.f32 %v9923_v9, %v9923_v9  ;;  %v733_v36 = vmul.f32 %v9723_v15, %v706_v55  ;;  %v864_v55 = vld [vmem:[%s11472_s2] sm:$0x1] }
 0x12d   :  { %v750_v13 = vadd.f32 %v734_v32, %v614_v24  ;;  %v778_v29 = vadd.f32 %v777_v34, %v776_v38  ;;  %v866_v24 = vlaneseq }
 0x12e   :  { %v831_v25 = vsel %vm751_vm2, %v803_v20, 0.0  ;;  %v749_v46 = vadd.f32 %v733_v36, %v613_v12 }
 0x12f   :  { %v805_v63 = vmul.f32 %v750_v13, %v750_v13  ;;  %v832_v42 = vadd.f32 %v831_v25, %v830_v47  ;;  %v781_v33 = vsel %vm751_vm2, %v750_v13, 0.0  ;;  %v867_v28 = vshrl.u32 %v866_v24, 7 }
 0x130   :  { %v779_v48 = vsel %vm751_vm2, %v749_v46, 0.0  ;;  %v804_v49 = vmul.f32 %v749_v46, %v749_v46 }
 0x131   :  { %v780_v43 = vadd.f32 %v779_v48, %v778_v29  ;;  %v835_v17 = vsel %vm751_vm2, %v805_v63, 0.0  ;;  %v9952_v34 = vsub.s32 0, %v867_v28 }
 0x132   :  { %v833_v50 = vsel %vm751_vm2, %v804_v49, 0.0 }
 0x133   :  { %v782_v21 = vadd.f32 %v781_v33, %v780_v43  ;;  %v834_v15 = vadd.f32 %v833_v50, %v832_v42  ;;  %11488 = vst [vmem:[#allocation11_spill] sm:$0xff] %v9952_v34 }
 0x135   :  { %v783_v22 = vrot.slane %v782_v21, 4  ;;  %v836_v51 = vadd.f32 %v835_v17, %v834_v15 }
 0x137   :  { %v784_v1 = vadd.f32 %v783_v22, %v782_v21  ;;  %v837_v40 = vrot.slane %v836_v51, 4 }
 0x139   :  { %v785_v53 = vrot.slane %v784_v1, 2  ;;  %v838_v5 = vadd.f32 %v837_v40, %v836_v51 }
 0x13b   :  { %v786_v18 = vadd.f32 %v785_v53, %v784_v1  ;;  %v839_v27 = vrot.slane %v838_v5, 2 }
 0x13d   :  { %v787_v54 = vrot.slane %v786_v18, 1  ;;  %v840_v39 = vadd.f32 %v839_v27, %v838_v5 }
 0x13f   :  { %v788_v45 = vadd.f32 %v787_v54, %v786_v18  ;;  %v841_v58 = vrot.slane %v840_v39, 1 }
 0x141   :  { %v9937_v0 = vmul.f32 0.0078125, %v788_v45  ;;  %v842_v19 = vadd.f32 %v841_v58, %v840_v39 }
 0x143   :  { %v843_v2 = vmul.f32 0.0078125, %v842_v19  ;;  %v844_v16 = vmul.f32 %v9937_v0, %v9937_v0  ;;  %v853_v6 = vsub.f32 %v9773_v41, %v9937_v0  ;;  %v855_v62 = vsub.f32 %v9831_v35, %v9937_v0 }
 0x144   :  { %v856_v14 = vsub.f32 %v9844_v59, %v9937_v0  ;;  %v857_v23 = vsub.f32 %v9875_v52, %v9937_v0  ;;  %v862_v20 = vsub.f32 %v749_v46, %v9937_v0  ;;  %v863_v36 = vsub.f32 %v750_v13, %v9937_v0 }
 0x145   :  { %v845_v60 = vsub.f32 %v843_v2, %v844_v16  ;;  %v848_v37 = vsub.f32 %v9727_v26, %v9937_v0  ;;  %v849_v38 = vsub.f32 %v9730_v31, %v9937_v0  ;;  %v850_v25 = vsub.f32 %v9737_v44, %v9937_v0  ;;  %v9974_v26 = vld [vmem:[%s11473_s3] ss:$0 sm:$0xff] }
 0x146   :  { %v851_v29 = vsub.f32 %v9744_v61, %v9937_v0  ;;  %v852_v46 = vsub.f32 %v9751_v10, %v9937_v0  ;;  %v854_v13 = vsub.f32 %v9795_v56, %v9937_v0  ;;  %v858_v31 = vsub.f32 %v9883_v7, %v9937_v0 }
 0x147   :  { %v846_v12 = vadd.f32 1e-05, %v845_v60  ;;  %v859_v44 = vsub.f32 %v9895_v30, %v9937_v0  ;;  %v860_v61 = vsub.f32 %v9900_v8, %v9937_v0  ;;  %v861_v10 = vsub.f32 %v9923_v9, %v9937_v0 }
 0x149   :  { %9484 = vrsqrt.f32 %v846_v12 }
 0x156   :  { %v9485_v41 = vpop.eup %9484 }
 0x157   :  { %v865_v32 = vmul.f32 %v9485_v41, %v864_v55 }
 0x159   :  { %v9963_v47 = vrot.slane %v865_v32, %v9952_v34 }
 0x15b   :  { %v884_v63 = vmul.f32 %v9963_v47, %v862_v20  ;;  %v885_v56 = vmul.f32 %v9963_v47, %v863_v36  ;;  %v870_v48 = vmul.f32 %v9963_v47, %v848_v37  ;;  %v871_v49 = vmul.f32 %v9963_v47, %v849_v38 }
 0x15c   :  { %v872_v42 = vmul.f32 %v9963_v47, %v850_v25  ;;  %v873_v7 = vmul.f32 %v9963_v47, %v851_v29  ;;  %v874_v30 = vmul.f32 %v9963_v47, %v852_v46  ;;  %v875_v43 = vmul.f32 %v9963_v47, %v853_v6 }
 0x15d   :  { %v907_v8 = vadd.f32 %v9974_v26, %v884_v63  ;;  %v908_v9 = vadd.f32 %v9974_v26, %v885_v56  ;;  %v893_v33 = vadd.f32 %v9974_v26, %v870_v48  ;;  %v894_v50 = vadd.f32 %v9974_v26, %v871_v49 }
 0x15e   :  { %v895_v21 = vadd.f32 %v9974_v26, %v872_v42  ;;  %v896_v15 = vadd.f32 %v9974_v26, %v873_v7  ;;  %v897_v17 = vadd.f32 %v9974_v26, %v874_v30  ;;  %v898_v22 = vadd.f32 %v9974_v26, %v875_v43 }
 0x15f   :  { %vm923_vm4 = vcmp.ge.f32.partialorder %v907_v8, 0.0  ;;  %vm924_vm5 = vcmp.ge.f32.partialorder %v908_v9, 0.0  ;;  %v939_v51 = vmul.f32 0.01, %v907_v8  ;;  %v940_v1 = vmul.f32 0.01, %v908_v9 }
 0x160   :  { %vm909_vm6 = vcmp.ge.f32.partialorder %v893_v33, 0.0  ;;  %vm910_vm7 = vcmp.ge.f32.partialorder %v894_v50, 0.0  ;;  %v925_v40 = vmul.f32 0.01, %v893_v33  ;;  %v926_v53 = vmul.f32 0.01, %v894_v50 }
 0x161   :  { %v955_v5 = vsel %vm923_vm4, %v907_v8, %v939_v51  ;;  %v956_v18 = vsel %vm924_vm5, %v908_v9, %v940_v1  ;;  %vm911_vm8 = vcmp.ge.f32.partialorder %v895_v21, 0.0  ;;  %vm912_vm9 = vcmp.ge.f32.partialorder %v896_v15, 0.0 }
 0x162   :  { %971 = vst.msk [vmem:[#allocation5 + $0x70] sm:$0xff] %vm751_vm2, %v955_v5  ;;  %972 = vst.msk [vmem:[#allocation5 + $0x78] sm:$0xff] %vm751_vm2, %v956_v18  ;;  %v941_v27 = vsel %vm909_vm6, %v893_v33, %v925_v40  ;;  %v942_v54 = vsel %vm910_vm7, %v894_v50, %v926_v53  ;;  %v927_v39 = vmul.f32 0.01, %v895_v21  ;;  %v928_v45 = vmul.f32 0.01, %v896_v15 }
 0x163   :  { %957 = vst.msk [vmem:[#allocation5] sm:$0xff] %vm751_vm2, %v941_v27  ;;  %958 = vst.msk [vmem:[#allocation5 + $0x8] sm:$0xff] %vm751_vm2, %v942_v54  ;;  %vm913_vm10 = vcmp.ge.f32.partialorder %v897_v17, 0.0  ;;  %vm914_vm11 = vcmp.ge.f32.partialorder %v898_v22, 0.0  ;;  %v929_v58 = vmul.f32 0.01, %v897_v17  ;;  %v876_v60 = vmul.f32 %v9963_v47, %v854_v13 }
 0x164   :  { %v930_v19 = vmul.f32 0.01, %v898_v22  ;;  %v943_v2 = vsel %vm911_vm8, %v895_v21, %v927_v39  ;;  %v944_v16 = vsel %vm912_vm9, %v896_v15, %v928_v45  ;;  %v877_v6 = vmul.f32 %v9963_v47, %v855_v62 }
 0x165   :  { %959 = vst.msk [vmem:[#allocation5 + $0x10] sm:$0xff] %vm751_vm2, %v943_v2  ;;  %960 = vst.msk [vmem:[#allocation5 + $0x18] sm:$0xff] %vm751_vm2, %v944_v16  ;;  %v945_v12 = vsel %vm913_vm10, %v897_v17, %v929_v58  ;;  %v878_v28 = vmul.f32 %v9963_v47, %v856_v14  ;;  %v879_v55 = vmul.f32 %v9963_v47, %v857_v23  ;;  %vm5106_vm5 = vcmask 125952  }
 0x166   :  { %v946_v24 = vsel %vm914_vm11, %v898_v22, %v930_v19  ;;  %961 = vst.msk [vmem:[#allocation5 + $0x20] sm:$0xff] %vm751_vm2, %v945_v12  ;;  %v899_v35 = vadd.f32 %v9974_v26, %v876_v60  ;;  %v900_v62 = vadd.f32 %v9974_v26, %v877_v6  ;;  %v880_v41 = vmul.f32 %v9963_v47, %v858_v31  ;;  %v1039_v19 = vld [vmem:[%s11474_s4] sm:$0xff] }
 0x167   :  { %962 = vst.msk [vmem:[#allocation5 + $0x28] sm:$0xff] %vm751_vm2, %v946_v24  ;;  %v881_v20 = vmul.f32 %v9963_v47, %v859_v44  ;;  %v901_v59 = vadd.f32 %v9974_v26, %v878_v28  ;;  %v902_v14 = vadd.f32 %v9974_v26, %v879_v55  ;;  %v882_v52 = vmul.f32 %v9963_v47, %v860_v61 }
 0x168   :  { %v883_v0 = vmul.f32 %v9963_v47, %v861_v10  ;;  %vm915_vm12 = vcmp.ge.f32.partialorder %v899_v35, 0.0  ;;  %vm916_vm13 = vcmp.ge.f32.partialorder %v900_v62, 0.0  ;;  %v931_v23 = vmul.f32 0.01, %v899_v35 }
 0x169   :  { %v932_v32 = vmul.f32 0.01, %v900_v62  ;;  %v987_v36 = vld [vmem:[#allocation5 + $0x70] ss:$2 sm:$0xff]  ;;  %v1003_v37 = vld [vmem:[#allocation5 + $0x71] ss:$2 sm:$0xff]  ;;  %v903_v38 = vadd.f32 %v9974_v26, %v880_v41  ;;  %v904_v25 = vadd.f32 %v9974_v26, %v881_v20  ;;  %v905_v61 = vadd.f32 %v9974_v26, %v882_v52 }
 0x16a   :  { %vm917_vm14 = vcmp.ge.f32.partialorder %v901_v59, 0.0  ;;  %vm918_vm15 = vcmp.ge.f32.partialorder %v902_v14, 0.0  ;;  %v973_v29 = vld [vmem:[#allocation5] ss:$2 sm:$0xff]  ;;  %v989_v46 = vld [vmem:[#allocation5 + $0x1] ss:$2 sm:$0xff]  ;;  %v947_v13 = vsel %vm915_vm12, %v899_v35, %v931_v23  ;;  %v906_v42 = vadd.f32 %v9974_v26, %v883_v0 }
 0x16b   :  { %v948_v31 = vsel %vm916_vm13, %v900_v62, %v932_v32  ;;  %v933_v44 = vmul.f32 0.01, %v901_v59  ;;  %v1004_v47 = vmax.f32 %v973_v29, %v989_v46  ;;  %963 = vst.msk [vmem:[#allocation5 + $0x30] sm:$0xff] %vm751_vm2, %v947_v13  ;;  %v934_v10 = vmul.f32 0.01, %v902_v14 }
 0x16c   :  { %964 = vst.msk [vmem:[#allocation5 + $0x38] sm:$0xff] %vm751_vm2, %v948_v31  ;;  %vm919_vm0 = vcmp.ge.f32.partialorder %v903_v38, 0.0  ;;  %vm920_vm1 = vcmp.ge.f32.partialorder %v904_v25, 0.0  ;;  %v975_v63 = vld [vmem:[#allocation5 + $0x10] ss:$2 sm:$0xff]  ;;  %v1011_v7 = vmax.f32 %v987_v36, %v1003_v37  ;;  %vm921_vm3 = vcmp.ge.f32.partialorder %v905_v61, 0.0 }
 0x16d   :  { %v991_v56 = vld [vmem:[#allocation5 + $0x11] ss:$2 sm:$0xff]  ;;  %v949_v48 = vsel %vm917_vm14, %v901_v59, %v933_v44  ;;  %v935_v49 = vmul.f32 0.01, %v903_v38  ;;  %1023 = vst.msk [vmem:[#allocation3 + $0x2] sm:$0xff] %vm751_vm2, %v1004_v47  ;;  %v950_v9 = vsel %vm918_vm15, %v902_v14, %v934_v10  ;;  %vm922_vm4 = vcmp.ge.f32.partialorder %v906_v42, 0.0 }
 0x16e   :  { %v1005_v30 = vmax.f32 %v975_v63, %v991_v56  ;;  %v977_v43 = vld [vmem:[#allocation5 + $0x20] ss:$2 sm:$0xff]  ;;  %v993_v8 = vld [vmem:[#allocation5 + $0x21] ss:$2 sm:$0xff]  ;;  %965 = vst.msk [vmem:[#allocation5 + $0x40] sm:$0xff] %vm751_vm2, %v949_v48  ;;  %966 = vst.msk [vmem:[#allocation5 + $0x48] sm:$0xff] %vm751_vm2, %v950_v9 }
 0x16f   :  { %v936_v33 = vmul.f32 0.01, %v904_v25  ;;  %v1006_v50 = vmax.f32 %v977_v43, %v993_v8  ;;  %v951_v21 = vsel %vm919_vm0, %v903_v38, %v935_v49  ;;  %1030 = vst.msk [vmem:[#allocation3 + $0x42] sm:$0xff] %vm751_vm2, %v1011_v7  ;;  %v937_v15 = vmul.f32 0.01, %v905_v61 }
 0x170   :  { %1024 = vst.msk [vmem:[#allocation3 + $0xa] sm:$0xff] %vm751_vm2, %v1005_v30  ;;  %967 = vst.msk [vmem:[#allocation5 + $0x50] sm:$0xff] %vm751_vm2, %v951_v21  ;;  %v938_v17 = vmul.f32 0.01, %v906_v42  ;;  %v10073_v52 = vand.u32 4294901760, %v1039_v19  ;;  %vm8161_vm14 = vcmask 261120  }
 0x171   :  { %v952_v26 = vsel %vm920_vm1, %v904_v25, %v936_v33  ;;  %1025 = vst.msk [vmem:[#allocation3 + $0x12] sm:$0xff] %vm751_vm2, %v1006_v50  ;;  %v953_v22 = vsel %vm921_vm3, %v905_v61, %v937_v15 }
 0x172   :  { %968 = vst.msk [vmem:[#allocation5 + $0x58] sm:$0xff] %vm751_vm2, %v952_v26  ;;  %v954_v51 = vsel %vm922_vm4, %v906_v42, %v938_v17  ;;  %969 = vst.msk [vmem:[#allocation5 + $0x60] sm:$0xff] %vm751_vm2, %v953_v22  ;;  %v10090_v13 = vsub.f32 %v1039_v19, %v10073_v52  ;;  %vm8266_vm4 = vcmask 1041409  }
 0x173   :  { %v979_v1 = vld [vmem:[#allocation5 + $0x30] ss:$2 sm:$0xff]  ;;  %v995_v40 = vld [vmem:[#allocation5 + $0x31] ss:$2 sm:$0xff]  ;;  %970 = vst.msk [vmem:[#allocation5 + $0x68] sm:$0xff] %vm751_vm2, %v954_v51 }
 0x174   :  { %v1007_v53 = vmax.f32 %v979_v1, %v995_v40  ;;  %v1040_v5 = vld [vmem:[#allocation3 + $0x1] sm:$0xff]  ;;  %v10100_v7 = vand.u32 4294901760, %v10090_v13 }
 0x175   :  { %v1051_v18 = vsel %vm751_vm2, %v1040_v5, 0  ;;  %v981_v27 = vld [vmem:[#allocation5 + $0x40] ss:$2 sm:$0xff]  ;;  %v997_v54 = vld [vmem:[#allocation5 + $0x41] ss:$2 sm:$0xff] }
 0x176   :  { %1026 = vst.msk [vmem:[#allocation3 + $0x1a] sm:$0xff] %vm751_vm2, %v1007_v53  ;;  %v10051_v39 = vand.u32 4294901760, %v1051_v18  ;;  %v1008_v58 = vmax.f32 %v981_v27, %v997_v54  ;;  %v2025_v51 = vsub.f32 %v10090_v13, %v10100_v7 }
 0x177   :  { %v1041_v45 = vld [vmem:[#allocation3 + $0x9] sm:$0xff] }
 0x178   :  { %v1054_v2 = vsel %vm751_vm2, %v1041_v45, 0  ;;  %v1042_v16 = vld [vmem:[#allocation3 + $0x11] sm:$0xff]  ;;  %8775 = vmatprep.mubr.f32.mxu1 %v10051_v39  ;;  %1027 = vst.msk [vmem:[#allocation3 + $0x2a] sm:$0xff] %vm751_vm2, %v1008_v58  ;;  %v10063_v28 = vsub.f32 %v1051_v18, %v10051_v39 }
 0x179   :  { %v983_v60 = vld [vmem:[#allocation5 + $0x50] ss:$2 sm:$0xff]  ;;  %v999_v6 = vld [vmem:[#allocation5 + $0x51] ss:$2 sm:$0xff]  ;;  %v10058_v12 = vand.u32 4294901760, %v1054_v2  ;;  %v1057_v24 = vsel %vm751_vm2, %v1042_v16, 0 }
 0x17a   :  { %v1009_v55 = vmax.f32 %v983_v60, %v999_v6  ;;  %v10065_v35 = vand.u32 4294901760, %v1057_v24  ;;  %v985_v62 = vld [vmem:[#allocation5 + $0x60] ss:$2 sm:$0xff]  ;;  %v1001_v41 = vld [vmem:[#allocation5 + $0x61] ss:$2 sm:$0xff]  ;;  %v1142_v20 = vand.u32 4294901760, %v10063_v28 }
 0x17b   :  { %8776 = vmatmul.mubr.f32.vlgmr.msra.gmra.mxu1 %v10058_v12  ;;  %v10070_v59 = vsub.f32 %v1054_v2, %v10058_v12  ;;  %v1010_v14 = vmax.f32 %v985_v62, %v1001_v41  ;;  %v2026_v16 = vand.u32 4294901760, %v2025_v51 }
 0x17c   :  { %1028 = vst.msk [vmem:[#allocation3 + $0x32] sm:$0xff] %vm751_vm2, %v1009_v55  ;;  %8778 = vmatprep.mubr.f32.mxu1 %v10065_v35  ;;  %v10077_v0 = vsub.f32 %v1057_v24, %v10065_v35  ;;  %8802 = vmatpush3.msra.mxu1 %v9797_v57  ;;  %v1143_v32 = vsub.f32 %v10063_v28, %v1142_v20 }
 0x17d   :  { %v1043_v23 = vld [vmem:[#allocation3 + $0x19] sm:$0xff]  ;;  %v1152_v36 = vand.u32 4294901760, %v10070_v59  ;;  %1029 = vst.msk [vmem:[#allocation3 + $0x3a] sm:$0xff] %vm751_vm2, %v1010_v14  ;;  %8829 = vmatprep.subr.mxu1 %v9797_v57 }
 0x17e   :  { %v1060_v37 = vsel %vm751_vm2, %v1043_v23, 0  ;;  %v1162_v38 = vand.u32 4294901760, %v10077_v0  ;;  %v1144_v29 = vand.u32 4294901760, %v1143_v32 }
 0x17f   :  { %v10086_v25 = vand.u32 4294901760, %v1060_v37  ;;  %v1153_v46 = vsub.f32 %v10070_v59, %v1152_v36  ;;  %v1044_v31 = vld [vmem:[#allocation3 + $0x29] sm:$0xff] }
 0x180   :  { %v1163_v44 = vsub.f32 %v10077_v0, %v1162_v38  ;;  %v1063_v61 = vsel %vm751_vm2, %v1044_v31, 0  ;;  %8761 = vmatprep.mubr.f32.mxu0 %v1144_v29 }
 0x181   :  { %8779 = vmatmul.mubr.f32.gmra.mxu1 %v10086_v25  ;;  %v1154_v47 = vand.u32 4294901760, %v1153_v46  ;;  %v1171_v10 = vsub.f32 %v1060_v37, %v10086_v25  ;;  %v10096_v63 = vand.u32 4294901760, %v1063_v61 }
 0x182   :  { %v1164_v49 = vand.u32 4294901760, %v1163_v44 }
 0x183   :  { %v1045_v56 = vld [vmem:[#allocation3 + $0x31] sm:$0xff]  ;;  %8762 = vmatmul.mubr.f32.vlgmr.msra.gmra.mxu0 %v1154_v47  ;;  %v1172_v42 = vand.u32 4294901760, %v1171_v10  ;;  %8781 = vmatprep.mubr.f32.mxu1 %v10096_v63  ;;  %v1181_v9 = vsub.f32 %v1063_v61, %v10096_v63 }
 0x184   :  { %v1066_v48 = vsel %vm751_vm2, %v1045_v56, 0  ;;  %8788 = vmatpush3.msra.mxu0 %v9808_v3  ;;  %v1046_v43 = vld [vmem:[#allocation3 + $0x39] sm:$0xff]  ;;  %v1047_v8 = vld [vmem:[#allocation3 + $0x41] sm:$0xff]  ;;  %8764 = vmatprep.mubr.f32.mxu0 %v1164_v49  ;;  %v1036_v37 = vld [vmem:[#allocation3 + $0x30] sm:$0xff] }
 0x185   :  { %v10103_v30 = vand.u32 4294901760, %v1066_v48  ;;  %v1069_v33 = vsel %vm751_vm2, %v1046_v43, 0  ;;  %v1173_v50 = vsub.f32 %v1171_v10, %v1172_v42  ;;  %v1072_v21 = vsel %vm751_vm2, %v1047_v8, 0  ;;  %8815 = vmatprep.subr.mxu0 %v9818_v11  ;;  %v1038_v47 = vld [vmem:[#allocation3 + $0x40] sm:$0xff] }
 0x186   :  { %v10111_v26 = vand.u32 4294901760, %v1069_v33  ;;  %v10113_v15 = vand.u32 4294901760, %v1072_v21  ;;  %v1182_v17 = vand.u32 4294901760, %v1181_v9  ;;  %v1843_v8 = vsel %vm751_vm2, %v1038_v47, 0 }
 0x187   :  { %8782 = vmatmul.mubr.f32.gmra.mxu1 %v10103_v30  ;;  %v1191_v3 = vsub.f32 %v1066_v48, %v10103_v30  ;;  %v1174_v22 = vand.u32 4294901760, %v1173_v50 }
 0x188   :  { %8784 = vmatprep.mubr.f32.mxu1 %v10111_v26  ;;  %v1183_v1 = vsub.f32 %v1181_v9, %v1182_v17  ;;  %v1201_v53 = vsub.f32 %v1069_v33, %v10111_v26  ;;  %v1211_v5 = vsub.f32 %v1072_v21, %v10113_v15  ;;  %v10201_v21 = vand.u32 4294901760, %v1843_v8 }
 0x189   :  { %v1192_v40 = vand.u32 4294901760, %v1191_v3  ;;  %8765 = vmatmul.mubr.f32.gmra.mxu0 %v1174_v22 }
 0x18a   :  { %v1184_v18 = vand.u32 4294901760, %v1183_v1  ;;  %v1202_v54 = vand.u32 4294901760, %v1201_v53  ;;  %v1212_v45 = vand.u32 4294901760, %v1211_v5 }
 0x18b   :  { %8785 = vmatmul.mubr.f32.gmra.mxu1 %v10113_v15  ;;  %v1193_v27 = vsub.f32 %v1191_v3, %v1192_v40 }
 0x18c   :  { %8803 = vmatprep.mubr.f32.mxu1 %v1142_v20  ;;  %8767 = vmatprep.mubr.f32.mxu0 %v1184_v18  ;;  %v1203_v19 = vsub.f32 %v1201_v53, %v1202_v54  ;;  %v1213_v2 = vsub.f32 %v1211_v5, %v1212_v45  ;;  %v1034_v20 = vld [vmem:[#allocation3 + $0x18] sm:$0xff] }
 0x18d   :  { %v1194_v58 = vand.u32 4294901760, %v1193_v27  ;;  %v1831_v32 = vsel %vm751_vm2, %v1034_v20, 0 }
 0x18e   :  { %v1204_v60 = vand.u32 4294901760, %v1203_v19  ;;  %v1214_v6 = vand.u32 4294901760, %v1213_v2  ;;  %v10157_v29 = vand.u32 4294901760, %v1831_v32 }
 0x18f   :  { %8768 = vmatmul.mubr.f32.gmra.mxu0 %v1194_v58  ;;  %8804 = vmatmul.mubr.f32.vlgmr.msra.gmra.mxu1 %v1152_v36 }
 0x190   :  { %8806 = vmatprep.mubr.f32.mxu1 %v1162_v38  ;;  %8830 = vmatpush3.msra.mxu1 %v9797_v57  ;;  %v1031_v57 = vld [vmem:[#allocation3] sm:$0xff] }
 0x191   :  { %8770 = vmatprep.mubr.f32.mxu0 %v1204_v60  ;;  %8857 = vmatprep.subr.mxu1 %v2026_v16  ;;  %v1822_v24 = vsel %vm751_vm2, %v1031_v57, 0 }
 0x192   :  { %v10132_v55 = vand.u32 4294901760, %v1822_v24 }
 0x193   :  { %8771 = vmatmul.mubr.f32.gmra.mxu0 %v1214_v6  ;;  %8807 = vmatmul.mubr.f32.gmra.mxu1 %v1172_v42  ;;  %v10182_v42 = vsub.f32 %v1831_v32, %v10157_v29  ;;  %v2596_v32 = vld [vmem:[#allocation3 + $0x2a] sm:$0xff] }
 0x194   :  { %8789 = vmatprep.mubr.f32.mxu0 %v10063_v28  ;;  %8809 = vmatprep.mubr.f32.mxu1 %v1182_v17  ;;  %v1032_v28 = vld [vmem:[#allocation3 + $0x8] sm:$0xff] }
 0x195   :  { %v1825_v62 = vsel %vm751_vm2, %v1032_v28, 0  ;;  %v1943_v50 = vand.u32 4294901760, %v10182_v42 }
 0x196   :  { %v10140_v14 = vand.u32 4294901760, %v1825_v62 }
 0x197   :  { %8790 = vmatmul.mubr.f32.vlgmr.msra.gmra.mxu0 %v10070_v59  ;;  %8810 = vmatmul.mubr.f32.gmra.mxu1 %v1192_v40  ;;  %v1035_v59 = vld [vmem:[#allocation3 + $0x28] sm:$0xff]  ;;  %v1944_v1 = vsub.f32 %v10182_v42, %v1943_v50 }
 0x198   :  { %8816 = vmatpush3.msra.mxu0 %v9818_v11  ;;  %8792 = vmatprep.mubr.f32.mxu0 %v10077_v0  ;;  %v1033_v11 = vld [vmem:[#allocation3 + $0x10] sm:$0xff]  ;;  %v10143_v0 = vsub.f32 %v1822_v24, %v10132_v55  ;;  %v1834_v36 = vsel %vm751_vm2, %v1035_v59, 0  ;;  %v10155_v38 = vsub.f32 %v1825_v62, %v10140_v14  ;;  %v2595_v59 = vld [vmem:[#allocation3 + $0x1a] sm:$0xff] }
 0x199   :  { %8812 = vmatprep.mubr.f32.mxu1 %v1202_v54  ;;  %8843 = vmatprep.subr.mxu0 %v10073_v52  ;;  %v1828_v41 = vsel %vm751_vm2, %v1033_v11, 0  ;;  %v10164_v31 = vand.u32 4294901760, %v1834_v36  ;;  %v2593_v11 = vld [vmem:[#allocation3 + $0xa] sm:$0xff] }
 0x19a   :  { %v10145_v23 = vand.u32 4294901760, %v1828_v41  ;;  %v1913_v46 = vand.u32 4294901760, %v10143_v0  ;;  %v1923_v48 = vand.u32 4294901760, %v10155_v38 }
 0x19b   :  { %8793 = vmatmul.mubr.f32.gmra.mxu0 %v1171_v10  ;;  %8813 = vmatmul.mubr.f32.gmra.mxu1 %v1212_v45 }
 0x19c   :  { %8795 = vmatprep.mubr.f32.mxu0 %v1181_v9  ;;  %8831 = vmatprep.mubr.f32.mxu1 %v10051_v39  ;;  %v10168_v44 = vsub.f32 %v1828_v41, %v10145_v23  ;;  %v1914_v56 = vsub.f32 %v10143_v0, %v1913_v46  ;;  %v1924_v33 = vsub.f32 %v10155_v38, %v1923_v48  ;;  %v2606_v41 = vsel %vm751_vm2, %v2593_v11, 0  ;;  %v3382_v11 = vld [vmem:[#allocation3 + $0xb] sm:$0xff] }
 0x19e   :  { %v1925_v51 = vand.u32 4294901760, %v1924_v33 }
 0x19f   :  { %8796 = vmatmul.mubr.f32.gmra.mxu0 %v1191_v3  ;;  %8832 = vmatmul.mubr.f32.vlgmr.msra.gmra.mxu1 %v10058_v12 }
 0x1a0   :  { %8798 = vmatprep.mubr.f32.mxu0 %v1201_v53  ;;  %8834 = vmatprep.mubr.f32.mxu1 %v10065_v35  ;;  %v1982_v53 = vsub.f32 %v1843_v8, %v10201_v21 }
 0x1a1   :  { %8858 = vmatpush3.msra.mxu1 %v2026_v16 }
 0x1a2   :  { %8885 = vmatprep.subr.mxu1 %v10073_v52  ;;  %v1983_v58 = vand.u32 4294901760, %v1982_v53 }
 0x1a3   :  { %8799 = vmatmul.mubr.f32.gmra.mxu0 %v1211_v5  ;;  %8835 = vmatmul.mubr.f32.gmra.mxu1 %v10086_v25 }
 0x1a4   :  { %8817 = vmatprep.mubr.f32.mxu0 %v10051_v39  ;;  %8837 = vmatprep.mubr.f32.mxu1 %v10096_v63  ;;  %v1037_v39 = vld [vmem:[#allocation3 + $0x38] sm:$0xff] }
 0x1a5   :  { %v1840_v61 = vsel %vm751_vm2, %v1037_v39, 0  ;;  %v2612_v39 = vsel %vm751_vm2, %v2595_v59, 0 }
 0x1a6   :  { %v10185_v43 = vand.u32 4294901760, %v1840_v61 }
 0x1a7   :  { %8818 = vmatmul.mubr.f32.vlgmr.msra.gmra.mxu0 %v10058_v12  ;;  %8838 = vmatmul.mubr.f32.gmra.mxu1 %v10103_v30  ;;  %v8296_v12 = vld [vmem:[%s11474_s4 + $0x10] sm:$0xff] }
 0x1a8   :  { %8844 = vmatpush3.msra.mxu0 %v10073_v52  ;;  %8820 = vmatprep.mubr.f32.mxu0 %v10065_v35  ;;  %v1837_v35 = vsel %vm751_vm2, %v1036_v37, 0  ;;  %v10175_v10 = vand.u32 4294901760, %v8296_v12  ;;  %v1972_v22 = vsub.f32 %v1840_v61, %v10185_v43 }
 0x1a9   :  { %8840 = vmatprep.mubr.f32.mxu1 %v10111_v26  ;;  %8871 = vmatprep.subr.mxu0 %v10090_v13  ;;  %v10179_v49 = vand.u32 4294901760, %v1837_v35 }
 0x1aa   :  { %v10196_v9 = vsub.f32 %v8296_v12, %v10175_v10  ;;  %v1973_v27 = vand.u32 4294901760, %v1972_v22 }
 0x1ab   :  { %8821 = vmatmul.mubr.f32.gmra.mxu0 %v10086_v25  ;;  %8841 = vmatmul.mubr.f32.gmra.mxu1 %v10113_v15  ;;  %v1933_v25 = vand.u32 4294901760, %v10168_v44  ;;  %v1962_v17 = vsub.f32 %v1837_v35, %v10179_v49  ;;  %v10261_v35 = vand.u32 4294901760, %v2612_v39 }
 0x1ac   :  { %8823 = vmatprep.mubr.f32.mxu0 %v10096_v63  ;;  %8859 = vmatprep.mubr.f32.mxu1 %v10132_v55  ;;  %v10189_v63 = vsub.f32 %v1834_v36, %v10164_v31  ;;  %v10215_v54 = vand.u32 4294901760, %v10196_v9  ;;  %v1974_v2 = vsub.f32 %v1972_v22, %v1973_v27 }
 0x1ad   :  { %v1934_v3 = vsub.f32 %v10168_v44, %v1933_v25  ;;  %v1963_v40 = vand.u32 4294901760, %v1962_v17 }
 0x1ae   :  { %v2806_v16 = vsub.f32 %v10196_v9, %v10215_v54  ;;  %v1975_v6 = vand.u32 4294901760, %v1974_v2 }
 0x1af   :  { %8824 = vmatmul.mubr.f32.gmra.mxu0 %v10103_v30  ;;  %8860 = vmatmul.mubr.f32.vlgmr.msra.gmra.mxu1 %v10140_v14  ;;  %v1915_v30 = vand.u32 4294901760, %v1914_v56  ;;  %v1935_v5 = vand.u32 4294901760, %v1934_v3  ;;  %v1964_v45 = vsub.f32 %v1962_v17, %v1963_v40  ;;  %v2599_v56 = vld [vmem:[#allocation3 + $0x42] sm:$0xff] }
 0x1b0   :  { %8826 = vmatprep.mubr.f32.mxu0 %v10111_v26  ;;  %8862 = vmatprep.mubr.f32.mxu1 %v10145_v23  ;;  %v1953_v26 = vand.u32 4294901760, %v10189_v63  ;;  %v2807_v57 = vand.u32 4294901760, %v2806_v16 }
 0x1b1   :  { %8886 = vmatpush3.msra.mxu1 %v10073_v52  ;;  %v1965_v60 = vand.u32 4294901760, %v1964_v45 }
 0x1b2   :  { %8913 = vmatprep.subr.mxu1 %v10073_v52  ;;  %v1954_v18 = vsub.f32 %v10189_v63, %v1953_v26 }
 0x1b3   :  { %8827 = vmatmul.mubr.f32.gmra.mxu0 %v10113_v15  ;;  %8863 = vmatmul.mubr.f32.gmra.mxu1 %v10157_v29  ;;  %v1945_v15 = vand.u32 4294901760, %v1944_v1 }
 0x1b4   :  { %8845 = vmatprep.mubr.f32.mxu0 %v1915_v30  ;;  %8865 = vmatprep.mubr.f32.mxu1 %v10164_v31  ;;  %v1955_v19 = vand.u32 4294901760, %v1954_v18 }
 0x1b7   :  { %8846 = vmatmul.mubr.f32.vlgmr.msra.gmra.mxu0 %v1925_v51  ;;  %8866 = vmatmul.mubr.f32.gmra.mxu1 %v10179_v49 }
 0x1b8   :  { %8872 = vmatpush3.msra.mxu0 %v10090_v13  ;;  %8848 = vmatprep.mubr.f32.mxu0 %v1935_v5  ;;  %v1984_v13 = vsub.f32 %v1982_v53, %v1983_v58 }
 0x1b9   :  { %8868 = vmatprep.mubr.f32.mxu1 %v10185_v43  ;;  %8899 = vmatprep.subr.mxu0 %v10100_v7 }
 0x1ba   :  { %v1985_v24 = vand.u32 4294901760, %v1984_v13 }
 0x1bb   :  { %8849 = vmatmul.mubr.f32.gmra.mxu0 %v1945_v15  ;;  %8869 = vmatmul.mubr.f32.gmra.mxu1 %v10201_v21 }
 0x1bc   :  { %8851 = vmatprep.mubr.f32.mxu0 %v1955_v19  ;;  %8887 = vmatprep.mubr.f32.mxu1 %v1913_v46  ;;  %v2597_v46 = vld [vmem:[#allocation3 + $0x32] sm:$0xff] }
 0x1bd   :  { %v2618_v61 = vsel %vm751_vm2, %v2597_v46, 0 }
 0x1be   :  { %v10281_v8 = vand.u32 4294901760, %v2618_v61 }
 0x1bf   :  { %8852 = vmatmul.mubr.f32.gmra.mxu0 %v1965_v60  ;;  %8888 = vmatmul.mubr.f32.vlgmr.msra.gmra.mxu1 %v1923_v48  ;;  %v8297_v48 = vld [vmem:[%s11474_s4 + $0x18] sm:$0xff] }
 0x1c0   :  { %8854 = vmatprep.mubr.f32.mxu0 %v1975_v6  ;;  %8890 = vmatprep.mubr.f32.mxu1 %v1933_v25  ;;  %v2743_v51 = vsub.f32 %v2618_v61, %v10281_v8 }
 0x1c1   :  { %8914 = vmatpush3.msra.mxu1 %v10073_v52  ;;  %v2592_v52 = vld [vmem:[#allocation3 + $0x2] sm:$0xff] }
 0x1c2   :  { %8941 = vmatprep.subr.mxu1 %v2807_v57  ;;  %v2603_v28 = vsel %vm751_vm2, %v2592_v52, 0  ;;  %v2744_v18 = vand.u32 4294901760, %v2743_v51 }
 0x1c3   :  { %8855 = vmatmul.mubr.f32.gmra.mxu0 %v1985_v24  ;;  %8891 = vmatmul.mubr.f32.gmra.mxu1 %v1943_v50  ;;  %v10236_v62 = vand.u32 4294901760, %v2603_v28  ;;  %v2624_v50 = vsel %vm751_vm2, %v2599_v56, 0 }
 0x1c4   :  { %8873 = vmatprep.mubr.f32.mxu0 %v10143_v0  ;;  %8893 = vmatprep.mubr.f32.mxu1 %v1953_v26  ;;  %v10244_v0 = vand.u32 4294901760, %v2606_v41  ;;  %v2745_v2 = vsub.f32 %v2743_v51, %v2744_v18 }
 0x1c5   :  { %v10247_v36 = vsub.f32 %v2603_v28, %v10236_v62 }
 0x1c6   :  { %v10258_v12 = vsub.f32 %v2606_v41, %v10244_v0  ;;  %v3395_v41 = vsel %vm751_vm2, %v3382_v11, 0 }
 0x1c7   :  { %8874 = vmatmul.mubr.f32.vlgmr.msra.gmra.mxu0 %v10155_v38  ;;  %8894 = vmatmul.mubr.f32.gmra.mxu1 %v1963_v40  ;;  %v2615_v38 = vsel %vm751_vm2, %v2596_v32, 0  ;;  %v3384_v32 = vld [vmem:[#allocation3 + $0x1b] sm:$0xff] }
 0x1c8   :  { %8900 = vmatpush3.msra.mxu0 %v10100_v7  ;;  %8876 = vmatprep.mubr.f32.mxu0 %v10168_v44  ;;  %v2594_v7 = vld [vmem:[#allocation3 + $0x12] sm:$0xff]  ;;  %v2694_v44 = vand.u32 4294901760, %v10247_v36  ;;  %v3401_v46 = vsel %vm751_vm2, %v3384_v32, 0 }
 0x1c9   :  { %8896 = vmatprep.mubr.f32.mxu1 %v1973_v27  ;;  %8927 = vmatprep.subr.mxu0 %v10175_v10  ;;  %v2609_v20 = vsel %vm751_vm2, %v2594_v7, 0 }
 0x1ca   :  { %v10249_v37 = vand.u32 4294901760, %v2609_v20  ;;  %v2695_v25 = vsub.f32 %v10247_v36, %v2694_v44 }
 0x1cb   :  { %8877 = vmatmul.mubr.f32.gmra.mxu0 %v10182_v42  ;;  %8897 = vmatmul.mubr.f32.gmra.mxu1 %v1983_v58  ;;  %v2704_v42 = vand.u32 4294901760, %v10258_v12 }
 0x1cc   :  { %8879 = vmatprep.mubr.f32.mxu0 %v10189_v63  ;;  %8915 = vmatprep.mubr.f32.mxu1 %v10132_v55  ;;  %v10269_v47 = vsub.f32 %v2609_v20, %v10249_v37  ;;  %v2696_v3 = vand.u32 4294901760, %v2695_v25  ;;  %v8298_v25 = vld [vmem:[%s11474_s4 + $0x20] sm:$0xff] }
 0x1cd   :  { %v2705_v30 = vsub.f32 %v10258_v12, %v2704_v42 }
 0x1ce   :  { %v2714_v33 = vand.u32 4294901760, %v10269_v47 }
 0x1cf   :  { %8880 = vmatmul.mubr.f32.gmra.mxu0 %v1962_v17  ;;  %8916 = vmatmul.mubr.f32.vlgmr.msra.gmra.mxu1 %v10140_v14 }
 0x1d0   :  { %8882 = vmatprep.mubr.f32.mxu0 %v1972_v22  ;;  %8918 = vmatprep.mubr.f32.mxu1 %v10145_v23  ;;  %v10302_v22 = vand.u32 4294901760, %v2624_v50  ;;  %v2715_v1 = vsub.f32 %v10269_v47, %v2714_v33 }
 0x1d1   :  { %8942 = vmatpush3.msra.mxu1 %v2807_v57  ;;  %v2746_v57 = vand.u32 4294901760, %v2745_v2 }
 0x1d2   :  { %8969 = vmatprep.subr.mxu1 %v10175_v10  ;;  %v2763_v27 = vsub.f32 %v2624_v50, %v10302_v22  ;;  %v2716_v15 = vand.u32 4294901760, %v2715_v1 }
 0x1d3   :  { %8883 = vmatmul.mubr.f32.gmra.mxu0 %v1982_v53  ;;  %8919 = vmatmul.mubr.f32.gmra.mxu1 %v10157_v29  ;;  %v2706_v53 = vand.u32 4294901760, %v2705_v30 }
 0x1d4   :  { %8901 = vmatprep.mubr.f32.mxu0 %v10132_v55  ;;  %8921 = vmatprep.mubr.f32.mxu1 %v10164_v31  ;;  %v2598_v55 = vld [vmem:[#allocation3 + $0x3a] sm:$0xff]  ;;  %v2764_v16 = vand.u32 4294901760, %v2763_v27 }
 0x1d7   :  { %8902 = vmatmul.mubr.f32.vlgmr.msra.gmra.mxu0 %v10140_v14  ;;  %8922 = vmatmul.mubr.f32.gmra.mxu1 %v10179_v49  ;;  %v10265_v14 = vand.u32 4294901760, %v2615_v38 }
 0x1d8   :  { %8928 = vmatpush3.msra.mxu0 %v10175_v10  ;;  %8904 = vmatprep.mubr.f32.mxu0 %v10145_v23  ;;  %v2621_v23 = vsel %vm751_vm2, %v2598_v55, 0 }
 0x1d9   :  { %8924 = vmatprep.mubr.f32.mxu1 %v10185_v43  ;;  %8955 = vmatprep.subr.mxu0 %v10196_v9  ;;  %v10283_v63 = vand.u32 4294901760, %v2621_v23  ;;  %v10291_v17 = vsub.f32 %v2615_v38, %v10265_v14 }
 0x1db   :  { %8905 = vmatmul.mubr.f32.gmra.mxu0 %v10157_v29  ;;  %8925 = vmatmul.mubr.f32.gmra.mxu1 %v10201_v21  ;;  %v10286_v29 = vsub.f32 %v2612_v39, %v10261_v35  ;;  %v2753_v40 = vsub.f32 %v2621_v23, %v10283_v63  ;;  %v3385_v39 = vld [vmem:[#allocation3 + $0x2b] sm:$0xff] }
 0x1dc   :  { %8907 = vmatprep.mubr.f32.mxu0 %v10164_v31  ;;  %8943 = vmatprep.mubr.f32.mxu1 %v10236_v62  ;;  %v10293_v31 = vand.u32 4294901760, %v8297_v48 }
 0x1dd   :  { %v2724_v26 = vand.u32 4294901760, %v10286_v29  ;;  %v2754_v58 = vand.u32 4294901760, %v2753_v40 }
 0x1df   :  { %8908 = vmatmul.mubr.f32.gmra.mxu0 %v10179_v49  ;;  %8944 = vmatmul.mubr.f32.vlgmr.msra.gmra.mxu1 %v10244_v0  ;;  %v2734_v49 = vand.u32 4294901760, %v10291_v17  ;;  %v2725_v5 = vsub.f32 %v10286_v29, %v2724_v26  ;;  %v2755_v13 = vsub.f32 %v2753_v40, %v2754_v58 }
 0x1e0   :  { %8910 = vmatprep.mubr.f32.mxu0 %v10185_v43  ;;  %8946 = vmatprep.mubr.f32.mxu1 %v10249_v37  ;;  %v10310_v43 = vsub.f32 %v8297_v48, %v10293_v31 }
 0x1e1   :  { %8970 = vmatpush3.msra.mxu1 %v10175_v10  ;;  %v2735_v45 = vsub.f32 %v10291_v17, %v2734_v49  ;;  %v2756_v24 = vand.u32 4294901760, %v2755_v13 }
 0x1e2   :  { %8997 = vmatprep.subr.mxu1 %v10175_v10  ;;  %v10319_v19 = vand.u32 4294901760, %v10310_v43 }
 0x1e3   :  { %8911 = vmatmul.mubr.f32.gmra.mxu0 %v10201_v21  ;;  %8947 = vmatmul.mubr.f32.gmra.mxu1 %v10261_v35  ;;  %v2726_v21 = vand.u32 4294901760, %v2725_v5  ;;  %v2736_v60 = vand.u32 4294901760, %v2735_v45 }
 0x1e4   :  { %8929 = vmatprep.mubr.f32.mxu0 %v2696_v3  ;;  %8949 = vmatprep.mubr.f32.mxu1 %v10265_v14  ;;  %v3595_v6 = vsub.f32 %v10310_v43, %v10319_v19 }
 0x1e6   :  { %v3596_v52 = vand.u32 4294901760, %v3595_v6 }
 0x1e7   :  { %8930 = vmatmul.mubr.f32.vlgmr.msra.gmra.mxu0 %v2706_v53  ;;  %8950 = vmatmul.mubr.f32.gmra.mxu1 %v10281_v8 }
 0x1e8   :  { %8956 = vmatpush3.msra.mxu0 %v10196_v9  ;;  %8932 = vmatprep.mubr.f32.mxu0 %v2716_v15  ;;  %v2765_v9 = vsub.f32 %v2763_v27, %v2764_v16 }
 0x1e9   :  { %8952 = vmatprep.mubr.f32.mxu1 %v10283_v63  ;;  %8983 = vmatprep.subr.mxu0 %v10215_v54 }
 0x1ea   :  { %v2766_v28 = vand.u32 4294901760, %v2765_v9 }
 0x1eb   :  { %8933 = vmatmul.mubr.f32.gmra.mxu0 %v2726_v21  ;;  %8953 = vmatmul.mubr.f32.gmra.mxu1 %v10302_v22 }
 0x1ec   :  { %8935 = vmatprep.mubr.f32.mxu0 %v2736_v60  ;;  %8971 = vmatprep.mubr.f32.mxu1 %v2694_v44  ;;  %v3386_v44 = vld [vmem:[#allocation3 + $0x33] sm:$0xff] }
 0x1ed   :  { %v3407_v48 = vsel %vm751_vm2, %v3386_v44, 0 }
 0x1ef   :  { %8936 = vmatmul.mubr.f32.gmra.mxu0 %v2746_v57  ;;  %8972 = vmatmul.mubr.f32.vlgmr.msra.gmra.mxu1 %v2704_v42  ;;  %v3388_v42 = vld [vmem:[#allocation3 + $0x43] sm:$0xff] }
 0x1f0   :  { %8938 = vmatprep.mubr.f32.mxu0 %v2756_v24  ;;  %8974 = vmatprep.mubr.f32.mxu1 %v2714_v33  ;;  %v10384_v33 = vand.u32 4294901760, %v3407_v48  ;;  %v3413_v3 = vsel %vm751_vm2, %v3388_v42, 0 }
 0x1f1   :  { %8998 = vmatpush3.msra.mxu1 %v10175_v10  ;;  %v3381_v10 = vld [vmem:[#allocation3 + $0x3] sm:$0xff] }
 0x1f2   :  { %9025 = vmatprep.subr.mxu1 %v3596_v52  ;;  %v3392_v7 = vsel %vm751_vm2, %v3381_v10, 0  ;;  %v3532_v53 = vsub.f32 %v3407_v48, %v10384_v33 }
 0x1f3   :  { %8939 = vmatmul.mubr.f32.gmra.mxu0 %v2766_v28  ;;  %8975 = vmatmul.mubr.f32.gmra.mxu1 %v2724_v26  ;;  %v10341_v20 = vand.u32 4294901760, %v3392_v7 }
 0x1f4   :  { %8957 = vmatprep.mubr.f32.mxu0 %v10247_v36  ;;  %8977 = vmatprep.mubr.f32.mxu1 %v2734_v49  ;;  %v10348_v36 = vand.u32 4294901760, %v3395_v41  ;;  %v3533_v45 = vand.u32 4294901760, %v3532_v53 }
 0x1f5   :  { %v10354_v55 = vsub.f32 %v3392_v7, %v10341_v20  ;;  %v4171_v7 = vld [vmem:[#allocation3 + $0xc] sm:$0xff] }
 0x1f6   :  { %v10362_v61 = vsub.f32 %v3395_v41, %v10348_v36  ;;  %v3534_v13 = vsub.f32 %v3532_v53, %v3533_v45  ;;  %v4184_v41 = vsel %vm751_vm2, %v4171_v7, 0 }
 0x1f7   :  { %8958 = vmatmul.mubr.f32.vlgmr.msra.gmra.mxu0 %v10258_v12  ;;  %8978 = vmatmul.mubr.f32.gmra.mxu1 %v2744_v18  ;;  %v3404_v12 = vsel %vm751_vm2, %v3385_v39, 0  ;;  %v3483_v23 = vand.u32 4294901760, %v10354_v55  ;;  %v4173_v39 = vld [vmem:[#allocation3 + $0x1c] sm:$0xff] }
 0x1f8   :  { %8984 = vmatpush3.msra.mxu0 %v10215_v54  ;;  %8960 = vmatprep.mubr.f32.mxu0 %v10269_v47  ;;  %v3383_v54 = vld [vmem:[#allocation3 + $0x13] sm:$0xff]  ;;  %v10365_v47 = vand.u32 4294901760, %v3401_v46  ;;  %v10372_v56 = vand.u32 4294901760, %v3404_v12  ;;  %v4190_v44 = vsel %vm751_vm2, %v4173_v39, 0 }
 0x1f9   :  { %8980 = vmatprep.mubr.f32.mxu1 %v2754_v58  ;;  %9011 = vmatprep.subr.mxu0 %v10293_v31  ;;  %v3398_v59 = vsel %vm751_vm2, %v3383_v54, 0  ;;  %v3484_v30 = vsub.f32 %v10354_v55, %v3483_v23  ;;  %v10469_v48 = vand.u32 4294901760, %v4190_v44 }
 0x1fa   :  { %v10350_v38 = vand.u32 4294901760, %v3398_v59  ;;  %v10395_v26 = vsub.f32 %v3404_v12, %v10372_v56 }
 0x1fb   :  { %8961 = vmatmul.mubr.f32.gmra.mxu0 %v10286_v29  ;;  %8981 = vmatmul.mubr.f32.gmra.mxu1 %v2764_v16  ;;  %v3493_v29 = vand.u32 4294901760, %v10362_v61  ;;  %v3485_v5 = vand.u32 4294901760, %v3484_v30 }
 0x1fc   :  { %8963 = vmatprep.mubr.f32.mxu0 %v10291_v17  ;;  %8999 = vmatprep.mubr.f32.mxu1 %v10236_v62 }
 0x1ff   :  { %8964 = vmatmul.mubr.f32.gmra.mxu0 %v2743_v51  ;;  %9000 = vmatmul.mubr.f32.vlgmr.msra.gmra.mxu1 %v10244_v0  ;;  %v3494_v51 = vsub.f32 %v10362_v61, %v3493_v29 }
 0x200   :  { %8966 = vmatprep.mubr.f32.mxu0 %v2753_v40  ;;  %9002 = vmatprep.mubr.f32.mxu1 %v10249_v37  ;;  %v10407_v40 = vand.u32 4294901760, %v3413_v3 }
 0x201   :  { %9026 = vmatpush3.msra.mxu1 %v3596_v52  ;;  %v3535_v52 = vand.u32 4294901760, %v3534_v13 }
 0x202   :  { %9053 = vmatprep.subr.mxu1 %v10293_v31  ;;  %v3552_v58 = vsub.f32 %v3413_v3, %v10407_v40 }
 0x203   :  { %8967 = vmatmul.mubr.f32.gmra.mxu0 %v2763_v27  ;;  %9003 = vmatmul.mubr.f32.gmra.mxu1 %v10261_v35  ;;  %v3495_v27 = vand.u32 4294901760, %v3494_v51 }
 0x204   :  { %8985 = vmatprep.mubr.f32.mxu0 %v10236_v62  ;;  %9005 = vmatprep.mubr.f32.mxu1 %v10265_v14  ;;  %v3387_v62 = vld [vmem:[#allocation3 + $0x3b] sm:$0xff]  ;;  %v3553_v6 = vand.u32 4294901760, %v3552_v58 }
 0x207   :  { %8986 = vmatmul.mubr.f32.vlgmr.msra.gmra.mxu0 %v10244_v0  ;;  %9006 = vmatmul.mubr.f32.gmra.mxu1 %v10281_v8  ;;  %v10369_v0 = vsub.f32 %v3398_v59, %v10350_v38 }
 0x208   :  { %9012 = vmatpush3.msra.mxu0 %v10293_v31  ;;  %8988 = vmatprep.mubr.f32.mxu0 %v10249_v37  ;;  %v3410_v37 = vsel %vm751_vm2, %v3387_v62, 0 }
 0x209   :  { %9008 = vmatprep.mubr.f32.mxu1 %v10283_v63  ;;  %9039 = vmatprep.subr.mxu0 %v10310_v43  ;;  %v3503_v50 = vand.u32 4294901760, %v10369_v0  ;;  %v10387_v17 = vand.u32 4294901760, %v3410_v37 }
 0x20b   :  { %8989 = vmatmul.mubr.f32.gmra.mxu0 %v10261_v35  ;;  %9009 = vmatmul.mubr.f32.gmra.mxu1 %v10302_v22  ;;  %v10390_v35 = vsub.f32 %v3401_v46, %v10365_v47  ;;  %v3504_v1 = vsub.f32 %v10369_v0, %v3503_v50  ;;  %v3542_v18 = vsub.f32 %v3410_v37, %v10387_v17  ;;  %v10452_v46 = vand.u32 4294901760, %v4184_v41 }
 0x20c   :  { %8991 = vmatprep.mubr.f32.mxu0 %v10265_v14  ;;  %9027 = vmatprep.mubr.f32.mxu1 %v10341_v20  ;;  %v10397_v14 = vand.u32 4294901760, %v8298_v25 }
 0x20d   :  { %v3513_v49 = vand.u32 4294901760, %v10390_v35  ;;  %v3505_v21 = vand.u32 4294901760, %v3504_v1  ;;  %v3543_v16 = vand.u32 4294901760, %v3542_v18 }
 0x20f   :  { %8992 = vmatmul.mubr.f32.gmra.mxu0 %v10281_v8  ;;  %9028 = vmatmul.mubr.f32.vlgmr.msra.gmra.mxu1 %v10348_v36  ;;  %v3523_v8 = vand.u32 4294901760, %v10395_v26  ;;  %v3514_v15 = vsub.f32 %v10390_v35, %v3513_v49  ;;  %v3544_v9 = vsub.f32 %v3542_v18, %v3543_v16 }
 0x210   :  { %8994 = vmatprep.mubr.f32.mxu0 %v10283_v63  ;;  %9030 = vmatprep.mubr.f32.mxu1 %v10350_v38  ;;  %v10414_v63 = vsub.f32 %v8298_v25, %v10397_v14 }
 0x211   :  { %9054 = vmatpush3.msra.mxu1 %v10293_v31  ;;  %v3524_v2 = vsub.f32 %v10395_v26, %v3523_v8  ;;  %v3545_v28 = vand.u32 4294901760, %v3544_v9 }
 0x212   :  { %9081 = vmatprep.subr.mxu1 %v10293_v31  ;;  %v10423_v60 = vand.u32 4294901760, %v10414_v63 }
 0x213   :  { %8995 = vmatmul.mubr.f32.gmra.mxu0 %v10302_v22  ;;  %9031 = vmatmul.mubr.f32.gmra.mxu1 %v10365_v47  ;;  %v3515_v22 = vand.u32 4294901760, %v3514_v15  ;;  %v3525_v57 = vand.u32 4294901760, %v3524_v2 }
 0x214   :  { %9013 = vmatprep.mubr.f32.mxu0 %v3485_v5  ;;  %9033 = vmatprep.mubr.f32.mxu1 %v10372_v56  ;;  %v4384_v24 = vsub.f32 %v10414_v63, %v10423_v60 }
 0x216   :  { %v4385_v10 = vand.u32 4294901760, %v4384_v24 }
 0x217   :  { %9014 = vmatmul.mubr.f32.vlgmr.msra.gmra.mxu0 %v3495_v27  ;;  %9034 = vmatmul.mubr.f32.gmra.mxu1 %v10384_v33 }
 0x218   :  { %9040 = vmatpush3.msra.mxu0 %v10310_v43  ;;  %9016 = vmatprep.mubr.f32.mxu0 %v3505_v21  ;;  %v3554_v43 = vsub.f32 %v3552_v58, %v3553_v6 }
 0x219   :  { %9036 = vmatprep.mubr.f32.mxu1 %v10387_v17  ;;  %9067 = vmatprep.subr.mxu0 %v10319_v19 }
 0x21a   :  { %v3555_v11 = vand.u32 4294901760, %v3554_v43 }
 0x21b   :  { %9017 = vmatmul.mubr.f32.gmra.mxu0 %v3515_v22  ;;  %9037 = vmatmul.mubr.f32.gmra.mxu1 %v10407_v40 }
 0x21c   :  { %9019 = vmatprep.mubr.f32.mxu0 %v3525_v57  ;;  %9055 = vmatprep.mubr.f32.mxu1 %v3483_v23  ;;  %v4176_v23 = vld [vmem:[#allocation3 + $0x3c] sm:$0xff] }
 0x21f   :  { %9020 = vmatmul.mubr.f32.gmra.mxu0 %v3535_v52  ;;  %9056 = vmatmul.mubr.f32.vlgmr.msra.gmra.mxu1 %v3493_v29  ;;  %v4177_v29 = vld [vmem:[#allocation3 + $0x44] sm:$0xff] }
 0x220   :  { %9022 = vmatprep.mubr.f32.mxu0 %v3545_v28  ;;  %9058 = vmatprep.mubr.f32.mxu1 %v3503_v50 }
 0x221   :  { %9082 = vmatpush3.msra.mxu1 %v10293_v31  ;;  %v4170_v31 = vld [vmem:[#allocation3 + $0x4] sm:$0xff] }
 0x222   :  { %9109 = vmatprep.subr.mxu1 %v4385_v10  ;;  %v4181_v54 = vsel %vm751_vm2, %v4170_v31, 0 }
 0x223   :  { %9023 = vmatmul.mubr.f32.gmra.mxu0 %v3555_v11  ;;  %9059 = vmatmul.mubr.f32.gmra.mxu1 %v3513_v49  ;;  %v10445_v59 = vand.u32 4294901760, %v4181_v54 }
 0x224   :  { %9041 = vmatprep.mubr.f32.mxu0 %v10354_v55  ;;  %9061 = vmatprep.mubr.f32.mxu1 %v3523_v8  ;;  %v4174_v55 = vld [vmem:[#allocation3 + $0x2c] sm:$0xff] }
 0x225   :  { %v10458_v62 = vsub.f32 %v4181_v54, %v10445_v59 }
 0x227   :  { %9042 = vmatmul.mubr.f32.vlgmr.msra.gmra.mxu0 %v10362_v61  ;;  %9062 = vmatmul.mubr.f32.gmra.mxu1 %v3533_v45  ;;  %v4193_v61 = vsel %vm751_vm2, %v4174_v55, 0  ;;  %v4272_v37 = vand.u32 4294901760, %v10458_v62 }
 0x228   :  { %9068 = vmatpush3.msra.mxu0 %v10319_v19  ;;  %9044 = vmatprep.mubr.f32.mxu0 %v10369_v0  ;;  %v4172_v19 = vld [vmem:[#allocation3 + $0x14] sm:$0xff]  ;;  %v10476_v42 = vand.u32 4294901760, %v4193_v61 }
 0x229   :  { %9064 = vmatprep.mubr.f32.mxu1 %v3543_v16  ;;  %9095 = vmatprep.subr.mxu0 %v10397_v14  ;;  %v4187_v32 = vsel %vm751_vm2, %v4172_v19, 0  ;;  %v4175_v0 = vld [vmem:[#allocation3 + $0x34] sm:$0xff]  ;;  %v4273_v51 = vsub.f32 %v10458_v62, %v4272_v37 }
 0x22a   :  { %v10454_v12 = vand.u32 4294901760, %v4187_v32  ;;  %v4196_v25 = vsel %vm751_vm2, %v4175_v0, 0  ;;  %v10498_v49 = vsub.f32 %v4193_v61, %v10476_v42 }
 0x22b   :  { %9045 = vmatmul.mubr.f32.gmra.mxu0 %v10390_v35  ;;  %9065 = vmatmul.mubr.f32.gmra.mxu1 %v3553_v6  ;;  %v10485_v30 = vand.u32 4294901760, %v4196_v25  ;;  %v4274_v27 = vand.u32 4294901760, %v4273_v51 }
 0x22c   :  { %9047 = vmatprep.mubr.f32.mxu0 %v10395_v26  ;;  %9083 = vmatprep.mubr.f32.mxu1 %v10341_v20  ;;  %v10489_v26 = vsub.f32 %v4190_v44, %v10469_v48  ;;  %v4312_v15 = vand.u32 4294901760, %v10498_v49 }
 0x22e   :  { %v4302_v5 = vand.u32 4294901760, %v10489_v26  ;;  %v4313_v9 = vsub.f32 %v10498_v49, %v4312_v15 }
 0x22f   :  { %9048 = vmatmul.mubr.f32.gmra.mxu0 %v3532_v53  ;;  %9084 = vmatmul.mubr.f32.vlgmr.msra.gmra.mxu1 %v10348_v36 }
 0x230   :  { %9050 = vmatprep.mubr.f32.mxu0 %v3542_v18  ;;  %9086 = vmatprep.mubr.f32.mxu1 %v10350_v38  ;;  %v10512_v18 = vsub.f32 %v4196_v25, %v10485_v30  ;;  %v4303_v22 = vsub.f32 %v10489_v26, %v4302_v5  ;;  %v4314_v54 = vand.u32 4294901760, %v4313_v9 }
 0x231   :  { %9110 = vmatpush3.msra.mxu1 %v4385_v10 }
 0x232   :  { %9137 = vmatprep.subr.mxu1 %v10397_v14  ;;  %v4322_v13 = vand.u32 4294901760, %v10512_v18  ;;  %v4304_v10 = vand.u32 4294901760, %v4303_v22 }
 0x233   :  { %9051 = vmatmul.mubr.f32.gmra.mxu0 %v3552_v58  ;;  %9087 = vmatmul.mubr.f32.gmra.mxu1 %v10365_v47 }
 0x234   :  { %9069 = vmatprep.mubr.f32.mxu0 %v10341_v20  ;;  %9089 = vmatprep.mubr.f32.mxu1 %v10372_v56  ;;  %v10466_v20 = vsub.f32 %v4184_v41, %v10452_v46  ;;  %v4323_v11 = vsub.f32 %v10512_v18, %v4322_v13 }
 0x236   :  { %v4282_v35 = vand.u32 4294901760, %v10466_v20  ;;  %v4324_v44 = vand.u32 4294901760, %v4323_v11 }
 0x237   :  { %9070 = vmatmul.mubr.f32.vlgmr.msra.gmra.mxu0 %v10348_v36  ;;  %9090 = vmatmul.mubr.f32.gmra.mxu1 %v10384_v33  ;;  %v10473_v36 = vsub.f32 %v4187_v32, %v10454_v12 }
 0x238   :  { %9096 = vmatpush3.msra.mxu0 %v10397_v14  ;;  %9072 = vmatprep.mubr.f32.mxu0 %v10350_v38  ;;  %v4199_v38 = vsel %vm751_vm2, %v4176_v23, 0  ;;  %v4283_v53 = vsub.f32 %v10466_v20, %v4282_v35 }
 0x239   :  { %9092 = vmatprep.mubr.f32.mxu1 %v10387_v17  ;;  %9123 = vmatprep.subr.mxu0 %v10414_v63  ;;  %v4292_v3 = vand.u32 4294901760, %v10473_v36  ;;  %v10494_v1 = vand.u32 4294901760, %v4199_v38 }
 0x23a   :  { %v4284_v2 = vand.u32 4294901760, %v4283_v53 }
 0x23b   :  { %9073 = vmatmul.mubr.f32.gmra.mxu0 %v10365_v47  ;;  %9093 = vmatmul.mubr.f32.gmra.mxu1 %v10407_v40  ;;  %v8777_v50 = vpop.f32.mrf.mxu1  ;;  %v10519_v45 = vsub.f32 %v4199_v38, %v10494_v1 }
 0x23c   :  { %9075 = vmatprep.mubr.f32.mxu0 %v10372_v56  ;;  %9111 = vmatprep.mubr.f32.mxu1 %v10445_v59  ;;  %v4202_v56 = vsel %vm751_vm2, %v4177_v29, 0  ;;  %vm4959_vm2 = vcmask 130048  }
 0x23d   :  { %v1292_v47 = vpop.f32.mrf.mxu1  ;;  %v10509_v8 = vand.u32 4294901760, %v4202_v56  ;;  %v4332_v24 = vand.u32 4294901760, %v10519_v45 }
 0x23f   :  { %9076 = vmatmul.mubr.f32.gmra.mxu0 %v10384_v33  ;;  %9112 = vmatmul.mubr.f32.vlgmr.msra.gmra.mxu1 %v10452_v46  ;;  %v10530_v6 = vsub.f32 %v4202_v56, %v10509_v8  ;;  %v4333_v19 = vsub.f32 %v10519_v45, %v4332_v24 }
 0x240   :  { %9078 = vmatprep.mubr.f32.mxu0 %v10387_v17  ;;  %9114 = vmatprep.mubr.f32.mxu1 %v10454_v12  ;;  %v4293_v17 = vsub.f32 %v10473_v36, %v4292_v3 }
 0x241   :  { %9138 = vmatpush3.msra.mxu1 %v10397_v14  ;;  %v8780_v33 = vpop.f32.mrf.mxu1  ;;  %v4342_v31 = vand.u32 4294901760, %v10530_v6  ;;  %v4334_v0 = vand.u32 4294901760, %v4333_v19 }
 0x242   :  { %9165 = vmatprep.subr.mxu1 %v10397_v14  ;;  %v4294_v57 = vand.u32 4294901760, %v4293_v17 }
 0x243   :  { %9079 = vmatmul.mubr.f32.gmra.mxu0 %v10407_v40  ;;  %9115 = vmatmul.mubr.f32.gmra.mxu1 %v10469_v48  ;;  %v1304_v58 = vpop.f32.mrf.mxu1  ;;  %v8763_v21 = vpop.f32.mrf.mxu0  ;;  %v4343_v61 = vsub.f32 %v10530_v6, %v4342_v31 }
 0x244   :  { %9097 = vmatprep.mubr.f32.mxu0 %v4274_v27  ;;  %9117 = vmatprep.mubr.f32.mxu1 %v10476_v42  ;;  %v1299_v16 = vadd.f32 %v8777_v50, %v8763_v21 }
 0x245   :  { %v1146_v40 = vpop.f32.mrf.mxu0  ;;  %v4344_v50 = vand.u32 4294901760, %v4343_v61 }
 0x246   :  { %v10535_v43 = vadd.f32 %v1292_v47, %v1146_v40 }
 0x247   :  { %v8783_v52 = vpop.f32.mrf.mxu1  ;;  %9098 = vmatmul.mubr.f32.vlgmr.msra.gmra.mxu0 %v4284_v2  ;;  %9118 = vmatmul.mubr.f32.gmra.mxu1 %v10485_v30 }
 0x248   :  { %9124 = vmatpush3.msra.mxu0 %v10414_v63  ;;  %9100 = vmatprep.mubr.f32.mxu0 %v4294_v57 }
 0x249   :  { %9120 = vmatprep.mubr.f32.mxu1 %v10494_v1  ;;  %v1316_v28 = vpop.f32.mrf.mxu1  ;;  %9151 = vmatprep.subr.mxu0 %v10423_v60  ;;  %v8766_v7 = vpop.f32.mrf.mxu0 }
 0x24a   :  { %v1311_v41 = vadd.f32 %v8780_v33, %v8766_v7 }
 0x24b   :  { %v8786_v32 = vpop.f32.mrf.mxu1  ;;  %9101 = vmatmul.mubr.f32.gmra.mxu0 %v4304_v10  ;;  %9121 = vmatmul.mubr.f32.gmra.mxu1 %v10509_v8  ;;  %v1166_v63 = vpop.f32.mrf.mxu0 }
 0x24c   :  { %9103 = vmatprep.mubr.f32.mxu0 %v4314_v54  ;;  %9139 = vmatprep.mubr.f32.mxu1 %v4272_v37  ;;  %v10546_v39 = vadd.f32 %v1304_v58, %v1166_v63 }
 0x24d   :  { %v1328_v55 = vpop.f32.mrf.mxu1 }
 0x24f   :  { %v8769_v23 = vpop.f32.mrf.mxu0  ;;  %v8805_v25 = vpop.f32.mrf.mxu1  ;;  %9104 = vmatmul.mubr.f32.gmra.mxu0 %v4324_v44  ;;  %9140 = vmatmul.mubr.f32.vlgmr.msra.gmra.mxu1 %v4282_v35 }
 0x250   :  { %v1323_v38 = vadd.f32 %v8783_v52, %v8769_v23  ;;  %9106 = vmatprep.mubr.f32.mxu0 %v4334_v0  ;;  %9142 = vmatprep.mubr.f32.mxu1 %v4292_v3 }
 0x251   :  { %v1186_v37 = vpop.f32.mrf.mxu0  ;;  %v10553_v29 = vpop.f32.mrf.mxu1  ;;  %9166 = vmatpush3.msra.mxu1 %v10397_v14 }
 0x252   :  { %v10556_v47 = vadd.f32 %v1316_v28, %v1186_v37 }
 0x253   :  { %v8772_v51 = vpop.f32.mrf.mxu0  ;;  %v8808_v56 = vpop.f32.mrf.mxu1  ;;  %9107 = vmatmul.mubr.f32.gmra.mxu0 %v4344_v50  ;;  %9143 = vmatmul.mubr.f32.gmra.mxu1 %v4302_v5 }
 0x254   :  { %v1335_v35 = vadd.f32 %v8786_v32, %v8772_v51  ;;  %9125 = vmatprep.mubr.f32.mxu0 %v10458_v62  ;;  %9145 = vmatprep.mubr.f32.mxu1 %v4312_v15 }
 0x255   :  { %v1206_v53 = vpop.f32.mrf.mxu0  ;;  %v10561_v3 = vpop.f32.mrf.mxu1 }
 0x256   :  { %v10563_v33 = vadd.f32 %v1328_v55, %v1206_v53 }
 0x257   :  { %v8791_v27 = vpop.f32.mrf.mxu0  ;;  %v8811_v17 = vpop.f32.mrf.mxu1  ;;  %9126 = vmatmul.mubr.f32.vlgmr.msra.gmra.mxu0 %v10466_v20  ;;  %9146 = vmatmul.mubr.f32.gmra.mxu1 %v4322_v13 }
 0x258   :  { %v1416_v14 = vadd.f32 %v8791_v27, %v1299_v16  ;;  %9152 = vmatpush3.msra.mxu0 %v10423_v60  ;;  %9128 = vmatprep.mubr.f32.mxu0 %v10473_v36 }
 0x259   :  { %9148 = vmatprep.mubr.f32.mxu1 %v4332_v24  ;;  %v10568_v5 = vpop.f32.mrf.mxu0  ;;  %v10570_v62 = vpop.f32.mrf.mxu1 }
 0x25a   :  { %v1540_v15 = vadd.f32 %v8805_v25, %v1416_v14 }
 0x25b   :  { %v8794_v58 = vpop.f32.mrf.mxu0  ;;  %v8814_v21 = vpop.f32.mrf.mxu1  ;;  %9129 = vmatmul.mubr.f32.gmra.mxu0 %v10489_v26  ;;  %9149 = vmatmul.mubr.f32.gmra.mxu1 %v4342_v31 }
 0x25c   :  { %v1430_v2 = vadd.f32 %v8794_v58, %v1311_v41  ;;  %9131 = vmatprep.mubr.f32.mxu0 %v10498_v49  ;;  %9167 = vmatprep.mubr.f32.mxu1 %v10445_v59 }
 0x25d   :  { %v10575_v20 = vpop.f32.mrf.mxu0  ;;  %v10577_v60 = vpop.f32.mrf.mxu1 }
 0x25e   :  { %v1556_v36 = vadd.f32 %v8808_v56, %v1430_v2 }
 0x25f   :  { %v8797_v16 = vpop.f32.mrf.mxu0  ;;  %v8833_v22 = vpop.f32.mrf.mxu1  ;;  %9132 = vmatmul.mubr.f32.gmra.mxu0 %v10512_v18  ;;  %9168 = vmatmul.mubr.f32.vlgmr.msra.gmra.mxu1 %v10452_v46 }
 0x260   :  { %v1444_v13 = vadd.f32 %v8797_v16, %v1323_v38  ;;  %9134 = vmatprep.mubr.f32.mxu0 %v10519_v45  ;;  %9170 = vmatprep.mubr.f32.mxu1 %v10454_v12 }
 0x261   :  { %v10583_v26 = vpop.f32.mrf.mxu0  ;;  %v10585_v49 = vpop.f32.mrf.mxu1 }
 0x262   :  { %v1572_v57 = vadd.f32 %v8811_v17, %v1444_v13 }
 0x263   :  { %v8800_v40 = vpop.f32.mrf.mxu0  ;;  %v8836_v9 = vpop.f32.mrf.mxu1  ;;  %9135 = vmatmul.mubr.f32.gmra.mxu0 %v10530_v6  ;;  %9171 = vmatmul.mubr.f32.gmra.mxu1 %v10469_v48 }
 0x264   :  { %v1458_v24 = vadd.f32 %v8800_v40, %v1335_v35  ;;  %9153 = vmatprep.mubr.f32.mxu0 %v10445_v59  ;;  %9173 = vmatprep.mubr.f32.mxu1 %v10476_v42 }
 0x265   :  { %v10591_v18 = vpop.f32.mrf.mxu0  ;;  %v10593_v45 = vpop.f32.mrf.mxu1 }
 0x266   :  { %v1588_v52 = vadd.f32 %v8814_v21, %v1458_v24 }
 0x267   :  { %v8819_v28 = vpop.f32.mrf.mxu0  ;;  %v8839_v10 = vpop.f32.mrf.mxu1  ;;  %9154 = vmatmul.mubr.f32.vlgmr.msra.gmra.mxu0 %v10452_v46  ;;  %9174 = vmatmul.mubr.f32.gmra.mxu1 %v10485_v30 }
 0x268   :  { %v1668_v11 = vadd.f32 %v8819_v28, %v1540_v15  ;;  %9156 = vmatprep.mubr.f32.mxu0 %v10454_v12  ;;  %9176 = vmatprep.mubr.f32.mxu1 %v10494_v1 }
 0x269   :  { %v10599_v6 = vpop.f32.mrf.mxu0  ;;  %v10601_v59 = vpop.f32.mrf.mxu1 }
 0x26a   :  { %v1782_v31 = vadd.f32 %v8833_v22, %v1668_v11 }
 0x26b   :  { %v8822_v7 = vpop.f32.mrf.mxu0  ;;  %v8842_v54 = vpop.f32.mrf.mxu1  ;;  %9157 = vmatmul.mubr.f32.gmra.mxu0 %v10469_v48  ;;  %9177 = vmatmul.mubr.f32.gmra.mxu1 %v10509_v8 }
 0x26c   :  { %v1680_v19 = vadd.f32 %v8822_v7, %v1556_v36  ;;  %9159 = vmatprep.mubr.f32.mxu0 %v10476_v42 }
 0x26d   :  { %v10606_v46 = vpop.f32.mrf.mxu0  ;;  %v10608_v41 = vpop.f32.mrf.mxu1 }
 0x26e   :  { %v1794_v12 = vadd.f32 %v8836_v9, %v1680_v19 }
 0x26f   :  { %v8825_v32 = vpop.f32.mrf.mxu0  ;;  %v8861_v63 = vpop.f32.mrf.mxu1  ;;  %9160 = vmatmul.mubr.f32.gmra.mxu0 %v10485_v30 }
 0x270   :  { %v1692_v55 = vadd.f32 %v8825_v32, %v1572_v57  ;;  %9162 = vmatprep.mubr.f32.mxu0 %v10494_v1 }
 0x271   :  { %v10612_v44 = vpop.f32.mrf.mxu0  ;;  %v10614_v48 = vpop.f32.mrf.mxu1 }
 0x272   :  { %11489 = vst [vmem:[#allocation12_spill] sm:$0xff] %v10614_v48  ;;  %v1806_v61 = vadd.f32 %v8839_v10, %v1692_v55 }
 0x273   :  { %v8828_v0 = vpop.f32.mrf.mxu0  ;;  %v8864_v23 = vpop.f32.mrf.mxu1  ;;  %9163 = vmatmul.mubr.f32.gmra.mxu0 %v10509_v8 }
 0x274   :  { %v1704_v42 = vadd.f32 %v8828_v0, %v1588_v52 }
 0x275   :  { %v10617_v25 = vpop.f32.mrf.mxu0  ;;  %v10619_v38 = vpop.f32.mrf.mxu1 }
 0x276   :  { %11490 = vst [vmem:[#allocation13_spill] sm:$0xff] %v10619_v38  ;;  %v1818_v37 = vadd.f32 %v8842_v54, %v1704_v42 }
 0x277   :  { %v8847_v50 = vpop.f32.mrf.mxu0  ;;  %v8867_v30 = vpop.f32.mrf.mxu1 }
 0x278   :  { %v1928_v51 = vadd.f32 %v8847_v50, %v1782_v31 }
 0x279   :  { %v10621_v56 = vpop.f32.mrf.mxu0  ;;  %v10623_v1 = vpop.f32.mrf.mxu1 }
 0x27a   :  { %v2070_v35 = vadd.f32 %v8861_v63, %v1928_v51 }
 0x27b   :  { %v8850_v53 = vpop.f32.mrf.mxu0  ;;  %v8870_v27 = vpop.f32.mrf.mxu1 }
 0x27c   :  { %v1948_v17 = vadd.f32 %v8850_v53, %v1794_v12 }
 0x27d   :  { %v10625_v14 = vpop.f32.mrf.mxu0  ;;  %v10627_v8 = vpop.f32.mrf.mxu1 }
 0x27e   :  { %11491 = vst [vmem:[#allocation14_spill] sm:$0xff] %v10625_v14  ;;  %v2082_v15 = vadd.f32 %v8864_v23, %v1948_v17 }
 0x27f   :  { %v8853_v58 = vpop.f32.mrf.mxu0  ;;  %v8889_v21 = vpop.f32.mrf.mxu1 }
 0x280   :  { %v1968_v2 = vadd.f32 %v8853_v58, %v1806_v61 }
 0x281   :  { %v10629_v36 = vpop.f32.mrf.mxu0  ;;  %v10631_v16 = vpop.f32.mrf.mxu1 }
 0x282   :  { %11492 = vst [vmem:[#allocation15_spill] sm:$0xff] %v10631_v16  ;;  %v2094_v22 = vadd.f32 %v8867_v30, %v1968_v2 }
 0x283   :  { %v8856_v13 = vpop.f32.mrf.mxu0  ;;  %v8892_v57 = vpop.f32.mrf.mxu1 }
 0x284   :  { %v1988_v40 = vadd.f32 %v8856_v13, %v1818_v37 }
 0x285   :  { %v10633_v9 = vpop.f32.mrf.mxu0  ;;  %v10635_v24 = vpop.f32.mrf.mxu1 }
 0x286   :  { %11493 = vst [vmem:[#allocation16_spill] sm:$0xff] %v10635_v24  ;;  %v2106_v52 = vadd.f32 %v8870_v27, %v1988_v40 }
 0x287   :  { %v8875_v28 = vpop.f32.mrf.mxu0  ;;  %v8895_v10 = vpop.f32.mrf.mxu1 }
 0x288   :  { %v2187_v11 = vadd.f32 %v8875_v28, %v2070_v35 }
 0x289   :  { %v10637_v31 = vpop.f32.mrf.mxu0  ;;  %v10639_v7 = vpop.f32.mrf.mxu1 }
 0x28a   :  { %11494 = vst [vmem:[#allocation17_spill] sm:$0xff] %v10637_v31  ;;  %v2311_v54 = vadd.f32 %v8889_v21, %v2187_v11 }
 0x28b   :  { %v8878_v19 = vpop.f32.mrf.mxu0  ;;  %v8898_v12 = vpop.f32.mrf.mxu1 }
 0x28c   :  { %v2201_v32 = vadd.f32 %v8878_v19, %v2082_v15 }
 0x28d   :  { %v10641_v63 = vpop.f32.mrf.mxu0  ;;  %v10643_v55 = vpop.f32.mrf.mxu1 }
 0x28e   :  { %11495 = vst [vmem:[#allocation18_spill] sm:$0xff] %v10641_v63  ;;  %v2327_v61 = vadd.f32 %v8892_v57, %v2201_v32  ;;  %v1437_v63 = vadd.f32 %v10583_v26, %v10556_v47 }
 0x28f   :  { %v8881_v0 = vpop.f32.mrf.mxu0  ;;  %v8917_v23 = vpop.f32.mrf.mxu1 }
 0x290   :  { %v2215_v42 = vadd.f32 %v8881_v0, %v2094_v22 }
 0x291   :  { %v10645_v37 = vpop.f32.mrf.mxu0  ;;  %v10647_v50 = vpop.f32.mrf.mxu1 }
 0x292   :  { %11496 = vst [vmem:[#allocation19_spill] sm:$0xff] %v10647_v50  ;;  %v2343_v30 = vadd.f32 %v8895_v10, %v2215_v42 }
 0x293   :  { %v8884_v51 = vpop.f32.mrf.mxu0  ;;  %v8920_v35 = vpop.f32.mrf.mxu1 }
 0x294   :  { %v2229_v53 = vadd.f32 %v8884_v51, %v2106_v52 }
 0x295   :  { %v10649_v27 = vpop.f32.mrf.mxu0  ;;  %v10651_v17 = vpop.f32.mrf.mxu1 }
 0x296   :  { %11497 = vst [vmem:[#allocation20_spill] sm:$0xff] %v10651_v17  ;;  %v2359_v15 = vadd.f32 %v8898_v12, %v2229_v53 }
 0x297   :  { %v8903_v58 = vpop.f32.mrf.mxu0  ;;  %v8923_v21 = vpop.f32.mrf.mxu1 }
 0x298   :  { %v2439_v2 = vadd.f32 %v8903_v58, %v2311_v54 }
 0x299   :  { %v10653_v13 = vpop.f32.mrf.mxu0  ;;  %v10655_v57 = vpop.f32.mrf.mxu1 }
 0x29a   :  { %11498 = vst [vmem:[#allocation21_spill] sm:$0xff] %v10653_v13  ;;  %v10657_v22 = vadd.f32 %v8917_v23, %v2439_v2 }
 0x29b   :  { %v8906_v40 = vpop.f32.mrf.mxu0  ;;  %v8926_v28 = vpop.f32.mrf.mxu1 }
 0x29c   :  { %v2451_v10 = vadd.f32 %v8906_v40, %v2327_v61 }
 0x29d   :  { %v10659_v11 = vpop.f32.mrf.mxu0  ;;  %v10661_v52 = vpop.f32.mrf.mxu1 }
 0x29e   :  { %11499 = vst [vmem:[#allocation22_spill] sm:$0xff] %v10659_v11  ;;  %v10663_v19 = vadd.f32 %v8920_v35, %v2451_v10 }
 0x29f   :  { %v8909_v32 = vpop.f32.mrf.mxu0  ;;  %v8945_v12 = vpop.f32.mrf.mxu1 }
 0x2a0   :  { %v2463_v0 = vadd.f32 %v8909_v32, %v2343_v30 }
 0x2a1   :  { %v10665_v42 = vpop.f32.mrf.mxu0  ;;  %v10667_v54 = vpop.f32.mrf.mxu1 }
 0x2a2   :  { %v10669_v51 = vadd.f32 %v8923_v21, %v2463_v0 }
 0x2a3   :  { %v8912_v23 = vpop.f32.mrf.mxu0  ;;  %v8948_v53 = vpop.f32.mrf.mxu1 }
 0x2a4   :  { %v2475_v58 = vadd.f32 %v8912_v23, %v2359_v15  ;;  %v11502_v15 = vmov 0.0  }
 0x2a5   :  { %v10671_v2 = vpop.f32.mrf.mxu0  ;;  %v10673_v61 = vpop.f32.mrf.mxu1  ;;  %5104 = vst.msk [vmem:[#allocation4] sm:$0xff] %vm4959_vm2, %v11502_v15  ;;  %5105 = vst.msk [vmem:[#allocation4 + $0x8] sm:$0xff] %vm4959_vm2, %v11502_v15 }
 0x2a6   :  { %11500 = vst [vmem:[#allocation23_spill] sm:$0xff] %v10673_v61  ;;  %v10675_v40 = vadd.f32 %v8926_v28, %v2475_v58  ;;  %5108 = vst.msk [vmem:[#allocation4 + $0x18] sm:$0xff] %vm4959_vm2, %v11502_v15 }
 0x2a7   :  { %v8931_v35 = vpop.f32.mrf.mxu0  ;;  %v8951_v10 = vpop.f32.mrf.mxu1  ;;  %5109 = vst.msk [vmem:[#allocation4 + $0x20] sm:$0xff] %vm4959_vm2, %v11502_v15 }
 0x2a8   :  { %v2851_v4 = vadd.f32 %v8945_v12, %v8931_v35 }
 0x2a9   :  { %v10677_v34 = vpop.f32.mrf.mxu0  ;;  %v2868_v30 = vpop.f32.mrf.mxu1 }
 0x2ab   :  { %v8934_v32 = vpop.f32.mrf.mxu0  ;;  %v8954_v17 = vpop.f32.mrf.mxu1 }
 0x2ac   :  { %v2863_v11 = vadd.f32 %v8948_v53, %v8934_v32 }
 0x2ad   :  { %v10679_v21 = vpop.f32.mrf.mxu0  ;;  %v10681_v0 = vpop.f32.mrf.mxu1 }
 0x2ae   :  { %11501 = vst [vmem:[#allocation24_spill] sm:$0xff] %v10679_v21 }
 0x2af   :  { %v8937_v28 = vpop.f32.mrf.mxu0  ;;  %v8973_v12 = vpop.f32.mrf.mxu1 }
 0x2b0   :  { %v2875_v23 = vadd.f32 %v8951_v10, %v8937_v28  ;;  %v1451_v10 = vadd.f32 %v10591_v18, %v10563_v33  ;;  %v1564_v28 = vadd.f32 %v10570_v62, %v1437_v63 }
 0x2b1   :  { %v2738_v53 = vpop.f32.mrf.mxu0  ;;  %v10691_v58 = vpop.f32.mrf.mxu1 }
 0x2b2   :  { %11503 = vst [vmem:[#allocation25_spill] sm:$0xff] %v10691_v58 }
 0x2b3   :  { %v8940_v35 = vpop.f32.mrf.mxu0  ;;  %v8976_v32 = vpop.f32.mrf.mxu1 }
 0x2b4   :  { %v2887_v24 = vadd.f32 %v8954_v17, %v8940_v35 }
 0x2b5   :  { %v2758_v50 = vpop.f32.mrf.mxu0  ;;  %v10693_v13 = vpop.f32.mrf.mxu1 }
 0x2b6   :  { %11504 = vst [vmem:[#allocation26_spill] sm:$0xff] %v10693_v13  ;;  %v1686_v13 = vadd.f32 %v10612_v44, %v1564_v28 }
 0x2b7   :  { %v8959_v16 = vpop.f32.mrf.mxu0  ;;  %v8979_v38 = vpop.f32.mrf.mxu1 }
 0x2b8   :  { %v2968_v61 = vadd.f32 %v8959_v16, %v2851_v4  ;;  %v1580_v4 = vadd.f32 %v10577_v60, %v1451_v10  ;;  %v1800_v33 = vadd.f32 %v10601_v59, %v1686_v13 }
 0x2b9   :  { %v10697_v21 = vpop.f32.mrf.mxu0  ;;  %v3115_v15 = vpop.f32.mrf.mxu1 }
 0x2ba   :  { %11505 = vst [vmem:[#allocation27_spill] sm:$0xff] %v10697_v21  ;;  %v3092_v31 = vadd.f32 %v8973_v12, %v2968_v61  ;;  %v1698_v61 = vadd.f32 %v10617_v25, %v1580_v4  ;;  %v2869_v4 = vadd.f32 %v2868_v30, %v2738_v53 }
 0x2bb   :  { %v8962_v58 = vpop.f32.mrf.mxu0  ;;  %v8982_v17 = vpop.f32.mrf.mxu1 }
 0x2bc   :  { %v2982_v35 = vadd.f32 %v8962_v58, %v2863_v11  ;;  %v1958_v11 = vadd.f32 %v10629_v36, %v1800_v33 }
 0x2bd   :  { %v10703_v14 = vpop.f32.mrf.mxu0  ;;  %v3131_v47 = vpop.f32.mrf.mxu1 }
 0x2be   :  { %v3108_v26 = vadd.f32 %v8976_v32, %v2982_v35  ;;  %v1812_v32 = vadd.f32 %v10608_v41, %v1698_v61  ;;  %v2088_v25 = vadd.f32 %v10623_v1, %v1958_v11 }
 0x2bf   :  { %v8965_v16 = vpop.f32.mrf.mxu0  ;;  %v9001_v21 = vpop.f32.mrf.mxu1 }
 0x2c0   :  { %v2996_v48 = vadd.f32 %v8965_v16, %v2875_v23  ;;  %v1978_v23 = vadd.f32 %v10633_v9, %v1812_v32 }
 0x2c1   :  { %v2988_v18 = vpop.f32.mrf.mxu0  ;;  %v10708_v62 = vpop.f32.mrf.mxu1 }
 0x2c2   :  { %v3124_v63 = vadd.f32 %v8979_v38, %v2996_v48  ;;  %v2208_v48 = vadd.f32 %v10645_v37, %v2088_v25  ;;  %v2100_v41 = vadd.f32 %v10627_v8, %v1978_v23  ;;  %v2989_v33 = vadd.f32 %v2988_v18, %v2869_v4 }
 0x2c3   :  { %v8968_v44 = vpop.f32.mrf.mxu0  ;;  %v9004_v12 = vpop.f32.mrf.mxu1 }
 0x2c4   :  { %v3010_v58 = vadd.f32 %v8968_v44, %v2887_v24  ;;  %v2222_v1 = vadd.f32 %v10649_v27, %v2100_v41  ;;  %v2881_v44 = vadd.f32 %v10681_v0, %v2758_v50 }
 0x2c5   :  { %v3002_v28 = vpop.f32.mrf.mxu0  ;;  %v10712_v60 = vpop.f32.mrf.mxu1 }
 0x2c6   :  { %v3140_v10 = vadd.f32 %v8982_v17, %v3010_v58  ;;  %v3003_v58 = vadd.f32 %v3002_v28, %v2881_v44  ;;  %v2351_v27 = vadd.f32 %v10643_v55, %v2222_v1 }
 0x2c7   :  { %v8987_v59 = vpop.f32.mrf.mxu0  ;;  %v9007_v13 = vpop.f32.mrf.mxu1 }
 0x2c8   :  { %v3220_v35 = vadd.f32 %v8987_v59, %v3092_v31  ;;  %v2335_v31 = vadd.f32 %v10639_v7, %v2208_v48  ;;  %v2469_v50 = vadd.f32 %v10671_v2, %v2351_v27 }
 0x2c9   :  { %v10717_v38 = vpop.f32.mrf.mxu0  ;;  %v3351_v36 = vpop.f32.mrf.mxu1 }
 0x2ca   :  { %v3334_v24 = vadd.f32 %v9001_v21, %v3220_v35  ;;  %v2457_v21 = vadd.f32 %v10665_v42, %v2335_v31  ;;  %v3132_v35 = vadd.f32 %v3131_v47, %v3003_v58 }
 0x2cb   :  { %v8990_v16 = vpop.f32.mrf.mxu0  ;;  %v9010_v61 = vpop.f32.mrf.mxu1 }
 0x2cc   :  { %v10721_v17 = vadd.f32 %v3334_v24, %v10657_v22  ;;  %v3232_v9 = vadd.f32 %v8990_v16, %v3108_v26  ;;  %v3116_v26 = vadd.f32 %v3115_v15, %v2989_v33  ;;  %v2571_v59 = vadd.f32 %v10655_v57, %v2457_v21 }
 0x2cd   :  { %v10725_v11 = vpop.f32.mrf.mxu0  ;;  %v3363_v37 = vpop.f32.mrf.mxu1  ;;  %v2583_v57 = vadd.f32 %v10661_v52, %v2469_v50  ;;  %v2845_v50 = vadd.f32 %v10667_v54, %v10677_v34  ;;  %v11510_v34 = vld [vmem:[#allocation24_spill] sm:$0xff]  ;;  %v11511_v54 = vld [vmem:[#allocation23_spill] sm:$0xff] }
 0x2ce   :  { %v3346_v30 = vadd.f32 %v9004_v12, %v3232_v9 }
 0x2cf   :  { %v8993_v8 = vpop.f32.mrf.mxu0  ;;  %v9029_v53 = vpop.f32.mrf.mxu1 }
 0x2d0   :  { %v10730_v18 = vadd.f32 %v3346_v30, %v10663_v19  ;;  %v3244_v22 = vadd.f32 %v8993_v8, %v3124_v63  ;;  %v1423_v8 = vadd.f32 %v10575_v20, %v10546_v39 }
 0x2d1   :  { %v3237_v32 = vpop.f32.mrf.mxu0  ;;  %v3633_v7 = vpop.f32.mrf.mxu1 }
 0x2d2   :  { %v3358_v23 = vadd.f32 %v9007_v13, %v3244_v22  ;;  %v3238_v25 = vadd.f32 %v3237_v32, %v3116_v26 }
 0x2d3   :  { %v8996_v0 = vpop.f32.mrf.mxu0  ;;  %v9032_v42 = vpop.f32.mrf.mxu1 }
 0x2d4   :  { %v10736_v12 = vadd.f32 %v3358_v23, %v10669_v51  ;;  %v3352_v28 = vadd.f32 %v3351_v36, %v3238_v25  ;;  %v3256_v19 = vadd.f32 %v8996_v0, %v3140_v10  ;;  %v1409_v10 = vadd.f32 %v10568_v5, %v10535_v43 }
 0x2d5   :  { %v3249_v63 = vpop.f32.mrf.mxu0  ;;  %v3645_v15 = vpop.f32.mrf.mxu1 }
 0x2d6   :  { %v10738_v48 = vadd.f32 %v3352_v28, %v2571_v59  ;;  %v3370_v55 = vadd.f32 %v9010_v61, %v3256_v19  ;;  %v3250_v4 = vadd.f32 %v3249_v63, %v3132_v35  ;;  %v1532_v52 = vadd.f32 %v10553_v29, %v1409_v10  ;;  %v11507_v19 = vld [vmem:[#allocation27_spill] sm:$0xff]  ;;  %v11513_v10 = vld [vmem:[#allocation13_spill] sm:$0xff] }
 0x2d7   :  { %v9015_v13 = vpop.f32.mrf.mxu0  ;;  %v9035_v24 = vpop.f32.mrf.mxu1  ;;  %v1548_v29 = vadd.f32 %v10561_v3, %v1423_v8  ;;  %v2961_v35 = vadd.f32 %v11507_v19, %v2845_v50  ;;  %v8300_v50 = vld [vmem:[%s11477_s7 + $0x10] sm:$0xff] }
 0x2d8   :  { %v10742_v2 = vadd.f32 %v3370_v55, %v10675_v40  ;;  %v3364_v41 = vadd.f32 %v3363_v37, %v3250_v4  ;;  %v3640_v16 = vadd.f32 %v9029_v53, %v9015_v13  ;;  %v1662_v53 = vadd.f32 %v10599_v6, %v1532_v52  ;;  %v11509_v55 = vld [vmem:[#allocation17_spill] sm:$0xff] }
 0x2d9   :  { %v3487_v51 = vpop.f32.mrf.mxu0  ;;  %v3657_v33 = vpop.f32.mrf.mxu1  ;;  %v1674_v20 = vadd.f32 %v10606_v46, %v1548_v29  ;;  %v11508_v46 = vld [vmem:[#allocation14_spill] sm:$0xff]  ;;  %v11516_v29 = vld [vmem:[#allocation21_spill] sm:$0xff] }
 0x2da   :  { %v10744_v36 = vadd.f32 %v3364_v41, %v2583_v57  ;;  %v3634_v47 = vadd.f32 %v3633_v7, %v3487_v51  ;;  %v1776_v32 = vadd.f32 %v10585_v49, %v1662_v53  ;;  %v11506_v49 = vld [vmem:[#allocation12_spill] sm:$0xff]  ;;  %v2857_v57 = vadd.f32 %v11511_v54, %v11510_v34  ;;  %v11512_v41 = vld [vmem:[#allocation25_spill] sm:$0xff] }
 0x2db   :  { %v9018_v9 = vpop.f32.mrf.mxu0  ;;  %v9038_v61 = vpop.f32.mrf.mxu1  ;;  %v1788_v3 = vadd.f32 %v10593_v45, %v1674_v20  ;;  %v3084_v51 = vadd.f32 %v11512_v41, %v2961_v35 }
 0x2dc   :  { %v3652_v1 = vadd.f32 %v9032_v42, %v9018_v9  ;;  %v1918_v6 = vadd.f32 %v10621_v56, %v1776_v32 }
 0x2dd   :  { %v3507_v31 = vpop.f32.mrf.mxu0  ;;  %v3669_v44 = vpop.f32.mrf.mxu1  ;;  %v1938_v56 = vadd.f32 %v11508_v46, %v1788_v3  ;;  %v3214_v52 = vadd.f32 %v10717_v38, %v3084_v51  ;;  %v10804_v38 = vand.u32 4294901760, %v8300_v50 }
 0x2de   :  { %v10748_v30 = vadd.f32 %v3645_v15, %v3507_v31  ;;  %v2064_v28 = vadd.f32 %v11506_v49, %v1918_v6  ;;  %v8301_v6 = vld [vmem:[%s11477_s7 + $0x18] sm:$0xff] }
 0x2df   :  { %v9021_v40 = vpop.f32.mrf.mxu0  ;;  %v9057_v37 = vpop.f32.mrf.mxu1  ;;  %v2076_v9 = vadd.f32 %v11513_v10, %v1938_v56  ;;  %v10802_v3 = vand.u32 4294901760, %v8301_v6  ;;  %v11521_v10 = vld [vmem:[#allocation22_spill] sm:$0xff] }
 0x2e0   :  { %v10751_v21 = vadd.f32 %v9035_v24, %v9021_v40  ;;  %v2180_v4 = vadd.f32 %v11509_v55, %v2064_v28  ;;  %v10813_v55 = vsub.f32 %v8300_v50, %v10804_v38  ;;  %v11522_v50 = vmov 0.0  }
 0x2e1   :  { %v3527_v58 = vpop.f32.mrf.mxu0  ;;  %v10756_v43 = vpop.f32.mrf.mxu1  ;;  %9179 = vmatprep.subr.mxu0 %v10802_v3  ;;  %v10810_v56 = vsub.f32 %v8301_v6, %v10802_v3  ;;  %5107 = vst.msk [vmem:[#allocation4 + $0x10] sm:$0xf] %vm5106_vm5, %v11522_v50  ;;  %5110 = vst.msk [vmem:[#allocation4 + $0x28] sm:$0xf] %vm5106_vm5, %v11522_v50 }
 0x2e2   :  { %v10758_v5 = vadd.f32 %v3657_v33, %v3527_v58  ;;  %v11515_v58 = vld [vmem:[#allocation18_spill] sm:$0xff]  ;;  %9180 = vmatpush3.msra.mxu0 %v10802_v3  ;;  %v10825_v51 = vand.u32 4294901760, %v10813_v55 }
 0x2e3   :  { %v9024_v22 = vpop.f32.mrf.mxu0  ;;  %v10760_v26 = vpop.f32.mrf.mxu1  ;;  %v10822_v41 = vand.u32 4294901760, %v10810_v56  ;;  %9181 = vmatprep.subr.mxu0 %v10804_v38 }
 0x2e4   :  { %v10762_v27 = vadd.f32 %v9038_v61, %v9024_v22  ;;  %v11514_v61 = vld [vmem:[#allocation15_spill] sm:$0xff]  ;;  %v2194_v22 = vadd.f32 %v11515_v58, %v2076_v9  ;;  %11520 = vst [vmem:[#allocation12_spill] sm:$0xff] %v10825_v51  ;;  %9182 = vmatpush3.msra.mxu0 %v10804_v38 }
 0x2e5   :  { %v3547_v7 = vpop.f32.mrf.mxu0  ;;  %v10766_v23 = vpop.f32.mrf.mxu1  ;;  %v2303_v31 = vadd.f32 %v11514_v61, %v2180_v4  ;;  %v11519_v4 = vld [vmem:[#allocation16_spill] sm:$0xff]  ;;  %9199 = vmatprep.subr.mxu0 %v10810_v56 }
 0x2e6   :  { %v10768_v39 = vadd.f32 %v3669_v44, %v3547_v7  ;;  %v2975_v44 = vadd.f32 %v10703_v14, %v2857_v57  ;;  %v2319_v34 = vadd.f32 %v11519_v4, %v2194_v22 }
 0x2e7   :  { %v9043_v25 = vpop.f32.mrf.mxu0  ;;  %v10772_v59 = vpop.f32.mrf.mxu1  ;;  %v2433_v32 = vadd.f32 %v11516_v29, %v2303_v31 }
 0x2e8   :  { %v3757_v53 = vadd.f32 %v9043_v25, %v3640_v16  ;;  %v3328_v16 = vadd.f32 %v10708_v62, %v3214_v52  ;;  %v11517_v25 = vld [vmem:[#allocation26_spill] sm:$0xff]  ;;  %v2445_v9 = vadd.f32 %v11521_v10, %v2319_v34  ;;  %v5279_v52 = vsub.f32 %v10810_v56, %v10822_v41 }
 0x2e9   :  { %v3749_v0 = vpop.f32.mrf.mxu0  ;;  %v10776_v42 = vpop.f32.mrf.mxu1  ;;  %v3100_v49 = vadd.f32 %v11517_v25, %v2975_v44 }
 0x2ea   :  { %v3750_v14 = vadd.f32 %v3749_v0, %v3634_v47  ;;  %v3881_v46 = vadd.f32 %v9057_v37, %v3757_v53  ;;  %v11518_v47 = vld [vmem:[#allocation19_spill] sm:$0xff]  ;;  %v5286_v53 = vsub.f32 %v10813_v55, %v10825_v51  ;;  %v5280_v6 = vand.u32 4294901760, %v5279_v52 }
 0x2eb   :  { %v9046_v63 = vpop.f32.mrf.mxu0  ;;  %v10781_v15 = vpop.f32.mrf.mxu1  ;;  %v2547_v0 = vadd.f32 %v11518_v47, %v2433_v32  ;;  %v3226_v62 = vadd.f32 %v10725_v11, %v3100_v49 }
 0x2ec   :  { %v3771_v28 = vadd.f32 %v9046_v63, %v3652_v1  ;;  %v3873_v57 = vadd.f32 %v10756_v43, %v3750_v14  ;;  %v11523_v14 = vld [vmem:[#allocation20_spill] sm:$0xff]  ;;  %9189 = vmatprep.subr.mxu1 %v5280_v6 }
 0x2ed   :  { %v3763_v13 = vpop.f32.mrf.mxu0  ;;  %v10785_v24 = vpop.f32.mrf.mxu1  ;;  %v3373_v11 = vadd.f32 %v3328_v16, %v2547_v0  ;;  %v3340_v58 = vadd.f32 %v10712_v60, %v3226_v62  ;;  %v2559_v16 = vadd.f32 %v11523_v14, %v2445_v9  ;;  %9190 = vmatpush3.msra.mxu1 %v5280_v6 }
 0x2ee   :  { %v3764_v54 = vadd.f32 %v3763_v13, %v10748_v30  ;;  %v3897_v31 = vadd.f32 %v10760_v26, %v3771_v28 }
 0x2ef   :  { %v9049_v45 = vpop.f32.mrf.mxu0  ;;  %v9085_v33 = vpop.f32.mrf.mxu1 }
 0x2f0   :  { %v3785_v30 = vadd.f32 %v9049_v45, %v10751_v21  ;;  %v3889_v26 = vadd.f32 %v10766_v23, %v3764_v54 }
 0x2f1   :  { %v3777_v40 = vpop.f32.mrf.mxu0  ;;  %v4116_v8 = vpop.f32.mrf.mxu1 }
 0x2f2   :  { %v3778_v21 = vadd.f32 %v3777_v40, %v10758_v5  ;;  %v3913_v5 = vadd.f32 %v10772_v59, %v3785_v30  ;;  %v5287_v40 = vand.u32 4294901760, %v5286_v53 }
 0x2f3   :  { %v9052_v7 = vpop.f32.mrf.mxu0  ;;  %v9088_v20 = vpop.f32.mrf.mxu1 }
 0x2f4   :  { %v3799_v23 = vadd.f32 %v9052_v7, %v10762_v27  ;;  %v3905_v0 = vadd.f32 %v10776_v42, %v3778_v21  ;;  %9191 = vmatprep.subr.mxu1 %v5287_v40 }
 0x2f5   :  { %v3791_v19 = vpop.f32.mrf.mxu0  ;;  %v4128_v35 = vpop.f32.mrf.mxu1  ;;  %9192 = vmatpush3.msra.mxu1 %v5287_v40 }
 0x2f6   :  { %v3792_v4 = vadd.f32 %v3791_v19, %v10768_v39  ;;  %9209 = vmatprep.subr.mxu1 %v10802_v3 }
 0x2f7   :  { %v9071_v1 = vpop.f32.mrf.mxu0  ;;  %v9091_v63 = vpop.f32.mrf.mxu1 }
 0x2f8   :  { %v4009_v37 = vadd.f32 %v9071_v1, %v3881_v46 }
 0x2f9   :  { %v4002_v13 = vpop.f32.mrf.mxu0  ;;  %v4140_v61 = vpop.f32.mrf.mxu1 }
 0x2fa   :  { %v4123_v43 = vadd.f32 %v9085_v33, %v4009_v37  ;;  %v4003_v44 = vadd.f32 %v4002_v13, %v3873_v57  ;;  %v3929_v37 = vadd.f32 %v10781_v15, %v3799_v23 }
 0x2fb   :  { %v9074_v45 = vpop.f32.mrf.mxu0  ;;  %v9094_v22 = vpop.f32.mrf.mxu1 }
 0x2fc   :  { %v10841_v33 = vadd.f32 %v4123_v43, %v10721_v17  ;;  %v4117_v29 = vadd.f32 %v4116_v8, %v4003_v44  ;;  %v4021_v32 = vadd.f32 %v9074_v45, %v3897_v31  ;;  %v3375_v8 = vadd.f32 %v3340_v58, %v2559_v16 }
 0x2fd   :  { %v4014_v60 = vpop.f32.mrf.mxu0  ;;  %v4152_v25 = vpop.f32.mrf.mxu1 }
 0x2fe   :  { %v10848_v49 = vadd.f32 %v4117_v29, %v3373_v11  ;;  %v4135_v17 = vadd.f32 %v9088_v20, %v4021_v32  ;;  %v4015_v28 = vadd.f32 %v4014_v60, %v3889_v26 }
 0x2ff   :  { %v9077_v46 = vpop.f32.mrf.mxu0  ;;  %v9113_v47 = vpop.f32.mrf.mxu1 }
 0x300   :  { %v10853_v34 = vadd.f32 %v4135_v17, %v10730_v18  ;;  %v4129_v59 = vadd.f32 %v4128_v35, %v4015_v28  ;;  %v4033_v62 = vadd.f32 %v9077_v46, %v3913_v5  ;;  %v3921_v35 = vadd.f32 %v10785_v24, %v3792_v4 }
 0x301   :  { %v4026_v27 = vpop.f32.mrf.mxu0  ;;  %v4422_v7 = vpop.f32.mrf.mxu1 }
 0x302   :  { %v10855_v20 = vadd.f32 %v4129_v59, %v3375_v8  ;;  %v4147_v54 = vadd.f32 %v9091_v63, %v4033_v62  ;;  %v4027_v1 = vadd.f32 %v4026_v27, %v3905_v0 }
 0x303   :  { %v9080_v42 = vpop.f32.mrf.mxu0  ;;  %v9116_v57 = vpop.f32.mrf.mxu1 }
 0x304   :  { %v10860_v39 = vadd.f32 %v4147_v54, %v10736_v12  ;;  %v4141_v18 = vadd.f32 %v4140_v61, %v4027_v1  ;;  %v4045_v19 = vadd.f32 %v9080_v42, %v3929_v37 }
 0x305   :  { %v4038_v10 = vpop.f32.mrf.mxu0  ;;  %v4434_v9 = vpop.f32.mrf.mxu1 }
 0x306   :  { %v10864_v11 = vadd.f32 %v4141_v18, %v10738_v48  ;;  %v4159_v63 = vadd.f32 %v9094_v22, %v4045_v19  ;;  %v4039_v30 = vadd.f32 %v4038_v10, %v3921_v35 }
 0x307   :  { %v9099_v13 = vpop.f32.mrf.mxu0  ;;  %v9119_v15 = vpop.f32.mrf.mxu1 }
 0x308   :  { %v10867_v31 = vadd.f32 %v4159_v63, %v10742_v2  ;;  %v4153_v43 = vadd.f32 %v4152_v25, %v4039_v30  ;;  %v4429_v17 = vadd.f32 %v9113_v47, %v9099_v13 }
 0x309   :  { %v4276_v44 = vpop.f32.mrf.mxu0  ;;  %v4446_v12 = vpop.f32.mrf.mxu1 }
 0x30a   :  { %v10870_v61 = vadd.f32 %v4153_v43, %v10744_v36  ;;  %v4423_v46 = vadd.f32 %v4422_v7, %v4276_v44 }
 0x30b   :  { %v9102_v52 = vpop.f32.mrf.mxu0  ;;  %v9122_v24 = vpop.f32.mrf.mxu1 }
 0x30c   :  { %v4441_v59 = vadd.f32 %v9116_v57, %v9102_v52 }
 0x30d   :  { %v4296_v53 = vpop.f32.mrf.mxu0  ;;  %v4458_v58 = vpop.f32.mrf.mxu1 }
 0x30e   :  { %v4435_v42 = vadd.f32 %v4434_v9, %v4296_v53 }
 0x30f   :  { %v9105_v21 = vpop.f32.mrf.mxu0  ;;  %v9141_v48 = vpop.f32.mrf.mxu1 }
 0x310   :  { %v4453_v63 = vadd.f32 %v9119_v15, %v9105_v21 }
 0x311   :  { %v4316_v45 = vpop.f32.mrf.mxu0  ;;  %v4661_v22 = vpop.f32.mrf.mxu1 }
 0x312   :  { %v4447_v30 = vadd.f32 %v4446_v12, %v4316_v45 }
 0x313   :  { %v9108_v26 = vpop.f32.mrf.mxu0  ;;  %v9144_v29 = vpop.f32.mrf.mxu1 }
 0x314   :  { %v4465_v52 = vadd.f32 %v9122_v24, %v9108_v26 }
 0x315   :  { %v4336_v32 = vpop.f32.mrf.mxu0  ;;  %v4677_v6 = vpop.f32.mrf.mxu1 }
 0x317   :  { %v9127_v2 = vpop.f32.mrf.mxu0  ;;  %v9147_v50 = vpop.f32.mrf.mxu1 }
 0x318   :  { %v4546_v0 = vadd.f32 %v9127_v2, %v4429_v17 }
 0x319   :  { %v4538_v14 = vpop.f32.mrf.mxu0  ;;  %v4693_v16 = vpop.f32.mrf.mxu1 }
 0x31a   :  { %v4539_v62 = vadd.f32 %v4538_v14, %v4423_v46  ;;  %v4670_v37 = vadd.f32 %v9141_v48, %v4546_v0 }
 0x31b   :  { %v9130_v60 = vpop.f32.mrf.mxu0  ;;  %v9150_v25 = vpop.f32.mrf.mxu1 }
 0x31c   :  { %v4560_v1 = vadd.f32 %v9130_v60, %v4441_v59  ;;  %v4662_v10 = vadd.f32 %v4661_v22, %v4539_v62  ;;  %v4459_v60 = vadd.f32 %v4458_v58, %v4336_v32 }
 0x31d   :  { %v4552_v36 = vpop.f32.mrf.mxu0  ;;  %v10872_v5 = vpop.f32.mrf.mxu1 }
 0x31e   :  { %v4553_v43 = vadd.f32 %v4552_v36, %v4435_v42  ;;  %v4686_v7 = vadd.f32 %v9144_v29, %v4560_v1 }
 0x31f   :  { %v9133_v40 = vpop.f32.mrf.mxu0  ;;  %v9169_v23 = vpop.f32.mrf.mxu1 }
 0x320   :  { %v4574_v44 = vadd.f32 %v9133_v40, %v4453_v63  ;;  %v4678_v17 = vadd.f32 %v4677_v6, %v4553_v43 }
 0x321   :  { %v4566_v28 = vpop.f32.mrf.mxu0  ;;  %v4905_v8 = vpop.f32.mrf.mxu1 }
 0x322   :  { %v4567_v2 = vadd.f32 %v4566_v28, %v4447_v30  ;;  %v4702_v36 = vadd.f32 %v9147_v50, %v4574_v44 }
 0x323   :  { %v9136_v4 = vpop.f32.mrf.mxu0  ;;  %v9172_v27 = vpop.f32.mrf.mxu1 }
 0x324   :  { %v4588_v15 = vadd.f32 %v9136_v4, %v4465_v52  ;;  %v4694_v26 = vadd.f32 %v4693_v16, %v4567_v2 }
 0x325   :  { %v4580_v54 = vpop.f32.mrf.mxu0  ;;  %v4917_v19 = vpop.f32.mrf.mxu1 }
 0x326   :  { %v4718_v0 = vadd.f32 %v9150_v25, %v4588_v15 }
 0x327   :  { %v9155_v18 = vpop.f32.mrf.mxu0  ;;  %v9175_v48 = vpop.f32.mrf.mxu1 }
 0x328   :  { %v4798_v35 = vadd.f32 %v9155_v18, %v4670_v37 }
 0x329   :  { %v4791_v47 = vpop.f32.mrf.mxu0  ;;  %v4929_v6 = vpop.f32.mrf.mxu1 }
 0x32a   :  { %v4912_v13 = vadd.f32 %v9169_v23, %v4798_v35  ;;  %v4792_v51 = vadd.f32 %v4791_v47, %v4662_v10 }
 0x32b   :  { %v9158_v57 = vpop.f32.mrf.mxu0 }
 0x32c   :  { %v10875_v14 = vadd.f32 %v4912_v13, %v10841_v33  ;;  %v4906_v9 = vadd.f32 %v4905_v8, %v4792_v51  ;;  %v4810_v53 = vadd.f32 %v9158_v57, %v4686_v7  ;;  %v4581_v33 = vadd.f32 %v4580_v54, %v4459_v60  ;;  %v9178_v54 = vpop.f32.mrf.mxu1 }
 0x32d   :  { %v4803_v22 = vpop.f32.mrf.mxu0 }
 0x32e   :  { %v4983_v12 = vmul.f32 %v10875_v14, %v10875_v14  ;;  %v10880_v21 = vadd.f32 %v4906_v9, %v10848_v49  ;;  %v4924_v45 = vadd.f32 %v9172_v27, %v4810_v53  ;;  %v4804_v29 = vadd.f32 %v4803_v22, %v4678_v17  ;;  %v4941_v13 = vpop.f32.mrf.mxu1 }
 0x32f   :  { %v9161_v24 = vpop.f32.mrf.mxu0  ;;  %v4961_v51 = vsel %vm4959_vm2, %v10875_v14, 0.0 }
 0x330   :  { %v4960_v58 = vsel %vm4959_vm2, %v10880_v21, 0.0  ;;  %v4982_v32 = vmul.f32 %v10880_v21, %v10880_v21  ;;  %v10889_v49 = vadd.f32 %v4924_v45, %v10853_v34  ;;  %v4918_v23 = vadd.f32 %v4917_v19, %v4804_v29 }
 0x331   :  { %v4962_v40 = vadd.f32 %v4961_v51, %v4960_v58  ;;  %v4822_v28 = vadd.f32 %v9161_v24, %v4702_v36  ;;  %v4815_v50 = vpop.f32.mrf.mxu0  ;;  %v4991_v16 = vsel %vm4959_vm2, %v4983_v12, 0.0  ;;  %v4710_v34 = vadd.f32 %v10872_v5, %v4581_v33 }
 0x332   :  { %v4990_v8 = vsel %vm4959_vm2, %v4982_v32, 0.0  ;;  %v4816_v46 = vadd.f32 %v4815_v50, %v4694_v26  ;;  %v10894_v59 = vadd.f32 %v4918_v23, %v10855_v20  ;;  %v4985_v42 = vmul.f32 %v10889_v49, %v10889_v49 }
 0x333   :  { %v4992_v4 = vadd.f32 %v4991_v16, %v4990_v8  ;;  %v4936_v62 = vadd.f32 %v9175_v48, %v4822_v28  ;;  %v9164_v27 = vpop.f32.mrf.mxu0  ;;  %v4965_v5 = vsel %vm4959_vm2, %v10889_v49, 0.0 }
 0x334   :  { %v4930_v1 = vadd.f32 %v4929_v6, %v4816_v46  ;;  %v4834_v37 = vadd.f32 %v9164_v27, %v4718_v0  ;;  %v4963_v18 = vsel %vm4959_vm2, %v10894_v59, 0.0  ;;  %v4984_v25 = vmul.f32 %v10894_v59, %v10894_v59 }
 0x335   :  { %v10904_v19 = vadd.f32 %v4936_v62, %v10860_v39  ;;  %v4827_v20 = vpop.f32.mrf.mxu0  ;;  %v4964_v35 = vadd.f32 %v4963_v18, %v4962_v40  ;;  %v4995_v2 = vsel %vm4959_vm2, %v4985_v42, 0.0 }
 0x336   :  { %v10907_v10 = vadd.f32 %v4930_v1, %v10864_v11  ;;  %v4948_v63 = vadd.f32 %v9178_v54, %v4834_v37  ;;  %v4828_v30 = vadd.f32 %v4827_v20, %v4710_v34  ;;  %v4993_v43 = vsel %vm4959_vm2, %v4984_v25, 0.0 }
 0x337   :  { %v4994_v47 = vadd.f32 %v4993_v43, %v4992_v4  ;;  %v4966_v7 = vadd.f32 %v4965_v5, %v4964_v35  ;;  %v4987_v11 = vmul.f32 %v10904_v19, %v10904_v19  ;;  %v4969_v60 = vsel %vm4959_vm2, %v10904_v19, 0.0 }
 0x338   :  { %v4967_v44 = vsel %vm4959_vm2, %v10907_v10, 0.0  ;;  %v4986_v39 = vmul.f32 %v10907_v10, %v10907_v10  ;;  %v4958_v57 = vadd.f32 %v4948_v63, %v10867_v31  ;;  %v4942_v52 = vadd.f32 %v4941_v13, %v4828_v30 }
 0x339   :  { %v4968_v48 = vadd.f32 %v4967_v44, %v4966_v7  ;;  %v4996_v9 = vadd.f32 %v4995_v2, %v4994_v47  ;;  %v4999_v12 = vsel %vm4959_vm2, %v4987_v11, 0.0  ;;  %v5024_v47 = vld [vmem:[%s11475_s5] sm:$0x1] }
 0x33a   :  { %v4997_v53 = vsel %vm4959_vm2, %v4986_v39, 0.0  ;;  %v4957_v17 = vadd.f32 %v4942_v52, %v10870_v61  ;;  %v4989_v45 = vmul.f32 %v4958_v57, %v4958_v57  ;;  %v4973_v26 = vsel %vm4959_vm2, %v4958_v57, 0.0 }
 0x33b   :  { %v4998_v22 = vadd.f32 %v4997_v53, %v4996_v9  ;;  %v4970_v15 = vadd.f32 %v4969_v60, %v4968_v48 }
 0x33c   :  { %v4971_v29 = vsel %vm4959_vm2, %v4957_v17, 0.0  ;;  %v4988_v36 = vmul.f32 %v4957_v17, %v4957_v17  ;;  %v5003_v32 = vsel %vm4959_vm2, %v4989_v45, 0.0 }
 0x33d   :  { %v4972_v24 = vadd.f32 %v4971_v29, %v4970_v15  ;;  %v5000_v31 = vadd.f32 %v4999_v12, %v4998_v22 }
 0x33e   :  { %v5001_v33 = vsel %vm4959_vm2, %v4988_v36, 0.0 }
 0x33f   :  { %v4974_v51 = vadd.f32 %v4973_v26, %v4972_v24  ;;  %v5002_v58 = vadd.f32 %v5001_v33, %v5000_v31 }
 0x341   :  { %v4975_v6 = vrot.slane %v4974_v51, 4  ;;  %v5004_v61 = vadd.f32 %v5003_v32, %v5002_v58 }
 0x343   :  { %v4976_v40 = vadd.f32 %v4975_v6, %v4974_v51  ;;  %v5005_v23 = vrot.slane %v5004_v61, 4 }
 0x345   :  { %v4977_v28 = vrot.slane %v4976_v40, 2  ;;  %v5006_v50 = vadd.f32 %v5005_v23, %v5004_v61 }
 0x347   :  { %v4978_v16 = vadd.f32 %v4977_v28, %v4976_v40  ;;  %v5007_v8 = vrot.slane %v5006_v50, 2 }
 0x349   :  { %v4979_v46 = vrot.slane %v4978_v16, 1  ;;  %v5008_v0 = vadd.f32 %v5007_v8, %v5006_v50 }
 0x34b   :  { %v4980_v4 = vadd.f32 %v4979_v46, %v4978_v16  ;;  %v5009_v62 = vrot.slane %v5008_v0, 1 }
 0x34d   :  { %v4981_v27 = vmul.f32 0.015625, %v4980_v4  ;;  %v5010_v54 = vadd.f32 %v5009_v62, %v5008_v0 }
 0x34f   :  { %v5011_v1 = vmul.f32 0.015625, %v5010_v54  ;;  %v5012_v37 = vmul.f32 %v4981_v27, %v4981_v27  ;;  %v5016_v34 = vsub.f32 %v10880_v21, %v4981_v27  ;;  %v5017_v42 = vsub.f32 %v10875_v14, %v4981_v27  ;;  %v11524_v14 = vld [vmem:[#allocation11_spill] sm:$0xff] }
 0x350   :  { %v5018_v18 = vsub.f32 %v10894_v59, %v4981_v27  ;;  %v5019_v25 = vsub.f32 %v10889_v49, %v4981_v27  ;;  %v5020_v20 = vsub.f32 %v10907_v10, %v4981_v27  ;;  %v5021_v35 = vsub.f32 %v10904_v19, %v4981_v27  ;;  %v8299_v49 = vld [vmem:[%s11476_s6] ss:$0 sm:$0xff] }
 0x351   :  { %v5013_v63 = vsub.f32 %v5011_v1, %v5012_v37  ;;  %v5022_v30 = vsub.f32 %v4957_v17, %v4981_v27  ;;  %v5023_v5 = vsub.f32 %v4958_v57, %v4981_v27 }
 0x353   :  { %v5014_v43 = vadd.f32 1e-05, %v5013_v63 }
 0x355   :  { %9486 = vrsqrt.f32 %v5014_v43 }
 0x362   :  { %v9487_v21 = vpop.eup %9486 }
 0x363   :  { %v5025_v13 = vmul.f32 %v9487_v21, %v5024_v47 }
 0x365   :  { %v5029_v7 = vrot.slane %v5025_v13, %v11524_v14 }
 0x367   :  { %v5030_v59 = vmul.f32 %v5029_v7, %v5016_v34  ;;  %v5031_v10 = vmul.f32 %v5029_v7, %v5017_v42  ;;  %v5032_v19 = vmul.f32 %v5029_v7, %v5018_v18  ;;  %v5033_v44 = vmul.f32 %v5029_v7, %v5019_v25 }
 0x368   :  { %v5034_v39 = vmul.f32 %v5029_v7, %v5020_v20  ;;  %v5035_v2 = vmul.f32 %v5029_v7, %v5021_v35  ;;  %v5036_v11 = vmul.f32 %v5029_v7, %v5022_v30  ;;  %v5037_v57 = vmul.f32 %v5029_v7, %v5023_v5  ;;  %v5120_v20 = vld [vmem:[%s11477_s7 + $0x8] sm:$0xff] }
 0x369   :  { %v5045_v52 = vadd.f32 %v8299_v49, %v5030_v59  ;;  %v5046_v48 = vadd.f32 %v8299_v49, %v5031_v10  ;;  %v5047_v9 = vadd.f32 %v8299_v49, %v5032_v19  ;;  %v5048_v53 = vadd.f32 %v8299_v49, %v5033_v44  ;;  %v5119_v10 = vld [vmem:[%s11477_s7] sm:$0xff] }
 0x36a   :  { %v5049_v60 = vadd.f32 %v8299_v49, %v5034_v39  ;;  %v5050_v17 = vadd.f32 %v8299_v49, %v5035_v2  ;;  %v5051_v22 = vadd.f32 %v8299_v49, %v5036_v11  ;;  %v5052_v15 = vadd.f32 %v8299_v49, %v5037_v57 }
 0x36b   :  { %vm5053_vm6 = vcmp.ge.f32.partialorder %v5045_v52, 0.0  ;;  %vm5054_vm7 = vcmp.ge.f32.partialorder %v5046_v48, 0.0  ;;  %vm5055_vm8 = vcmp.ge.f32.partialorder %v5047_v9, 0.0  ;;  %vm5056_vm9 = vcmp.ge.f32.partialorder %v5048_v53, 0.0 }
 0x36c   :  { %vm5057_vm10 = vcmp.ge.f32.partialorder %v5049_v60, 0.0  ;;  %vm5058_vm11 = vcmp.ge.f32.partialorder %v5050_v17, 0.0  ;;  %vm5059_vm12 = vcmp.ge.f32.partialorder %v5051_v22, 0.0  ;;  %vm5060_vm13 = vcmp.ge.f32.partialorder %v5052_v15, 0.0 }
 0x36d   :  { %v5061_v12 = vmul.f32 0.01, %v5045_v52  ;;  %v5062_v45 = vmul.f32 0.01, %v5046_v48  ;;  %v5063_v29 = vmul.f32 0.01, %v5047_v9 }
 0x36e   :  { %v5064_v36 = vmul.f32 0.01, %v5048_v53  ;;  %v5065_v24 = vmul.f32 0.01, %v5049_v60  ;;  %v5066_v31 = vmul.f32 0.01, %v5050_v17 }
 0x36f   :  { %v5067_v26 = vmul.f32 0.01, %v5051_v22  ;;  %v5068_v33 = vmul.f32 0.01, %v5052_v15  ;;  %v5069_v51 = vsel %vm5053_vm6, %v5045_v52, %v5061_v12  ;;  %v5070_v58 = vsel %vm5054_vm7, %v5046_v48, %v5062_v45 }
 0x370   :  { %v5071_v32 = vsel %vm5055_vm8, %v5047_v9, %v5063_v29  ;;  %v5072_v6 = vsel %vm5056_vm9, %v5048_v53, %v5064_v36  ;;  %v5073_v61 = vsel %vm5057_vm10, %v5049_v60, %v5065_v24  ;;  %v5074_v40 = vsel %vm5058_vm11, %v5050_v17, %v5066_v31  ;;  %5077 = vst.msk [vmem:[#allocation6] sm:$0xff] %vm4959_vm2, %v5069_v51 }
 0x371   :  { %5078 = vst.msk [vmem:[#allocation6 + $0x8] sm:$0xff] %vm4959_vm2, %v5070_v58  ;;  %v5075_v23 = vsel %vm5059_vm12, %v5051_v22, %v5067_v26  ;;  %v5076_v28 = vsel %vm5060_vm13, %v5052_v15, %v5068_v33  ;;  %5079 = vst.msk [vmem:[#allocation6 + $0x10] sm:$0xff] %vm4959_vm2, %v5071_v32  ;;  %v10979_v59 = vand.u32 4294901760, %v5120_v20  ;;  %v10993_v57 = vand.u32 4294901760, %v5119_v10 }
 0x372   :  { %5080 = vst.msk [vmem:[#allocation6 + $0x18] sm:$0xff] %vm4959_vm2, %v5072_v6  ;;  %5081 = vst.msk [vmem:[#allocation6 + $0x20] sm:$0xff] %vm4959_vm2, %v5073_v61 }
 0x373   :  { %5082 = vst.msk [vmem:[#allocation6 + $0x28] sm:$0xff] %vm4959_vm2, %v5074_v40  ;;  %5083 = vst.msk [vmem:[#allocation6 + $0x30] sm:$0xff] %vm4959_vm2, %v5075_v23  ;;  %v10998_v53 = vsub.f32 %v5120_v20, %v10979_v59  ;;  %v11004_v29 = vsub.f32 %v5119_v10, %v10993_v57 }
 0x374   :  { %5084 = vst.msk [vmem:[#allocation6 + $0x38] sm:$0xff] %vm4959_vm2, %v5076_v28 }
 0x375   :  { %v11007_v24 = vand.u32 4294901760, %v10998_v53  ;;  %v11013_v58 = vand.u32 4294901760, %v11004_v29 }
 0x377   :  { %v5879_v32 = vsub.f32 %v10998_v53, %v11007_v24 }
 0x378   :  { %v5085_v50 = vld [vmem:[#allocation6] ss:$2 sm:$0xff]  ;;  %v5093_v16 = vld [vmem:[#allocation6 + $0x1] ss:$2 sm:$0xff] }
 0x379   :  { %v5087_v8 = vld [vmem:[#allocation6 + $0x10] ss:$2 sm:$0xff]  ;;  %v5095_v46 = vld [vmem:[#allocation6 + $0x11] ss:$2 sm:$0xff]  ;;  %v5100_v0 = vmax.f32 %v5085_v50, %v5093_v16  ;;  %v5880_v23 = vand.u32 4294901760, %v5879_v32  ;;  %v8304_v32 = vld [vmem:[%s11477_s7 + $0x30] sm:$0xff] }
 0x37a   :  { %v5089_v4 = vld [vmem:[#allocation6 + $0x20] ss:$2 sm:$0xff]  ;;  %v5101_v62 = vmax.f32 %v5087_v8, %v5095_v46  ;;  %v5097_v27 = vld [vmem:[#allocation6 + $0x21] ss:$2 sm:$0xff] }
 0x37b   :  { %v5091_v54 = vld [vmem:[#allocation6 + $0x30] ss:$2 sm:$0xff]  ;;  %v5099_v1 = vld [vmem:[#allocation6 + $0x31] ss:$2 sm:$0xff]  ;;  %5111 = vst.msk [vmem:[#allocation4 + $0x2] sm:$0xff] %vm4959_vm2, %v5100_v0  ;;  %v5102_v37 = vmax.f32 %v5089_v4, %v5097_v27 }
 0x37c   :  { %v5103_v34 = vmax.f32 %v5091_v54, %v5099_v1  ;;  %5112 = vst.msk [vmem:[#allocation4 + $0xa] sm:$0xff] %vm4959_vm2, %v5101_v62  ;;  %v11525_v8 = vld [vmem:[#allocation12_spill] sm:$0xff] }
 0x37d   :  { %5113 = vst.msk [vmem:[#allocation4 + $0x1a] sm:$0xff] %vm4959_vm2, %v5102_v37 }
 0x37e   :  { %5114 = vst.msk [vmem:[#allocation4 + $0x22] sm:$0xff] %vm4959_vm2, %v5103_v34 }
 0x382   :  { %v5121_v42 = vld [vmem:[#allocation4 + $0x1] sm:$0xff] }
 0x383   :  { %v5129_v18 = vsel %vm4959_vm2, %v5121_v42, 0  ;;  %v5122_v25 = vld [vmem:[#allocation4 + $0x9] sm:$0xff]  ;;  %v5115_v15 = vld [vmem:[#allocation4] sm:$0xff] }
 0x384   :  { %v10966_v35 = vand.u32 4294901760, %v5129_v18  ;;  %v5132_v63 = vsel %vm4959_vm2, %v5122_v25, 0  ;;  %v5123_v30 = vld [vmem:[#allocation4 + $0x19] sm:$0xff]  ;;  %v5729_v31 = vsel %vm4959_vm2, %v5115_v15, 0  ;;  %v5116_v26 = vld [vmem:[#allocation4 + $0x8] sm:$0xff] }
 0x385   :  { %v5124_v5 = vld [vmem:[#allocation4 + $0x21] sm:$0xff]  ;;  %v10969_v43 = vand.u32 4294901760, %v5132_v63  ;;  %v5135_v47 = vsel %vm4959_vm2, %v5123_v30, 0  ;;  %v5117_v33 = vld [vmem:[#allocation4 + $0x18] sm:$0xff]  ;;  %v11019_v6 = vand.u32 4294901760, %v5729_v31  ;;  %v6329_v10 = vld [vmem:[#allocation4 + $0xa] sm:$0xff] }
 0x386   :  { %v5138_v21 = vsel %vm4959_vm2, %v5124_v5, 0  ;;  %9193 = vmatprep.mubr.f32.mxu1 %v10966_v35  ;;  %v10974_v13 = vand.u32 4294901760, %v5135_v47  ;;  %v5208_v49 = vsub.f32 %v5129_v18, %v10966_v35  ;;  %v5735_v61 = vsel %vm4959_vm2, %v5117_v33, 0  ;;  %v5118_v40 = vld [vmem:[#allocation4 + $0x20] sm:$0xff] }
 0x387   :  { %v10976_v7 = vand.u32 4294901760, %v5138_v21  ;;  %v5218_v19 = vsub.f32 %v5132_v63, %v10969_v43  ;;  %9194 = vmatmul.mubr.f32.vlgmr.msra.gmra.mxu1 %v10969_v43  ;;  %v11031_v28 = vand.u32 4294901760, %v5735_v61  ;;  %v5738_v50 = vsel %vm4959_vm2, %v5118_v40, 0  ;;  %v8302_v42 = vld [vmem:[%s11477_s7 + $0x20] sm:$0xff] }
 0x388   :  { %9196 = vmatprep.mubr.f32.mxu1 %v10974_v13  ;;  %9210 = vmatpush3.msra.mxu1 %v10802_v3  ;;  %v5209_v39 = vand.u32 4294901760, %v5208_v49  ;;  %v5228_v2 = vsub.f32 %v5135_v47, %v10974_v13  ;;  %v11035_v16 = vsub.f32 %v5729_v31, %v11019_v6  ;;  %v11044_v0 = vand.u32 4294901760, %v5738_v50  ;;  %v6328_v5 = vld [vmem:[#allocation4 + $0x2] sm:$0xff] }
 0x389   :  { %v10988_v44 = vsub.f32 %v5138_v21, %v10976_v7  ;;  %9211 = vmatprep.subr.mxu1 %v10804_v38  ;;  %v5219_v11 = vand.u32 4294901760, %v5218_v19  ;;  %v11049_v62 = vsub.f32 %v5735_v61, %v11031_v28  ;;  %v11078_v20 = vand.u32 4294901760, %v8302_v42 }
 0x38a   :  { %v5210_v52 = vsub.f32 %v5208_v49, %v5209_v39  ;;  %9212 = vmatpush3.msra.mxu1 %v10804_v38  ;;  %v5229_v48 = vand.u32 4294901760, %v5228_v2  ;;  %v5809_v4 = vand.u32 4294901760, %v11035_v16  ;;  %v11059_v27 = vsub.f32 %v5738_v50, %v11044_v0 }
 0x38b   :  { %v5239_v9 = vand.u32 4294901760, %v10988_v44  ;;  %9197 = vmatmul.mubr.f32.gmra.mxu1 %v10976_v7  ;;  %v5220_v60 = vsub.f32 %v5218_v19, %v5219_v11  ;;  %9229 = vmatprep.subr.mxu1 %v10802_v3  ;;  %v5829_v37 = vand.u32 4294901760, %v11049_v62  ;;  %v11092_v21 = vsub.f32 %v8302_v42, %v11078_v20  ;;  %v6942_v42 = vld [vmem:[#allocation4 + $0x23] sm:$0xff] }
 0x38c   :  { %9213 = vmatprep.mubr.f32.mxu1 %v5209_v39  ;;  %v5211_v17 = vand.u32 4294901760, %v5210_v52  ;;  %v5230_v22 = vsub.f32 %v5228_v2, %v5229_v48  ;;  %v5810_v1 = vsub.f32 %v11035_v16, %v5809_v4  ;;  %v5839_v25 = vand.u32 4294901760, %v11059_v27 }
 0x38d   :  { %v5221_v12 = vand.u32 4294901760, %v5220_v60  ;;  %v5240_v45 = vsub.f32 %v10988_v44, %v5239_v9  ;;  %v5830_v63 = vsub.f32 %v11049_v62, %v5829_v37  ;;  %v11103_v39 = vand.u32 4294901760, %v11092_v21 }
 0x38e   :  { %9183 = vmatprep.mubr.f32.mxu0 %v5211_v17  ;;  %v5231_v36 = vand.u32 4294901760, %v5230_v22  ;;  %v5840_v47 = vsub.f32 %v11059_v27, %v5839_v25  ;;  %v6339_v52 = vsel %vm4959_vm2, %v6329_v10, 0  ;;  %v11172_v61 = vand.u32 4294901760, %v8304_v32 }
 0x38f   :  { %9184 = vmatmul.mubr.f32.vlgmr.msra.gmra.mxu0 %v5221_v12  ;;  %9214 = vmatmul.mubr.f32.vlgmr.msra.gmra.mxu1 %v5219_v11  ;;  %v5241_v51 = vand.u32 4294901760, %v5240_v45  ;;  %v11119_v60 = vand.u32 4294901760, %v6339_v52 }
 0x390   :  { %9200 = vmatpush3.msra.mxu0 %v10810_v56  ;;  %9186 = vmatprep.mubr.f32.mxu0 %v5231_v36  ;;  %v5732_v56 = vsel %vm4959_vm2, %v5116_v26, 0 }
 0x391   :  { %9216 = vmatprep.mubr.f32.mxu1 %v5229_v48  ;;  %9201 = vmatprep.subr.mxu0 %v10813_v55  ;;  %v11136_v12 = vsub.f32 %v6339_v52, %v11119_v60 }
 0x392   :  { %9202 = vmatpush3.msra.mxu0 %v10813_v55  ;;  %9230 = vmatpush3.msra.mxu1 %v10802_v3  ;;  %v5886_v3 = vsub.f32 %v11004_v29, %v11013_v58  ;;  %v11028_v55 = vand.u32 4294901760, %v5732_v56 }
 0x393   :  { %9187 = vmatmul.mubr.f32.gmra.mxu0 %v5241_v51  ;;  %9217 = vmatmul.mubr.f32.gmra.mxu1 %v5239_v9  ;;  %v6331_v9 = vld [vmem:[#allocation4 + $0x22] sm:$0xff]  ;;  %v6426_v26 = vand.u32 4294901760, %v11136_v12 }
 0x394   :  { %9203 = vmatprep.mubr.f32.mxu0 %v5208_v49  ;;  %9233 = vmatprep.mubr.f32.mxu1 %v10966_v35  ;;  %v5887_v46 = vand.u32 4294901760, %v5886_v3  ;;  %v6336_v49 = vsel %vm4959_vm2, %v6328_v5, 0  ;;  %v6345_v15 = vsel %vm4959_vm2, %v6331_v9, 0 }
 0x395   :  { %9231 = vmatprep.subr.mxu1 %v10804_v38  ;;  %9219 = vmatprep.subr.mxu0 %v10822_v41  ;;  %v11109_v11 = vand.u32 4294901760, %v6336_v49  ;;  %v11138_v45 = vand.u32 4294901760, %v6345_v15 }
 0x396   :  { %9232 = vmatpush3.msra.mxu1 %v10804_v38  ;;  %v11042_v38 = vsub.f32 %v5732_v56, %v11028_v55 }
 0x397   :  { %9204 = vmatmul.mubr.f32.vlgmr.msra.gmra.mxu0 %v5218_v19  ;;  %9234 = vmatmul.mubr.f32.vlgmr.msra.gmra.mxu1 %v10969_v43  ;;  %v6330_v19 = vld [vmem:[#allocation4 + $0x1a] sm:$0xff]  ;;  %v11153_v31 = vsub.f32 %v6345_v15, %v11138_v45 }
 0x398   :  { %9220 = vmatpush3.msra.mxu0 %v10822_v41  ;;  %9206 = vmatprep.mubr.f32.mxu0 %v5228_v2  ;;  %v8303_v41 = vld [vmem:[%s11477_s7 + $0x28] sm:$0xff]  ;;  %v5819_v54 = vand.u32 4294901760, %v11042_v38  ;;  %v6342_v48 = vsel %vm4959_vm2, %v6330_v19, 0 }
 0x399   :  { %9236 = vmatprep.mubr.f32.mxu1 %v10974_v13  ;;  %9221 = vmatprep.subr.mxu0 %v11525_v8  ;;  %v11065_v34 = vand.u32 4294901760, %v8303_v41  ;;  %v11123_v22 = vand.u32 4294901760, %v6342_v48  ;;  %v6446_v56 = vand.u32 4294901760, %v11153_v31 }
 0x39a   :  { %9222 = vmatpush3.msra.mxu0 %v11525_v8  ;;  %9249 = vmatprep.subr.mxu1 %v5880_v23  ;;  %v5820_v18 = vsub.f32 %v11042_v38, %v5819_v54 }
 0x39b   :  { %9207 = vmatmul.mubr.f32.gmra.mxu0 %v10988_v44  ;;  %9237 = vmatmul.mubr.f32.gmra.mxu1 %v10976_v7  ;;  %v11084_v30 = vsub.f32 %v8303_v41, %v11065_v34  ;;  %v5841_v44 = vand.u32 4294901760, %v5840_v47  ;;  %v11143_v36 = vsub.f32 %v6342_v48, %v11123_v22  ;;  %v6447_v50 = vsub.f32 %v11153_v31, %v6446_v56 }
 0x39c   :  { %9223 = vmatprep.mubr.f32.mxu0 %v10966_v35  ;;  %9250 = vmatpush3.msra.mxu1 %v5880_v23  ;;  %v5811_v35 = vand.u32 4294901760, %v5810_v1  ;;  %v6939_v23 = vld [vmem:[#allocation4 + $0x3] sm:$0xff] }
 0x39d   :  { %9253 = vmatprep.mubr.f32.mxu1 %v11019_v6  ;;  %9251 = vmatprep.subr.mxu1 %v5887_v46  ;;  %v6436_v51 = vand.u32 4294901760, %v11143_v36 }
 0x39e   :  { %9239 = vmatprep.subr.mxu0 %v10979_v59  ;;  %9252 = vmatpush3.msra.mxu1 %v5887_v46 }
 0x39f   :  { %9224 = vmatmul.mubr.f32.vlgmr.msra.gmra.mxu0 %v10969_v43  ;;  %9254 = vmatmul.mubr.f32.vlgmr.msra.gmra.mxu1 %v11028_v55  ;;  %v5821_v43 = vand.u32 4294901760, %v5820_v18  ;;  %v6437_v3 = vsub.f32 %v11143_v36, %v6436_v51 }
 0x3a0   :  { %9240 = vmatpush3.msra.mxu0 %v10979_v59  ;;  %9226 = vmatprep.mubr.f32.mxu0 %v10974_v13  ;;  %v5831_v13 = vand.u32 4294901760, %v5830_v63 }
 0x3a1   :  { %9256 = vmatprep.mubr.f32.mxu1 %v11031_v28  ;;  %9241 = vmatprep.subr.mxu0 %v10993_v57  ;;  %v6438_v8 = vand.u32 4294901760, %v6437_v3 }
 0x3a2   :  { %9242 = vmatpush3.msra.mxu0 %v10993_v57  ;;  %9269 = vmatprep.subr.mxu1 %v10979_v59 }
 0x3a3   :  { %9227 = vmatmul.mubr.f32.gmra.mxu0 %v10976_v7  ;;  %9257 = vmatmul.mubr.f32.gmra.mxu1 %v11044_v0  ;;  %v11097_v7 = vand.u32 4294901760, %v11084_v30 }
 0x3a4   :  { %9243 = vmatprep.mubr.f32.mxu0 %v5811_v35  ;;  %9270 = vmatpush3.msra.mxu1 %v10979_v59 }
 0x3a5   :  { %9273 = vmatprep.mubr.f32.mxu1 %v5809_v4  ;;  %9271 = vmatprep.subr.mxu1 %v10993_v57  ;;  %v6486_v2 = vsub.f32 %v11084_v30, %v11097_v7  ;;  %v6941_v4 = vld [vmem:[#allocation4 + $0x1b] sm:$0xff] }
 0x3a6   :  { %9259 = vmatprep.subr.mxu0 %v10998_v53  ;;  %9272 = vmatpush3.msra.mxu1 %v10993_v57 }
 0x3a7   :  { %9244 = vmatmul.mubr.f32.vlgmr.msra.gmra.mxu0 %v5821_v43  ;;  %9274 = vmatmul.mubr.f32.vlgmr.msra.gmra.mxu1 %v5819_v54  ;;  %v6487_v17 = vand.u32 4294901760, %v6486_v2 }
 0x3a8   :  { %9260 = vmatpush3.msra.mxu0 %v10998_v53  ;;  %9246 = vmatprep.mubr.f32.mxu0 %v5831_v13  ;;  %v6493_v53 = vsub.f32 %v11092_v21, %v11103_v39  ;;  %v8307_v13 = vld [vmem:[%s11477_s7 + $0x48] sm:$0xff] }
 0x3a9   :  { %9276 = vmatprep.mubr.f32.mxu1 %v5829_v37  ;;  %9261 = vmatprep.subr.mxu0 %v11004_v29  ;;  %v6953_v37 = vsel %vm4959_vm2, %v6941_v4, 0 }
 0x3aa   :  { %9262 = vmatpush3.msra.mxu0 %v11004_v29  ;;  %9289 = vmatprep.subr.mxu1 %v10979_v59  ;;  %v11217_v63 = vand.u32 4294901760, %v6953_v37 }
 0x3ab   :  { %9247 = vmatmul.mubr.f32.gmra.mxu0 %v5841_v44  ;;  %9277 = vmatmul.mubr.f32.gmra.mxu1 %v5839_v25  ;;  %v11253_v44 = vand.u32 4294901760, %v8307_v13 }
 0x3ac   :  { %9263 = vmatprep.mubr.f32.mxu0 %v11035_v16  ;;  %9290 = vmatpush3.msra.mxu1 %v10979_v59  ;;  %v11127_v59 = vsub.f32 %v6336_v49, %v11109_v11  ;;  %v11186_v16 = vsub.f32 %v8304_v32, %v11172_v61  ;;  %v7553_v32 = vld [vmem:[#allocation4 + $0x24] sm:$0xff] }
 0x3ad   :  { %9293 = vmatprep.mubr.f32.mxu1 %v11019_v6  ;;  %9291 = vmatprep.subr.mxu1 %v10993_v57 }
 0x3ae   :  { %9279 = vmatprep.subr.mxu0 %v11007_v24  ;;  %9292 = vmatpush3.msra.mxu1 %v10993_v57  ;;  %v6494_v57 = vand.u32 4294901760, %v6493_v53  ;;  %v6416_v29 = vand.u32 4294901760, %v11127_v59  ;;  %v11197_v41 = vand.u32 4294901760, %v11186_v16  ;;  %v11272_v53 = vsub.f32 %v8307_v13, %v11253_v44 }
 0x3af   :  { %9264 = vmatmul.mubr.f32.vlgmr.msra.gmra.mxu0 %v11042_v38  ;;  %9294 = vmatmul.mubr.f32.vlgmr.msra.gmra.mxu1 %v11028_v55  ;;  %v6947_v38 = vsel %vm4959_vm2, %v6939_v23, 0 }
 0x3b0   :  { %9280 = vmatpush3.msra.mxu0 %v11007_v24  ;;  %9266 = vmatprep.mubr.f32.mxu0 %v11049_v62  ;;  %v8305_v24 = vld [vmem:[%s11477_s7 + $0x38] sm:$0xff]  ;;  %v6417_v33 = vsub.f32 %v11127_v59, %v6416_v29  ;;  %v6448_v62 = vand.u32 4294901760, %v6447_v50  ;;  %v11203_v54 = vand.u32 4294901760, %v6947_v38  ;;  %v7104_v18 = vsub.f32 %v11186_v16, %v11197_v41 }
 0x3b1   :  { %9296 = vmatprep.mubr.f32.mxu1 %v11031_v28  ;;  %9281 = vmatprep.subr.mxu0 %v11013_v58 }
 0x3b2   :  { %9282 = vmatpush3.msra.mxu0 %v11013_v58  ;;  %9309 = vmatprep.subr.mxu1 %v6487_v17  ;;  %v11159_v58 = vand.u32 4294901760, %v8305_v24  ;;  %v6418_v40 = vand.u32 4294901760, %v6417_v33 }
 0x3b3   :  { %9267 = vmatmul.mubr.f32.gmra.mxu0 %v11059_v27  ;;  %9297 = vmatmul.mubr.f32.gmra.mxu1 %v11044_v0 }
 0x3b4   :  { %9283 = vmatprep.mubr.f32.mxu0 %v11019_v6  ;;  %9310 = vmatpush3.msra.mxu1 %v6487_v17  ;;  %v6427_v6 = vsub.f32 %v11136_v12, %v6426_v26 }
 0x3b5   :  { %9313 = vmatprep.mubr.f32.mxu1 %v11109_v11  ;;  %9311 = vmatprep.subr.mxu1 %v6494_v57 }
 0x3b6   :  { %9299 = vmatprep.subr.mxu0 %v11065_v34  ;;  %9312 = vmatpush3.msra.mxu1 %v6494_v57  ;;  %v11285_v57 = vand.u32 4294901760, %v11272_v53 }
 0x3b7   :  { %9284 = vmatmul.mubr.f32.vlgmr.msra.gmra.mxu0 %v11028_v55  ;;  %9314 = vmatmul.mubr.f32.vlgmr.msra.gmra.mxu1 %v11119_v60  ;;  %v11178_v55 = vsub.f32 %v8305_v24, %v11159_v58 }
 0x3b8   :  { %9300 = vmatpush3.msra.mxu0 %v11065_v34  ;;  %9286 = vmatprep.mubr.f32.mxu0 %v11031_v28  ;;  %v6428_v28 = vand.u32 4294901760, %v6427_v6 }
 0x3b9   :  { %9316 = vmatprep.mubr.f32.mxu1 %v11123_v22  ;;  %9301 = vmatprep.subr.mxu0 %v11078_v20  ;;  %v11191_v46 = vand.u32 4294901760, %v11178_v55 }
 0x3ba   :  { %9302 = vmatpush3.msra.mxu0 %v11078_v20  ;;  %9329 = vmatprep.subr.mxu1 %v11065_v34 }
 0x3bb   :  { %9287 = vmatmul.mubr.f32.gmra.mxu0 %v11044_v0  ;;  %9317 = vmatmul.mubr.f32.gmra.mxu1 %v11138_v45  ;;  %v6940_v0 = vld [vmem:[#allocation4 + $0xb] sm:$0xff]  ;;  %v7097_v27 = vsub.f32 %v11178_v55, %v11191_v46 }
 0x3bc   :  { %9303 = vmatprep.mubr.f32.mxu0 %v6418_v40  ;;  %9330 = vmatpush3.msra.mxu1 %v11065_v34  ;;  %v6950_v1 = vsel %vm4959_vm2, %v6940_v0, 0 }
 0x3bd   :  { %9333 = vmatprep.mubr.f32.mxu1 %v6416_v29  ;;  %9331 = vmatprep.subr.mxu1 %v11078_v20  ;;  %v11213_v25 = vand.u32 4294901760, %v6950_v1  ;;  %v7098_v35 = vand.u32 4294901760, %v7097_v27  ;;  %v7552_v29 = vld [vmem:[#allocation4 + $0x1c] sm:$0xff] }
 0x3be   :  { %9319 = vmatprep.subr.mxu0 %v11084_v30  ;;  %9332 = vmatpush3.msra.mxu1 %v11078_v20 }
 0x3bf   :  { %9304 = vmatmul.mubr.f32.vlgmr.msra.gmra.mxu0 %v6428_v28  ;;  %9334 = vmatmul.mubr.f32.vlgmr.msra.gmra.mxu1 %v6426_v26  ;;  %v11230_v5 = vsub.f32 %v6950_v1, %v11213_v25 }
 0x3c0   :  { %9320 = vmatpush3.msra.mxu0 %v11084_v30  ;;  %9306 = vmatprep.mubr.f32.mxu0 %v6438_v8  ;;  %v6956_v30 = vsel %vm4959_vm2, %v6942_v42, 0 }
 0x3c1   :  { %9336 = vmatprep.mubr.f32.mxu1 %v6436_v51  ;;  %9321 = vmatprep.subr.mxu0 %v11092_v21  ;;  %v11232_v43 = vand.u32 4294901760, %v6956_v30  ;;  %v7037_v49 = vand.u32 4294901760, %v11230_v5  ;;  %v7564_v51 = vsel %vm4959_vm2, %v7552_v29, 0 }
 0x3c2   :  { %9322 = vmatpush3.msra.mxu0 %v11092_v21  ;;  %9349 = vmatprep.subr.mxu1 %v11065_v34  ;;  %v11237_v21 = vsub.f32 %v6953_v37, %v11217_v63  ;;  %v11311_v3 = vand.u32 4294901760, %v7564_v51 }
 0x3c3   :  { %9307 = vmatmul.mubr.f32.gmra.mxu0 %v6448_v62  ;;  %9337 = vmatmul.mubr.f32.gmra.mxu1 %v6446_v56  ;;  %v7038_v2 = vsub.f32 %v11230_v5, %v7037_v49 }
 0x3c4   :  { %9323 = vmatprep.mubr.f32.mxu0 %v11127_v59  ;;  %9350 = vmatpush3.msra.mxu1 %v11065_v34  ;;  %v11221_v34 = vsub.f32 %v6947_v38, %v11203_v54  ;;  %v7047_v19 = vand.u32 4294901760, %v11237_v21 }
 0x3c5   :  { %9353 = vmatprep.mubr.f32.mxu1 %v11109_v11  ;;  %9351 = vmatprep.subr.mxu1 %v11078_v20  ;;  %v7039_v17 = vand.u32 4294901760, %v7038_v2 }
 0x3c6   :  { %9339 = vmatprep.subr.mxu0 %v11097_v7  ;;  %9352 = vmatpush3.msra.mxu1 %v11078_v20  ;;  %v7105_v20 = vand.u32 4294901760, %v7104_v18  ;;  %v7027_v47 = vand.u32 4294901760, %v11221_v34  ;;  %v7048_v9 = vsub.f32 %v11237_v21, %v7047_v19 }
 0x3c7   :  { %9324 = vmatmul.mubr.f32.vlgmr.msra.gmra.mxu0 %v11136_v12  ;;  %9354 = vmatmul.mubr.f32.vlgmr.msra.gmra.mxu1 %v11119_v60 }
 0x3c8   :  { %9340 = vmatpush3.msra.mxu0 %v11097_v7  ;;  %9326 = vmatprep.mubr.f32.mxu0 %v11143_v36  ;;  %v11247_v7 = vsub.f32 %v6956_v30, %v11232_v43  ;;  %v7028_v10 = vsub.f32 %v11221_v34, %v7027_v47  ;;  %v7049_v59 = vand.u32 4294901760, %v7048_v9 }
 0x3c9   :  { %9356 = vmatprep.mubr.f32.mxu1 %v11123_v22  ;;  %9341 = vmatprep.subr.mxu0 %v11103_v39 }
 0x3ca   :  { %9342 = vmatpush3.msra.mxu0 %v11103_v39  ;;  %9369 = vmatprep.subr.mxu1 %v7098_v35  ;;  %v8306_v39 = vld [vmem:[%s11477_s7 + $0x40] sm:$0xff]  ;;  %v7029_v48 = vand.u32 4294901760, %v7028_v10 }
 0x3cb   :  { %9327 = vmatmul.mubr.f32.gmra.mxu0 %v11153_v31  ;;  %9357 = vmatmul.mubr.f32.gmra.mxu1 %v11138_v45  ;;  %v11266_v52 = vand.u32 4294901760, %v8306_v39  ;;  %v7708_v31 = vsub.f32 %v11272_v53, %v11285_v57 }
 0x3cc   :  { %9343 = vmatprep.mubr.f32.mxu0 %v11109_v11  ;;  %9370 = vmatpush3.msra.mxu1 %v7098_v35  ;;  %v7057_v11 = vand.u32 4294901760, %v11247_v7 }
 0x3cd   :  { %9373 = vmatprep.mubr.f32.mxu1 %v11203_v54  ;;  %9371 = vmatprep.subr.mxu1 %v7105_v20  ;;  %v11280_v15 = vsub.f32 %v8306_v39, %v11266_v52  ;;  %v7709_v40 = vand.u32 4294901760, %v7708_v31 }
 0x3ce   :  { %9359 = vmatprep.subr.mxu0 %v11159_v58  ;;  %9372 = vmatpush3.msra.mxu1 %v7105_v20 }
 0x3cf   :  { %9344 = vmatmul.mubr.f32.vlgmr.msra.gmra.mxu0 %v11119_v60  ;;  %9374 = vmatmul.mubr.f32.vlgmr.msra.gmra.mxu1 %v11213_v25  ;;  %v7550_v60 = vld [vmem:[#allocation4 + $0x4] sm:$0xff]  ;;  %v11291_v24 = vand.u32 4294901760, %v11280_v15 }
 0x3d0   :  { %9360 = vmatpush3.msra.mxu0 %v11159_v58  ;;  %9346 = vmatprep.mubr.f32.mxu0 %v11123_v22  ;;  %v7058_v22 = vsub.f32 %v11247_v7, %v7057_v11  ;;  %v7558_v12 = vsel %vm4959_vm2, %v7550_v60, 0 }
 0x3d1   :  { %9376 = vmatprep.mubr.f32.mxu1 %v11217_v63  ;;  %9361 = vmatprep.subr.mxu0 %v11172_v61  ;;  %v11297_v26 = vand.u32 4294901760, %v7558_v12  ;;  %v7715_v6 = vsub.f32 %v11280_v15, %v11291_v24 }
 0x3d2   :  { %9362 = vmatpush3.msra.mxu0 %v11172_v61  ;;  %9389 = vmatprep.subr.mxu1 %v11159_v58  ;;  %v7059_v36 = vand.u32 4294901760, %v7058_v22 }
 0x3d3   :  { %9347 = vmatmul.mubr.f32.gmra.mxu0 %v11138_v45  ;;  %9377 = vmatmul.mubr.f32.gmra.mxu1 %v11232_v43  ;;  %v7551_v45 = vld [vmem:[#allocation4 + $0xc] sm:$0xff] }
 0x3d4   :  { %9363 = vmatprep.mubr.f32.mxu0 %v7029_v48  ;;  %9390 = vmatpush3.msra.mxu1 %v11159_v58  ;;  %v7561_v33 = vsel %vm4959_vm2, %v7551_v45, 0 }
 0x3d5   :  { %9393 = vmatprep.mubr.f32.mxu1 %v7027_v47  ;;  %9391 = vmatprep.subr.mxu1 %v11172_v61  ;;  %v11307_v56 = vand.u32 4294901760, %v7561_v33 }
 0x3d6   :  { %9379 = vmatprep.subr.mxu0 %v11178_v55  ;;  %9392 = vmatpush3.msra.mxu1 %v11172_v61 }
 0x3d7   :  { %9364 = vmatmul.mubr.f32.vlgmr.msra.gmra.mxu0 %v7039_v17  ;;  %9394 = vmatmul.mubr.f32.vlgmr.msra.gmra.mxu1 %v7037_v49  ;;  %v7647_v23 = vsub.f32 %v7561_v33, %v11307_v56 }
 0x3d8   :  { %9380 = vmatpush3.msra.mxu0 %v11178_v55  ;;  %9366 = vmatprep.mubr.f32.mxu0 %v7049_v59  ;;  %v7567_v55 = vsel %vm4959_vm2, %v7553_v32, 0  ;;  %vm8269_vm2 = vcmask 254976  }
 0x3d9   :  { %9396 = vmatprep.mubr.f32.mxu1 %v7047_v19  ;;  %9381 = vmatprep.subr.mxu0 %v11186_v16  ;;  %v11322_v28 = vand.u32 4294901760, %v7567_v55 }
 0x3da   :  { %9382 = vmatpush3.msra.mxu0 %v11186_v16  ;;  %9409 = vmatprep.subr.mxu1 %v11159_v58  ;;  %v7657_v16 = vsub.f32 %v7564_v51, %v11311_v3 }
 0x3db   :  { %9367 = vmatmul.mubr.f32.gmra.mxu0 %v7059_v36  ;;  %9397 = vmatmul.mubr.f32.gmra.mxu1 %v7057_v11  ;;  %v7667_v8 = vsub.f32 %v7567_v55, %v11322_v28 }
 0x3dc   :  { %9383 = vmatprep.mubr.f32.mxu0 %v11221_v34  ;;  %9410 = vmatpush3.msra.mxu1 %v11159_v58  ;;  %v7637_v58 = vsub.f32 %v7558_v12, %v11297_v26  ;;  %v7658_v0 = vand.u32 4294901760, %v7657_v16 }
 0x3dd   :  { %9413 = vmatprep.mubr.f32.mxu1 %v11203_v54  ;;  %9411 = vmatprep.subr.mxu1 %v11172_v61  ;;  %v7668_v62 = vand.u32 4294901760, %v7667_v8 }
 0x3de   :  { %9399 = vmatprep.subr.mxu0 %v11191_v46  ;;  %9412 = vmatpush3.msra.mxu1 %v11172_v61  ;;  %v7716_v61 = vand.u32 4294901760, %v7715_v6  ;;  %v7638_v50 = vand.u32 4294901760, %v7637_v58  ;;  %v7659_v27 = vsub.f32 %v7657_v16, %v7658_v0 }
 0x3df   :  { %9384 = vmatmul.mubr.f32.vlgmr.msra.gmra.mxu0 %v11230_v5  ;;  %9414 = vmatmul.mubr.f32.vlgmr.msra.gmra.mxu1 %v11213_v25  ;;  %v7669_v1 = vsub.f32 %v7667_v8, %v7668_v62 }
 0x3e0   :  { %9400 = vmatpush3.msra.mxu0 %v11191_v46  ;;  %9386 = vmatprep.mubr.f32.mxu0 %v11237_v21  ;;  %v7648_v46 = vand.u32 4294901760, %v7647_v23  ;;  %v7639_v38 = vsub.f32 %v7637_v58, %v7638_v50  ;;  %v7660_v37 = vand.u32 4294901760, %v7659_v27 }
 0x3e1   :  { %9416 = vmatprep.mubr.f32.mxu1 %v11217_v63  ;;  %9401 = vmatprep.subr.mxu0 %v11197_v41  ;;  %v7670_v42 = vand.u32 4294901760, %v7669_v1 }
 0x3e2   :  { %9402 = vmatpush3.msra.mxu0 %v11197_v41  ;;  %9429 = vmatprep.subr.mxu1 %v7709_v40  ;;  %v7649_v4 = vsub.f32 %v7647_v23, %v7648_v46  ;;  %v7640_v41 = vand.u32 4294901760, %v7639_v38 }
 0x3e3   :  { %9387 = vmatmul.mubr.f32.gmra.mxu0 %v11247_v7  ;;  %9417 = vmatmul.mubr.f32.gmra.mxu1 %v11232_v43 }
 0x3e4   :  { %9403 = vmatprep.mubr.f32.mxu0 %v11203_v54  ;;  %9430 = vmatpush3.msra.mxu1 %v7709_v40  ;;  %v7650_v54 = vand.u32 4294901760, %v7649_v4 }
 0x3e5   :  { %9433 = vmatprep.mubr.f32.mxu1 %v11297_v26  ;;  %9431 = vmatprep.subr.mxu1 %v7716_v61 }
 0x3e6   :  { %9419 = vmatprep.subr.mxu0 %v11253_v44  ;;  %9432 = vmatpush3.msra.mxu1 %v7716_v61 }
 0x3e7   :  { %9404 = vmatmul.mubr.f32.vlgmr.msra.gmra.mxu0 %v11213_v25  ;;  %9434 = vmatmul.mubr.f32.vlgmr.msra.gmra.mxu1 %v11307_v56 }
 0x3e8   :  { %9420 = vmatpush3.msra.mxu0 %v11253_v44  ;;  %9406 = vmatprep.mubr.f32.mxu0 %v11217_v63 }
 0x3e9   :  { %9436 = vmatprep.mubr.f32.mxu1 %v11311_v3  ;;  %9421 = vmatprep.subr.mxu0 %v11266_v52 }
 0x3ea   :  { %9422 = vmatpush3.msra.mxu0 %v11266_v52  ;;  %9449 = vmatprep.subr.mxu1 %v11253_v44 }
 0x3eb   :  { %9407 = vmatmul.mubr.f32.gmra.mxu0 %v11232_v43  ;;  %9437 = vmatmul.mubr.f32.gmra.mxu1 %v11322_v28 }
 0x3ec   :  { %9423 = vmatprep.mubr.f32.mxu0 %v7640_v41  ;;  %9450 = vmatpush3.msra.mxu1 %v11253_v44 }
 0x3ed   :  { %9453 = vmatprep.mubr.f32.mxu1 %v7638_v50  ;;  %9451 = vmatprep.subr.mxu1 %v11266_v52 }
 0x3ee   :  { %9439 = vmatprep.subr.mxu0 %v11272_v53  ;;  %9452 = vmatpush3.msra.mxu1 %v11266_v52 }
 0x3ef   :  { %9424 = vmatmul.mubr.f32.vlgmr.msra.gmra.mxu0 %v7650_v54  ;;  %9454 = vmatmul.mubr.f32.vlgmr.msra.gmra.mxu1 %v7648_v46 }
 0x3f0   :  { %9440 = vmatpush3.msra.mxu0 %v11272_v53  ;;  %9426 = vmatprep.mubr.f32.mxu0 %v7660_v37 }
 0x3f1   :  { %9456 = vmatprep.mubr.f32.mxu1 %v7658_v0  ;;  %9441 = vmatprep.subr.mxu0 %v11280_v15 }
 0x3f2   :  { %9442 = vmatpush3.msra.mxu0 %v11280_v15  ;;  %9469 = vmatprep.subr.mxu1 %v11253_v44 }
 0x3f3   :  { %9427 = vmatmul.mubr.f32.gmra.mxu0 %v7670_v42  ;;  %9457 = vmatmul.mubr.f32.gmra.mxu1 %v7668_v62 }
 0x3f4   :  { %9443 = vmatprep.mubr.f32.mxu0 %v7637_v58  ;;  %9470 = vmatpush3.msra.mxu1 %v11253_v44 }
 0x3f5   :  { %9473 = vmatprep.mubr.f32.mxu1 %v11297_v26  ;;  %9471 = vmatprep.subr.mxu1 %v11266_v52 }
 0x3f6   :  { %9459 = vmatprep.subr.mxu0 %v11285_v57  ;;  %9472 = vmatpush3.msra.mxu1 %v11266_v52 }
 0x3f7   :  { %9444 = vmatmul.mubr.f32.vlgmr.msra.gmra.mxu0 %v7647_v23  ;;  %9474 = vmatmul.mubr.f32.vlgmr.msra.gmra.mxu1 %v11307_v56 }
 0x3f8   :  { %9460 = vmatpush3.msra.mxu0 %v11285_v57  ;;  %9446 = vmatprep.mubr.f32.mxu0 %v7657_v16 }
 0x3f9   :  { %9476 = vmatprep.mubr.f32.mxu1 %v11311_v3  ;;  %9461 = vmatprep.subr.mxu0 %v11291_v24 }
 0x3fa   :  { %9462 = vmatpush3.msra.mxu0 %v11291_v24 }
 0x3fb   :  { %9447 = vmatmul.mubr.f32.gmra.mxu0 %v7667_v8  ;;  %9477 = vmatmul.mubr.f32.gmra.mxu1 %v11322_v28 }
 0x3fc   :  { %9463 = vmatprep.mubr.f32.mxu0 %v11297_v26 }
 0x3ff   :  { %9464 = vmatmul.mubr.f32.vlgmr.msra.gmra.mxu0 %v11307_v56 }
 0x400   :  { %9466 = vmatprep.mubr.f32.mxu0 %v11311_v3 }
 0x403   :  { %9467 = vmatmul.mubr.f32.gmra.mxu0 %v11322_v28 }
 0x447   :  { %v9195_v18 = vpop.f32.mrf.mxu1 }
 0x449   :  { %v5324_v25 = vpop.f32.mrf.mxu1 }
 0x44b   :  { %v9198_v35 = vpop.f32.mrf.mxu1 }
 0x44d   :  { %v5336_v63 = vpop.f32.mrf.mxu1 }
 0x44f   :  { %v9185_v30 = vpop.f32.mrf.mxu0  ;;  %v9215_v34 = vpop.f32.mrf.mxu1 }
 0x450   :  { %v5331_v20 = vadd.f32 %v9195_v18, %v9185_v30 }
 0x451   :  { %v5213_v5 = vpop.f32.mrf.mxu0  ;;  %v5514_v43 = vpop.f32.mrf.mxu1 }
 0x452   :  { %v5325_v47 = vadd.f32 %v5324_v25, %v5213_v5 }
 0x453   :  { %v9188_v21 = vpop.f32.mrf.mxu0  ;;  %v9218_v13 = vpop.f32.mrf.mxu1 }
 0x454   :  { %v5343_v7 = vadd.f32 %v9198_v35, %v9188_v21 }
 0x455   :  { %v5233_v49 = vpop.f32.mrf.mxu0  ;;  %v5530_v10 = vpop.f32.mrf.mxu1 }
 0x456   :  { %v5337_v19 = vadd.f32 %v5336_v63, %v5233_v49 }
 0x457   :  { %v9205_v44 = vpop.f32.mrf.mxu0  ;;  %v9235_v39 = vpop.f32.mrf.mxu1 }
 0x458   :  { %v5426_v2 = vadd.f32 %v9205_v44, %v5331_v20 }
 0x459   :  { %v5418_v11 = vpop.f32.mrf.mxu0  ;;  %v5706_v52 = vpop.f32.mrf.mxu1 }
 0x45a   :  { %v5419_v48 = vadd.f32 %v5418_v11, %v5325_v47  ;;  %v5523_v9 = vadd.f32 %v9215_v34, %v5426_v2 }
 0x45b   :  { %v9208_v53 = vpop.f32.mrf.mxu0  ;;  %v9238_v60 = vpop.f32.mrf.mxu1 }
 0x45c   :  { %v5440_v17 = vadd.f32 %v9208_v53, %v5343_v7  ;;  %v5515_v22 = vadd.f32 %v5514_v43, %v5419_v48 }
 0x45d   :  { %v5432_v15 = vpop.f32.mrf.mxu0  ;;  %v5718_v59 = vpop.f32.mrf.mxu1 }
 0x45e   :  { %v5433_v57 = vadd.f32 %v5432_v15, %v5337_v19  ;;  %v5539_v12 = vadd.f32 %v9218_v13, %v5440_v17 }
 0x45f   :  { %v9225_v45 = vpop.f32.mrf.mxu0  ;;  %v9255_v29 = vpop.f32.mrf.mxu1 }
 0x460   :  { %v5622_v36 = vadd.f32 %v9225_v45, %v5523_v9  ;;  %v5531_v24 = vadd.f32 %v5530_v10, %v5433_v57 }
 0x461   :  { %v5615_v31 = vpop.f32.mrf.mxu0  ;;  %v5924_v26 = vpop.f32.mrf.mxu1 }
 0x462   :  { %v5616_v33 = vadd.f32 %v5615_v31, %v5515_v22  ;;  %v5713_v51 = vadd.f32 %v9235_v39, %v5622_v36 }
 0x463   :  { %v9228_v32 = vpop.f32.mrf.mxu0  ;;  %v9258_v6 = vpop.f32.mrf.mxu1 }
 0x464   :  { %v5634_v56 = vadd.f32 %v9228_v32, %v5539_v12  ;;  %v5707_v40 = vadd.f32 %v5706_v52, %v5616_v33 }
 0x465   :  { %v5627_v3 = vpop.f32.mrf.mxu0  ;;  %v5936_v55 = vpop.f32.mrf.mxu1 }
 0x466   :  { %v5628_v58 = vadd.f32 %v5627_v3, %v5531_v24  ;;  %v5725_v61 = vadd.f32 %v9238_v60, %v5634_v56 }
 0x467   :  { %v9245_v23 = vpop.f32.mrf.mxu0  ;;  %v9275_v28 = vpop.f32.mrf.mxu1 }
 0x468   :  { %v5824_v50 = vadd.f32 %v9245_v23, %v5713_v51  ;;  %v5719_v16 = vadd.f32 %v5718_v59, %v5628_v58 }
 0x469   :  { %v5813_v8 = vpop.f32.mrf.mxu0  ;;  %v6114_v46 = vpop.f32.mrf.mxu1 }
 0x46a   :  { %v5814_v38 = vadd.f32 %v5813_v8, %v5707_v40  ;;  %v5931_v0 = vadd.f32 %v9255_v29, %v5824_v50 }
 0x46b   :  { %v9248_v4 = vpop.f32.mrf.mxu0  ;;  %v9278_v62 = vpop.f32.mrf.mxu1 }
 0x46c   :  { %v5844_v41 = vadd.f32 %v9248_v4, %v5725_v61  ;;  %v5925_v27 = vadd.f32 %v5924_v26, %v5814_v38 }
 0x46d   :  { %v5833_v54 = vpop.f32.mrf.mxu0  ;;  %v6130_v1 = vpop.f32.mrf.mxu1 }
 0x46e   :  { %v5834_v37 = vadd.f32 %v5833_v54, %v5719_v16  ;;  %v5943_v42 = vadd.f32 %v9258_v6, %v5844_v41 }
 0x46f   :  { %v9265_v18 = vpop.f32.mrf.mxu0  ;;  %v9295_v25 = vpop.f32.mrf.mxu1 }
 0x470   :  { %v6026_v35 = vadd.f32 %v9265_v18, %v5931_v0  ;;  %v5937_v63 = vadd.f32 %v5936_v55, %v5834_v37 }
 0x471   :  { %v6018_v30 = vpop.f32.mrf.mxu0  ;;  %v6306_v34 = vpop.f32.mrf.mxu1 }
 0x472   :  { %v6019_v20 = vadd.f32 %v6018_v30, %v5925_v27  ;;  %v6123_v5 = vadd.f32 %v9275_v28, %v6026_v35 }
 0x473   :  { %v9268_v43 = vpop.f32.mrf.mxu0  ;;  %v9298_v47 = vpop.f32.mrf.mxu1 }
 0x474   :  { %v6040_v21 = vadd.f32 %v9268_v43, %v5943_v42  ;;  %v6115_v13 = vadd.f32 %v6114_v46, %v6019_v20 }
 0x475   :  { %v6032_v7 = vpop.f32.mrf.mxu0  ;;  %v6318_v49 = vpop.f32.mrf.mxu1 }
 0x476   :  { %v6033_v10 = vadd.f32 %v6032_v7, %v5937_v63  ;;  %v6139_v19 = vadd.f32 %v9278_v62, %v6040_v21 }
 0x477   :  { %v9285_v44 = vpop.f32.mrf.mxu0  ;;  %v11365_v39 = vpop.f32.mrf.mxu1 }
 0x478   :  { %v6222_v2 = vadd.f32 %v9285_v44, %v6123_v5  ;;  %v6131_v11 = vadd.f32 %v6130_v1, %v6033_v10 }
 0x479   :  { %v6215_v52 = vpop.f32.mrf.mxu0  ;;  %v11367_v48 = vpop.f32.mrf.mxu1 }
 0x47a   :  { %v11369_v9 = vadd.f32 %v9295_v25, %v6222_v2  ;;  %v6216_v53 = vadd.f32 %v6215_v52, %v6115_v13 }
 0x47b   :  { %v9288_v60 = vpop.f32.mrf.mxu0  ;;  %v11371_v17 = vpop.f32.mrf.mxu1 }
 0x47c   :  { %11526 = vst [vmem:[#allocation27_spill] sm:$0xff] %v11369_v9  ;;  %v11373_v22 = vadd.f32 %v6306_v34, %v6216_v53  ;;  %v6234_v15 = vadd.f32 %v9288_v60, %v6139_v19 }
 0x47d   :  { %v6227_v59 = vpop.f32.mrf.mxu0  ;;  %v11375_v57 = vpop.f32.mrf.mxu1 }
 0x47e   :  { %11527 = vst [vmem:[#allocation14_spill] sm:$0xff] %v11373_v22  ;;  %v11377_v12 = vadd.f32 %v9298_v47, %v6234_v15  ;;  %v6228_v45 = vadd.f32 %v6227_v59, %v6131_v11 }
 0x47f   :  { %v9305_v29 = vpop.f32.mrf.mxu0  ;;  %v11379_v36 = vpop.f32.mrf.mxu1 }
 0x480   :  { %11528 = vst [vmem:[#allocation17_spill] sm:$0xff] %v11377_v12  ;;  %v11381_v24 = vadd.f32 %v6318_v49, %v6228_v45  ;;  %v6538_v53 = vadd.f32 %v11365_v39, %v9305_v29 }
 0x481   :  { %v6420_v31 = vpop.f32.mrf.mxu0  ;;  %v11383_v26 = vpop.f32.mrf.mxu1 }
 0x482   :  { %11529 = vst [vmem:[#allocation24_spill] sm:$0xff] %v11381_v24  ;;  %v6532_v60 = vadd.f32 %v11367_v48, %v6420_v31 }
 0x483   :  { %v9308_v33 = vpop.f32.mrf.mxu0  ;;  %v11385_v51 = vpop.f32.mrf.mxu1 }
 0x485   :  { %v6440_v32 = vpop.f32.mrf.mxu0  ;;  %v11387_v6 = vpop.f32.mrf.mxu1 }
 0x486   :  { %v6544_v9 = vadd.f32 %v11375_v57, %v6440_v32 }
 0x487   :  { %v9325_v56 = vpop.f32.mrf.mxu0  ;;  %v11389_v40 = vpop.f32.mrf.mxu1 }
 0x488   :  { %v6633_v45 = vadd.f32 %v9325_v56, %v6538_v53 }
 0x489   :  { %v6625_v3 = vpop.f32.mrf.mxu0  ;;  %v11391_v55 = vpop.f32.mrf.mxu1 }
 0x48a   :  { %v6626_v24 = vadd.f32 %v6625_v3, %v6532_v60 }
 0x48b   :  { %v9328_v58 = vpop.f32.mrf.mxu0  ;;  %v11393_v61 = vpop.f32.mrf.mxu1 }
 0x48c   :  { %11530 = vst [vmem:[#allocation23_spill] sm:$0xff] %v11393_v61  ;;  %v6550_v61 = vadd.f32 %v11371_v17, %v9308_v33  ;;  %v6722_v48 = vadd.f32 %v11383_v26, %v6626_v24 }
 0x48d   :  { %v6639_v23 = vpop.f32.mrf.mxu0  ;;  %v11395_v28 = vpop.f32.mrf.mxu1 }
 0x48e   :  { %11531 = vst [vmem:[#allocation25_spill] sm:$0xff] %v11395_v28  ;;  %v6647_v39 = vadd.f32 %v9328_v58, %v6550_v61 }
 0x48f   :  { %v9345_v50 = vpop.f32.mrf.mxu0  ;;  %v9375_v16 = vpop.f32.mrf.mxu1 }
 0x490   :  { %v6746_v57 = vadd.f32 %v11385_v51, %v6647_v39 }
 0x491   :  { %v6822_v8 = vpop.f32.mrf.mxu0  ;;  %v7142_v46 = vpop.f32.mrf.mxu1 }
 0x493   :  { %v11397_v38 = vpop.f32.mrf.mxu0  ;;  %v9378_v0 = vpop.f32.mrf.mxu1 }
 0x495   :  { %v11399_v4 = vpop.f32.mrf.mxu0  ;;  %v7154_v62 = vpop.f32.mrf.mxu1 }
 0x497   :  { %v9365_v41 = vpop.f32.mrf.mxu0  ;;  %v9395_v27 = vpop.f32.mrf.mxu1 }
 0x498   :  { %v7149_v14 = vadd.f32 %v9375_v16, %v9365_v41 }
 0x499   :  { %v7031_v54 = vpop.f32.mrf.mxu0  ;;  %v7332_v1 = vpop.f32.mrf.mxu1 }
 0x49a   :  { %v7143_v12 = vadd.f32 %v7142_v46, %v7031_v54  ;;  %v6640_v46 = vadd.f32 %v6639_v23, %v6544_v9  ;;  %v6841_v23 = vadd.f32 %v11397_v38, %v6746_v57 }
 0x49b   :  { %v9368_v37 = vpop.f32.mrf.mxu0  ;;  %v11401_v42 = vpop.f32.mrf.mxu1 }
 0x49c   :  { %v7161_v29 = vadd.f32 %v9378_v0, %v9368_v37 }
 0x49d   :  { %v7051_v18 = vpop.f32.mrf.mxu0  ;;  %v11403_v25 = vpop.f32.mrf.mxu1 }
 0x49e   :  { %v7155_v54 = vadd.f32 %v7154_v62, %v7051_v18 }
 0x49f   :  { %v9385_v35 = vpop.f32.mrf.mxu0  ;;  %v11405_v63 = vpop.f32.mrf.mxu1 }
 0x4a1   :  { %v7236_v30 = vpop.f32.mrf.mxu0  ;;  %v11407_v34 = vpop.f32.mrf.mxu1 }
 0x4a2   :  { %11532 = vst [vmem:[#allocation13_spill] sm:$0xff] %v11407_v34  ;;  %v7237_v34 = vadd.f32 %v7236_v30, %v7143_v12 }
 0x4a3   :  { %v9388_v20 = vpop.f32.mrf.mxu0  ;;  %v11409_v5 = vpop.f32.mrf.mxu1 }
 0x4a4   :  { %11533 = vst [vmem:[#allocation15_spill] sm:$0xff] %v11409_v5  ;;  %v7244_v5 = vadd.f32 %v9385_v35, %v7149_v14  ;;  %v6823_v14 = vadd.f32 %v6822_v8, %v6722_v48  ;;  %v7258_v35 = vadd.f32 %v9388_v20, %v7161_v29  ;;  %v7333_v53 = vadd.f32 %v7332_v1, %v7237_v34 }
 0x4a5   :  { %v7250_v43 = vpop.f32.mrf.mxu0  ;;  %v11411_v47 = vpop.f32.mrf.mxu1  ;;  %v6738_v8 = vadd.f32 %v11387_v6, %v6640_v46 }
 0x4a6   :  { %11534 = vst [vmem:[#allocation18_spill] sm:$0xff] %v11411_v47  ;;  %v7341_v16 = vadd.f32 %v9395_v27, %v7244_v5  ;;  %v7251_v32 = vadd.f32 %v7250_v43, %v7155_v54  ;;  %v6914_v9 = vadd.f32 %v11391_v55, %v6823_v14  ;;  %v7357_v62 = vadd.f32 %v11401_v42, %v7258_v35  ;;  %v11536_v5 = vld [vmem:[#allocation27_spill] sm:$0xff]  ;;  %v11538_v42 = vld [vmem:[#allocation14_spill] sm:$0xff] }
 0x4a7   :  { %v9405_v21 = vpop.f32.mrf.mxu0  ;;  %v9435_v13 = vpop.f32.mrf.mxu1  ;;  %v6835_v18 = vadd.f32 %v11399_v4, %v6738_v8 }
 0x4a8   :  { %v7440_v33 = vadd.f32 %v9405_v21, %v7341_v16  ;;  %v7349_v30 = vadd.f32 %v11403_v25, %v7251_v32 }
 0x4a9   :  { %v7433_v7 = vpop.f32.mrf.mxu0  ;;  %v7753_v49 = vpop.f32.mrf.mxu1  ;;  %v11537_v43 = vld [vmem:[#allocation13_spill] sm:$0xff] }
 0x4aa   :  { %v7434_v26 = vadd.f32 %v7433_v7, %v7333_v53  ;;  %v7531_v1 = vadd.f32 %v11405_v63, %v7440_v33  ;;  %v11539_v7 = vld [vmem:[#allocation23_spill] sm:$0xff]  ;;  %v11545_v33 = vld [vmem:[#allocation24_spill] sm:$0xff] }
 0x4ab   :  { %v9408_v10 = vpop.f32.mrf.mxu0  ;;  %v9438_v19 = vpop.f32.mrf.mxu1  ;;  %v6932_v63 = vadd.f32 %v11539_v7, %v6841_v23  ;;  %v11542_v60 = vld [vmem:[#allocation15_spill] sm:$0xff] }
 0x4ac   :  { %v7525_v38 = vadd.f32 %v11537_v43, %v7434_v26 }
 0x4ad   :  { %v11413_v44 = vpop.f32.mrf.mxu0  ;;  %v7765_v2 = vpop.f32.mrf.mxu1 }
 0x4ae   :  { %11535 = vst [vmem:[#allocation21_spill] sm:$0xff] %v11413_v44  ;;  %v6730_v44 = vadd.f32 %v11379_v36, %v6633_v45 }
 0x4af   :  { %v9425_v11 = vpop.f32.mrf.mxu0  ;;  %v9455_v52 = vpop.f32.mrf.mxu1 }
 0x4b0   :  { %v6829_v56 = vadd.f32 %v9345_v50, %v6730_v44  ;;  %v7760_v3 = vadd.f32 %v9435_v13, %v9425_v11  ;;  %v6935_v13 = vadd.f32 %v6914_v9, %v11538_v42 }
 0x4b1   :  { %v7642_v15 = vpop.f32.mrf.mxu0  ;;  %v7943_v59 = vpop.f32.mrf.mxu1 }
 0x4b2   :  { %v7754_v36 = vadd.f32 %v7753_v49, %v7642_v15  ;;  %v6920_v24 = vadd.f32 %v11389_v40, %v6829_v56  ;;  %v7452_v40 = vadd.f32 %v9408_v10, %v7357_v62  ;;  %v7546_v39 = vadd.f32 %v7525_v38, %v6935_v13  ;;  %v11543_v56 = vld [vmem:[#allocation17_spill] sm:$0xff] }
 0x4b3   :  { %v9428_v47 = vpop.f32.mrf.mxu0  ;;  %v9458_v28 = vpop.f32.mrf.mxu1  ;;  %v6938_v16 = vadd.f32 %v6932_v63, %v11543_v56 }
 0x4b4   :  { %v7772_v61 = vadd.f32 %v9438_v19, %v9428_v47  ;;  %v6936_v55 = vadd.f32 %v6920_v24, %v11536_v5  ;;  %v7543_v15 = vadd.f32 %v11542_v60, %v7452_v40  ;;  %v8202_v60 = vld [vmem:[%s11478_s8] sm:$0x1]  ;;  %s9514_s8 = smov [#allocation8]  }
 0x4b5   :  { %v7662_v22 = vpop.f32.mrf.mxu0  ;;  %v7959_v41 = vpop.f32.mrf.mxu1  ;;  %v11540_v49 = vld [vmem:[#allocation21_spill] sm:$0xff] }
 0x4b6   :  { %v7766_v34 = vadd.f32 %v7765_v2, %v7662_v22  ;;  %v7446_v19 = vadd.f32 %v11540_v49, %v7349_v30  ;;  %v7547_v10 = vadd.f32 %v7531_v1, %v6936_v55  ;;  %v11541_v2 = vld [vmem:[#allocation25_spill] sm:$0xff] }
 0x4b7   :  { %v9445_v31 = vpop.f32.mrf.mxu0  ;;  %v9475_v50 = vpop.f32.mrf.mxu1 }
 0x4b8   :  { %v7855_v12 = vadd.f32 %v9445_v31, %v7760_v3  ;;  %v11544_v3 = vld [vmem:[#allocation18_spill] sm:$0xff] }
 0x4b9   :  { %v7847_v17 = vpop.f32.mrf.mxu0  ;;  %v8135_v47 = vpop.f32.mrf.mxu1  ;;  %v7537_v46 = vadd.f32 %v11544_v3, %v7446_v19 }
 0x4ba   :  { %v7848_v0 = vadd.f32 %v7847_v17, %v7754_v36  ;;  %v7952_v37 = vadd.f32 %v9455_v52, %v7855_v12  ;;  %v6926_v52 = vadd.f32 %v11541_v2, %v6835_v18  ;;  %v7549_v36 = vadd.f32 %v7543_v15, %v6938_v16 }
 0x4bb   :  { %v9448_v58 = vpop.f32.mrf.mxu0  ;;  %v9478_v48 = vpop.f32.mrf.mxu1 }
 0x4bc   :  { %v7869_v51 = vadd.f32 %v9448_v58, %v7772_v61  ;;  %v7944_v21 = vadd.f32 %v7943_v59, %v7848_v0  ;;  %v6937_v53 = vadd.f32 %v6926_v52, %v11545_v33 }
 0x4bd   :  { %v7861_v27 = vpop.f32.mrf.mxu0  ;;  %v8147_v57 = vpop.f32.mrf.mxu1 }
 0x4be   :  { %v7862_v44 = vadd.f32 %v7861_v27, %v7766_v34  ;;  %v7968_v22 = vadd.f32 %v9458_v28, %v7869_v51  ;;  %v7548_v26 = vadd.f32 %v7537_v46, %v6937_v53 }
 0x4bf   :  { %v9465_v20 = vpop.f32.mrf.mxu0 }
 0x4c0   :  { %v8051_v6 = vadd.f32 %v9465_v20, %v7952_v37  ;;  %v7960_v14 = vadd.f32 %v7959_v41, %v7862_v44 }
 0x4c1   :  { %v8044_v4 = vpop.f32.mrf.mxu0 }
 0x4c2   :  { %v8142_v11 = vadd.f32 %v9475_v50, %v8051_v6  ;;  %v8045_v25 = vadd.f32 %v8044_v4, %v7944_v21 }
 0x4c3   :  { %v9468_v45 = vpop.f32.mrf.mxu0 }
 0x4c4   :  { %v11437_v59 = vadd.f32 %v8142_v11, %v7547_v10  ;;  %v8136_v29 = vadd.f32 %v8135_v47, %v8045_v25  ;;  %v8063_v31 = vadd.f32 %v9468_v45, %v7968_v22 }
 0x4c5   :  { %v8056_v54 = vpop.f32.mrf.mxu0 }
 0x4c6   :  { %v8177_v28 = vmul.f32 %v11437_v59, %v11437_v59  ;;  %v8157_v35 = vadd.f32 %v8136_v29, %v7546_v39  ;;  %v8154_v17 = vadd.f32 %v9478_v48, %v8063_v31  ;;  %v8057_v12 = vadd.f32 %v8056_v54, %v7960_v14  ;;  %v11546_v39 = vld [vmem:[#allocation11_spill] sm:$0xff]  ;;  %v8308_v29 = vld [vmem:[%s11479_s9] ss:$0 sm:$0xff]  ;;  %s8277_s9 = sshll.u32 %s9514_s8, 4  ;;  %s8278_s9 = int_to_ptr.vmem [resolvable:$true] %s8277_s9 }
 0x4c7   :  { %v8163_v32 = vsel %vm8161_vm14, %v11437_v59, 0.0  ;;  %s9490_s4 = scalar_lea.vmem %s8278_s9, 32  ;;  %p9495_p1 = scmp.lt.s32.totalorder %s8278_s9, %s8278_s9 }
 0x4c8   :  { %v8162_v58 = vsel %vm8161_vm14, %v8157_v35, 0.0  ;;  %v8176_v24 = vmul.f32 %v8157_v35, %v8157_v35  ;;  %v8160_v41 = vadd.f32 %v8154_v17, %v7549_v36  ;;  %v8148_v50 = vadd.f32 %v8147_v57, %v8057_v12  ;;  %p9491_p0 = scmp.ne.s32.totalorder %s8278_s9, %s9490_s4  ;;  %p9496_p2 = scmp.lt.s32.totalorder %s9490_s4, %s9490_s4 }
 0x4c9   :  { %v8164_v61 = vadd.f32 %v8163_v32, %v8162_v58  ;;  %v8181_v0 = vsel %vm8161_vm14, %v8177_v28, 0.0 }
 0x4ca   :  { %v8180_v9 = vsel %vm8161_vm14, %v8176_v24, 0.0  ;;  %v8159_v8 = vadd.f32 %v8148_v50, %v7548_v26  ;;  %v8179_v62 = vmul.f32 %v8160_v41, %v8160_v41  ;;  %v8167_v37 = vsel %vm8161_vm14, %v8160_v41, 0.0  ;;  %p9497_p3 = por %p9496_p2, %p9495_p1 }
 0x4cb   :  { %v8182_v23 = vadd.f32 %v8181_v0, %v8180_v9 }
 0x4cc   :  { %v8165_v27 = vsel %vm8161_vm14, %v8159_v8, 0.0  ;;  %v8178_v1 = vmul.f32 %v8159_v8, %v8159_v8  ;;  %v8185_v34 = vsel %vm8161_vm14, %v8179_v62, 0.0  ;;  %p9498_p4 = pnand %p9497_p3, %p9491_p0 }
 0x4cd   :  { %v8166_v51 = vadd.f32 %v8165_v27, %v8164_v61 }
 0x4ce   :  { %v8183_v18 = vsel %vm8161_vm14, %v8178_v1, 0.0 }
 0x4cf   :  { %v8168_v40 = vadd.f32 %v8167_v37, %v8166_v51  ;;  %v8184_v30 = vadd.f32 %v8183_v18, %v8182_v23 }
 0x4d1   :  { %v8169_v20 = vrot.slane %v8168_v40, 4  ;;  %v8186_v5 = vadd.f32 %v8185_v34, %v8184_v30 }
 0x4d3   :  { %v8170_v55 = vadd.f32 %v8169_v20, %v8168_v40  ;;  %v8187_v43 = vrot.slane %v8186_v5, 4 }
 0x4d5   :  { %v8171_v38 = vrot.slane %v8170_v55, 2  ;;  %v8188_v47 = vadd.f32 %v8187_v43, %v8186_v5 }
 0x4d7   :  { %v8172_v6 = vadd.f32 %v8171_v38, %v8170_v55  ;;  %v8189_v21 = vrot.slane %v8188_v47, 2 }
 0x4d9   :  { %v8173_v42 = vrot.slane %v8172_v6, 1  ;;  %v8190_v13 = vadd.f32 %v8189_v21, %v8188_v47 }
 0x4db   :  { %v8174_v7 = vadd.f32 %v8173_v42, %v8172_v6  ;;  %v8191_v63 = vrot.slane %v8190_v13, 1 }
 0x4dd   :  { %v8175_v49 = vmul.f32 0.03125, %v8174_v7  ;;  %v8192_v19 = vadd.f32 %v8191_v63, %v8190_v13 }
 0x4df   :  { %v8193_v44 = vmul.f32 0.03125, %v8192_v19  ;;  %v8194_v4 = vmul.f32 %v8175_v49, %v8175_v49  ;;  %v8198_v10 = vsub.f32 %v8157_v35, %v8175_v49  ;;  %v8199_v11 = vsub.f32 %v11437_v59, %v8175_v49 }
 0x4e0   :  { %v8200_v25 = vsub.f32 %v8159_v8, %v8175_v49  ;;  %v8201_v22 = vsub.f32 %v8160_v41, %v8175_v49 }
 0x4e1   :  { %v8195_v2 = vsub.f32 %v8193_v44, %v8194_v4 }
 0x4e3   :  { %v8196_v52 = vadd.f32 1e-05, %v8195_v2 }
 0x4e5   :  { %9488 = vrsqrt.f32 %v8196_v52 }
 0x4f2   :  { %v9489_v15 = vpop.eup %9488 }
 0x4f3   :  { %v8203_v45 = vmul.f32 %v9489_v15, %v8202_v60 }
 0x4f5   :  { %v8207_v48 = vrot.slane %v8203_v45, %v11546_v39 }
 0x4f7   :  { %v8208_v31 = vmul.f32 %v8207_v48, %v8198_v10  ;;  %v8209_v56 = vmul.f32 %v8207_v48, %v8199_v11  ;;  %v8210_v59 = vmul.f32 %v8207_v48, %v8200_v25  ;;  %v8211_v16 = vmul.f32 %v8207_v48, %v8201_v22 }
 0x4f9   :  { %v8219_v3 = vadd.f32 %v8308_v29, %v8208_v31  ;;  %v8220_v46 = vadd.f32 %v8308_v29, %v8209_v56  ;;  %v8221_v14 = vadd.f32 %v8308_v29, %v8210_v59  ;;  %v8222_v54 = vadd.f32 %v8308_v29, %v8211_v16 }
 0x4fb   :  { %vm8223_vm15 = vcmp.ge.f32.partialorder %v8219_v3, 0.0  ;;  %vm8224_vm0 = vcmp.ge.f32.partialorder %v8220_v46, 0.0  ;;  %vm8225_vm1 = vcmp.ge.f32.partialorder %v8221_v14, 0.0  ;;  %vm8226_vm3 = vcmp.ge.f32.partialorder %v8222_v54, 0.0 }
 0x4fc   :  { %v8227_v28 = vmul.f32 0.01, %v8219_v3  ;;  %v8228_v35 = vmul.f32 0.01, %v8220_v46  ;;  %v8229_v17 = vmul.f32 0.01, %v8221_v14 }
 0x4fd   :  { %v8230_v33 = vmul.f32 0.01, %v8222_v54 }
 0x4fe   :  { %v8231_v53 = vsel %vm8223_vm15, %v8219_v3, %v8227_v28  ;;  %v8232_v36 = vsel %vm8224_vm0, %v8220_v46, %v8228_v35  ;;  %v8233_v12 = vsel %vm8225_vm1, %v8221_v14, %v8229_v17 }
 0x4ff   :  { %v8234_v57 = vsel %vm8226_vm3, %v8222_v54, %v8230_v33  ;;  %8235 = vst.msk [vmem:[#allocation7] sm:$0xff] %vm8161_vm14, %v8231_v53  ;;  %8236 = vst.msk [vmem:[#allocation7 + $0x8] sm:$0xff] %vm8161_vm14, %v8232_v36 }
 0x500   :  { %8237 = vst.msk [vmem:[#allocation7 + $0x10] sm:$0xff] %vm8161_vm14, %v8233_v12  ;;  %8238 = vst.msk [vmem:[#allocation7 + $0x18] sm:$0xff] %vm8161_vm14, %v8234_v57 }
 0x506   :  { %v8239_v32 = vld [vmem:[#allocation7] ss:$2 sm:$0xff]  ;;  %v8243_v58 = vld [vmem:[#allocation7 + $0x1] ss:$2 sm:$0xff] }
 0x507   :  { %v8241_v24 = vld [vmem:[#allocation7 + $0x10] ss:$2 sm:$0xff]  ;;  %v8245_v26 = vld [vmem:[#allocation7 + $0x11] ss:$2 sm:$0xff]  ;;  %v8246_v61 = vmax.f32 %v8239_v32, %v8243_v58 }
 0x508   :  { %v8247_v41 = vmax.f32 %v8241_v24, %v8245_v26 }
 0x509   :  { %v8248_v50 = vsel %vm8161_vm14, %v8246_v61, 0.0 }
 0x50a   :  { %v8249_v0 = vrot.slane %v8248_v50, 4  ;;  %v8255_v9 = vsel %vm8161_vm14, %v8247_v41, 0.0 }
 0x50b   :  { %v8256_v23 = vrot.slane %v8255_v9, 4 }
 0x50c   :  { %v8250_v8 = vadd.f32 %v8249_v0, %v8248_v50 }
 0x50d   :  { %v8257_v62 = vadd.f32 %v8256_v23, %v8255_v9 }
 0x50e   :  { %v8251_v27 = vrot.slane %v8250_v8, 2 }
 0x50f   :  { %v8258_v1 = vrot.slane %v8257_v62, 2 }
 0x510   :  { %v8252_v51 = vadd.f32 %v8251_v27, %v8250_v8 }
 0x511   :  { %v8259_v37 = vadd.f32 %v8258_v1, %v8257_v62 }
 0x512   :  { %v8253_v18 = vrot.slane %v8252_v51, 1 }
 0x513   :  { %v8260_v40 = vrot.slane %v8259_v37, 1 }
 0x514   :  { %v8254_v30 = vadd.f32 %v8253_v18, %v8252_v51 }
 0x515   :  { %v8261_v34 = vadd.f32 %v8260_v40, %v8259_v37 }
 0x516   :  { %v8262_v20 = vmul.f32 0.125, %v8254_v30 }
 0x517   :  { %v8263_v5 = vmul.f32 0.125, %v8261_v34 }
 0x519   :  { %v8267_v55 = vsel %vm8266_vm4, %v8263_v5, %v8262_v20 }
 0x51a   :  { %8270 = vst.msk [vmem:[#allocation8] sm:$0x3] %vm8269_vm2, %v8267_v55 }
 0x51b   :  { %9501 = shalt.err (!%p9498_p4)
}
 0x51c   :  { %8280 = dma.vmem_to_hbm [thread:$0]  %s8278_s9, 32, %s11480_s10, [#allocation9]  }
 0x51d   :  { %9510 = dma.done.wait [#allocation9], 32  }
 0x51e   :  { %9511 = vsyncadd [#allocation9], 4294967264 }
 0x51f   :  { %8284 = vsyncpa [#allocation9], 1 }

</bundles_post_ra>
